<compile_context>
chip_gen: v6e
topology: v6e:2x2x1
jax: 0.10.0
libtpu: 0.0.40
codegen_flags: <defaults>
</compile_context>

<pallas_src>
import jax
import jax.numpy as jnp
from jax.experimental import pallas as pl
from jax.experimental.pallas import tpu as pltpu

EPS_BN = 1e-5
NEG_LARGE = -1e30       # finite stand-in for -inf in the masked max
REMOVED_SCORE = -2.0    # < tanh(anything): marks rows removed by earlier pools


# ---------------------------------------------------------------------------
# Shared tail: GraphConv (two bf16 MXU dots) + ReLU + folded eval-BN + pool score
# ---------------------------------------------------------------------------
def _conv_relu_bn_score(a_bf, x_bf, wcat_ref, bvec_ref, fin, keep_col, h_ref, s_ref):
    # Neighbor aggregation on the MXU: bf16 x bf16 operands, f32 accumulation.
    agg = jnp.dot(a_bf, x_bf, preferred_element_type=jnp.float32)
    # GraphConv: agg @ W_rel + x @ W_root (two short-K bf16 dots; no concat copy).
    h = (jnp.dot(agg.astype(jnp.bfloat16), wcat_ref[:fin, :],
                 preferred_element_type=jnp.float32)
         + jnp.dot(x_bf, wcat_ref[fin:, :], preferred_element_type=jnp.float32)
         + bvec_ref[0:1, :])                                  # + bias
    h = jnp.maximum(h, 0.0)                                   # ReLU
    h = h * bvec_ref[1:2, :] + bvec_ref[2:3, :]               # folded BatchNorm (eval)
    h_ref[...] = h.astype(h_ref.dtype)                        # bf16 inter-layer store
    # TopKPooling score: tanh(h @ p / ||p||); p pre-normalized, packed in bvec row 3.
    s = jnp.tanh(jnp.sum(h * bvec_ref[3:4, :], axis=-1, keepdims=True))
    if keep_col is None:
        s_ref[...] = s
    else:
        # Rows removed by earlier pools: force the score below any tanh value so the
        # downstream threshold compare can never select them.
        s_ref[...] = jnp.where(keep_col > 0.0, s, REMOVED_SCORE)


def _make_layer_kernel(first_layer, fin):
    if first_layer:
        def kernel(a_ref, x_ref, wcat_ref, bvec_ref, h_ref, s_ref):
            x_bf = x_ref[...].astype(jnp.bfloat16)
            _conv_relu_bn_score(a_ref[0], x_bf, wcat_ref, bvec_ref, fin,
                                None, h_ref, s_ref)
        return kernel

    def kernel(thr_ref, a_ref, x_ref, s_ref, racc_ref, wcat_ref, bvec_ref,
               h_ref, s_out_ref, racc_out_ref):
        g = pl.program_id(0)
        thr = thr_ref[g]                              # k-th largest score of graph g
        sc = s_ref[...]                               # (Npg, 1); removed rows == -2
        keep = (sc >= thr).astype(jnp.float32)        # previous TopKPooling selection
        # Previous TopKPooling == row scaling; removed rows become exactly 0, so the
        # original adjacency block can be reused (never rewritten).
        x_pool = x_ref[...].astype(jnp.float32) * (keep * sc)
        # Readout of the pooled previous layer: cat([global_max, global_mean]).
        gmax = jnp.max(jnp.where(keep > 0.0, x_pool, NEG_LARGE), axis=0, keepdims=True)
        cnt = jnp.maximum(jnp.sum(keep), 1.0)
        gmean = jnp.sum(x_pool, axis=0, keepdims=True) / cnt
        racc_out_ref[0] = racc_ref[0] + jnp.concatenate([gmax, gmean], axis=-1)
        # NOTE: conv/BN outputs at removed rows are garbage (finite) but are always
        # re-masked downstream via the -2 score sentinel.
        _conv_relu_bn_score(a_ref[0], x_pool.astype(jnp.bfloat16), wcat_ref, bvec_ref,
                            fin, keep, h_ref, s_out_ref)

    return kernel


def gconv_layer(A_b, x, wcat, bvec, score=None, thr=None, racc=None):
    G, Npg, _ = A_b.shape
    N, Fin = x.shape
    Fout = wcat.shape[1]
    first = score is None
    kernel = _make_layer_kernel(first, Fin)

    if first:
        return pl.pallas_call(
            kernel,
            out_shape=(jax.ShapeDtypeStruct((N, Fout), jnp.bfloat16),
                       jax.ShapeDtypeStruct((N, 1), jnp.float32)),
            grid=(G,),
            in_specs=[pl.BlockSpec((1, Npg, Npg), lambda g: (g, 0, 0)),
                      pl.BlockSpec((Npg, Fin), lambda g: (g, 0)),
                      pl.BlockSpec((2 * Fin, Fout), lambda g: (0, 0)),
                      pl.BlockSpec((8, Fout), lambda g: (0, 0))],
            out_specs=(pl.BlockSpec((Npg, Fout), lambda g: (g, 0)),
                       pl.BlockSpec((Npg, 1), lambda g: (g, 0))),
            compiler_params=pltpu.CompilerParams(dimension_semantics=("parallel",)),
        )(A_b, x, wcat, bvec)

    R = racc.shape[-1]
    grid_spec = pltpu.PrefetchScalarGridSpec(
        num_scalar_prefetch=1,                         # thr: (G,) f32 threshold in SMEM
        grid=(G,),
        in_specs=[pl.BlockSpec((1, Npg, Npg), lambda g, thr_sm: (g, 0, 0)),
                  pl.BlockSpec((Npg, Fin), lambda g, thr_sm: (g, 0)),
                  pl.BlockSpec((Npg, 1), lambda g, thr_sm: (g, 0)),
                  pl.BlockSpec((1, 1, R), lambda g, thr_sm: (g, 0, 0)),
                  pl.BlockSpec((2 * Fin, Fout), lambda g, thr_sm: (0, 0)),
                  pl.BlockSpec((8, Fout), lambda g, thr_sm: (0, 0))],
        out_specs=(pl.BlockSpec((Npg, Fout), lambda g, thr_sm: (g, 0)),
                   pl.BlockSpec((Npg, 1), lambda g, thr_sm: (g, 0)),
                   pl.BlockSpec((1, 1, R), lambda g, thr_sm: (g, 0, 0))),
    )
    return pl.pallas_call(
        kernel,
        out_shape=(jax.ShapeDtypeStruct((N, Fout), jnp.bfloat16),
                   jax.ShapeDtypeStruct((N, 1), jnp.float32),
                   jax.ShapeDtypeStruct((G, 1, R), jnp.float32)),
        grid_spec=grid_spec,
        compiler_params=pltpu.CompilerParams(dimension_semantics=("parallel",)),
    )(thr, A_b, x, score, racc, wcat, bvec)


# ---------------------------------------------------------------------------
# Fused head kernel: pool5 readout + sum of all 5 readouts + MLP + log_softmax
# ---------------------------------------------------------------------------
def _head_kernel(h_ref, s_ref, thr_ref, racc_ref, w1_ref, b1_ref, w2_ref, b2_ref,
                 w3_ref, b3_ref, o_ref):
    sc = s_ref[...]                                      # (Gt, Npg, 1)
    keep = (sc >= thr_ref[...]).astype(jnp.float32)      # pool5 selection
    x5 = h_ref[...].astype(jnp.float32) * (keep * sc)    # pooled layer-5 features
    gmax = jnp.max(jnp.where(keep > 0.0, x5, NEG_LARGE), axis=1)     # (Gt, F)
    cnt = jnp.maximum(jnp.sum(keep, axis=1), 1.0)                    # (Gt, 1)
    gmean = jnp.sum(x5, axis=1) / cnt
    xcat = racc_ref[...] + jnp.concatenate([gmax, gmean], axis=-1)   # sum of 5 readouts
    h = jnp.maximum(jnp.dot(xcat.astype(jnp.bfloat16), w1_ref[...],
                            preferred_element_type=jnp.float32) + b1_ref[...], 0.0)
    # F.dropout(p=0.2, training=False) -> identity
    h = jnp.maximum(jnp.dot(h.astype(jnp.bfloat16), w2_ref[...],
                            preferred_element_type=jnp.float32) + b2_ref[...], 0.0)
    # F.dropout(p=0.5, training=False) -> identity
    logits = jnp.dot(h.astype(jnp.bfloat16), w3_ref[...],
                     preferred_element_type=jnp.float32) + b3_ref[...]
    z = logits - jnp.max(logits, axis=-1, keepdims=True)
    o_ref[...] = z - jnp.log(jnp.sum(jnp.exp(z), axis=-1, keepdims=True))


def mlp_head(h5, score5, thr5, racc2, lin1, lin2, lin3):
    G, Npg, HID = h5.shape
    R = racc2.shape[-1]
    C = lin3["w"].shape[1]
    # Block over graph tiles so h5 never sits whole in VMEM once G grows.
    Gt = G if G <= 8 else 8
    grid = (pl.cdiv(G, Gt),)

    def full(shape):
        return pl.BlockSpec(shape, lambda t, _s=shape: (0,) * len(_s))

    return pl.pallas_call(
        _head_kernel,
        out_shape=jax.ShapeDtypeStruct((G, C), jnp.float32),
        grid=grid,
        in_specs=[pl.BlockSpec((Gt, Npg, HID), lambda t: (t, 0, 0)),
                  pl.BlockSpec((Gt, Npg, 1), lambda t: (t, 0, 0)),
                  pl.BlockSpec((Gt, 1, 1), lambda t: (t, 0, 0)),
                  pl.BlockSpec((Gt, R), lambda t: (t, 0)),
                  full(lin1["w"].shape), full(lin1["b"].shape),
                  full(lin2["w"].shape), full(lin2["b"].shape),
                  full(lin3["w"].shape), full(lin3["b"].shape)],
        out_specs=pl.BlockSpec((Gt, C), lambda t: (t, 0)),
        compiler_params=pltpu.CompilerParams(dimension_semantics=("parallel",)),
    )(h5, score5, thr5, racc2, lin1["w"], lin1["b"], lin2["w"], lin2["b"],
      lin3["w"], lin3["b"])


# ---------------------------------------------------------------------------
# Full forward (6 pallas_calls: 5 fused layers + 1 fused head; per-pool glue is a
# single lax.top_k + slice producing the per-graph threshold)
# ---------------------------------------------------------------------------
def gcn_forward(packed, x, A_b):
    G, Npg, _ = A_b.shape
    HID = packed["conv1"]["wcat"].shape[1]

    # conv1 + relu + bn1 + pool1 score (no preceding pool / readout)
    h, score = gconv_layer(A_b, x, packed["conv1"]["wcat"], packed["conv1"]["bvec"])

    racc = jnp.zeros((G, 1, 2 * HID), jnp.float32)
    active = Npg
    for l in range(2, 6):
        # TopKPooling_{l-1}: k = ceil(0.5 * n_active); threshold = k-th largest score.
        # TODO(synk): data-dependent top-k selection stays in plain JAX between kernels.
        k = -(-active // 2)
        thr = jax.lax.top_k(score.reshape(G, Npg), k)[0][:, k - 1]   # (G,) f32
        active = k
        # fused: pool_{l-1} (threshold + scale) + readout_{l-1} accumulate +
        #        conv_l / relu / bn_l + pool_l score  (dropout after bn3 is identity)
        h, score, racc = gconv_layer(A_b, h, packed[f"conv{l}"]["wcat"],
                                     packed[f"conv{l}"]["bvec"],
                                     score=score, thr=thr, racc=racc)

    # pool5 threshold, then fused readout5 + readout-sum + MLP head
    k = -(-active // 2)
    thr = jax.lax.top_k(score.reshape(G, Npg), k)[0][:, k - 1]
    return mlp_head(h.reshape(G, Npg, HID), score.reshape(G, Npg, 1),
                    thr.reshape(G, 1, 1), racc.reshape(G, 2 * HID),
                    packed["lin1"], packed["lin2"], packed["lin3"])


# ---------------------------------------------------------------------------
# Parameter preparation: fold BN, normalize p, concat conv weights (bf16), pack vectors
# ---------------------------------------------------------------------------
def prepare_params(params):
    packed = {}
    for l in range(1, 6):
        c, b = params[f"conv{l}"], params[f"bn{l}"]
        p = params[f"pool{l}"]["p"]
        bn_scale = b["gamma"] * jax.lax.rsqrt(b["rvar"] + EPS_BN)
        bn_shift = b["beta"] - b["rmean"] * bn_scale
        p_norm = p / jnp.sqrt(jnp.sum(p * p) + 1e-12)
        fout = c["wrel"].shape[1]
        bvec = (jnp.zeros((8, fout), jnp.float32)
                .at[0].set(c["brel"]).at[1].set(bn_scale)
                .at[2].set(bn_shift).at[3].set(p_norm))
        packed[f"conv{l}"] = dict(
            wcat=jnp.concatenate([c["wrel"], c["wroot"]],
                                 axis=0).astype(jnp.bfloat16),   # [2*Fin, Fout] bf16
            bvec=bvec)                                           # [8, Fout] f32
    for i in range(1, 4):
        packed[f"lin{i}"] = dict(w=params[f"lin{i}"]["w"].astype(jnp.bfloat16),
                                 b=params[f"lin{i}"]["b"].reshape(1, -1))
    return packed


# ---------------------------------------------------------------------------
# Deterministic parameter init + example batched graph
# ---------------------------------------------------------------------------
def init_params(key, num_features, hidden, num_classes):
    params = {}
    fin = num_features
    for l in range(1, 6):
        key, k1, k2, k3 = jax.random.split(key, 4)
        params[f"conv{l}"] = dict(
            wrel=jax.random.normal(k1, (fin, hidden), jnp.float32) * 0.1,
            brel=jax.random.normal(k2, (hidden,), jnp.float32) * 0.1,
            wroot=jax.random.normal(k3, (fin, hidden), jnp.float32) * 0.1,
        )
        key, k1, k2, k3, k4 = jax.random.split(key, 5)
        params[f"bn{l}"] = dict(
            gamma=1.0 + 0.1 * jax.random.normal(k1, (hidden,), jnp.float32),
            beta=0.1 * jax.random.normal(k2, (hidden,), jnp.float32),
            rmean=0.1 * jax.random.normal(k3, (hidden,), jnp.float32),
            rvar=0.5 + jnp.abs(jax.random.normal(k4, (hidden,), jnp.float32)),
        )
        key, k1 = jax.random.split(key)
        params[f"pool{l}"] = dict(p=jax.random.normal(k1, (hidden,), jnp.float32) * 0.1)
        fin = hidden
    dims = [(2 * hidden, hidden), (hidden, 64), (64, num_classes)]
    for i, (di, do) in enumerate(dims, start=1):
        key, k1, k2 = jax.random.split(key, 3)
        params[f"lin{i}"] = dict(
            w=jax.random.normal(k1, (di, do), jnp.float32) * 0.1,
            b=jax.random.normal(k2, (do,), jnp.float32) * 0.1,
        )
    return params


def make_graph(key, G, Npg, num_features):
    """G ring graphs of Npg nodes each; Npg is a multiple of 128 for lane alignment."""
    N = G * Npg
    x = jax.random.normal(key, (N, num_features), jnp.float32)
    i = jnp.arange(Npg)
    j = (i + 1) % Npg
    Ag = jnp.zeros((Npg, Npg), jnp.float32).at[j, i].set(1.0).at[i, j].set(1.0)
    # A[g, r, c] = 1 iff edge c -> r inside graph g; 0/1 values are exact in bf16.
    A_b = jnp.broadcast_to(Ag, (G, Npg, Npg)).astype(jnp.bfloat16)
    return x, A_b


if __name__ == "__main__":
    G, Npg = 2, 128                      # 2 graphs, 128 nodes each (N = 256)
    NUM_FEATURES, HIDDEN, NUM_CLASSES = 32, 128, 6

    key = jax.random.PRNGKey(0)
    key, kp, kg = jax.random.split(key, 3)
    params = init_params(kp, NUM_FEATURES, HIDDEN, NUM_CLASSES)
    packed = prepare_params(params)
    x, A_b = make_graph(kg, G, Npg, NUM_FEATURES)

    fwd = jax.jit(gcn_forward)
    out = jax.block_until_ready(fwd(packed, x, A_b))
    assert out.shape == (G, NUM_CLASSES)
    assert bool(jnp.all(jnp.isfinite(out)))
    print("KERNEL_OK")
</pallas_src>

<mosaic_0001>
module attributes {stable_mosaic.version = 11 : i64} {
  func.func @kernel(%arg0: i32, %arg1: memref<1x128x128xbf16, #tpu.memory_space<vmem>>, %arg2: memref<128x32xf32, #tpu.memory_space<vmem>>, %arg3: memref<64x128xbf16, #tpu.memory_space<vmem>>, %arg4: memref<8x128xf32, #tpu.memory_space<vmem>>, %arg5: memref<128x128xbf16, #tpu.memory_space<vmem>>, %arg6: memref<128x1xf32, #tpu.memory_space<vmem>>) attributes {dimension_semantics = [#tpu.dimension_semantics<parallel>], iteration_bounds = array<i64: 2>, scalar_prefetch = 0 : i64, scratch_operands = 0 : i64, tpu.core_type = #tpu.core_type<tc>, window_params = [{transform_indices = @transform_0, window_bounds = array<i64: 1, 128, 128>}, {transform_indices = @transform_1, window_bounds = array<i64: 128, 32>}, {pipeline_mode = #tpu.pipeline_mode<synchronous>, transform_indices = @transform_2, window_bounds = array<i64: 64, 128>}, {pipeline_mode = #tpu.pipeline_mode<synchronous>, transform_indices = @transform_3, window_bounds = array<i64: 8, 128>}, {transform_indices = @transform_4, window_bounds = array<i64: 128, 128>}, {transform_indices = @transform_5, window_bounds = array<i64: 128, 1>}]} {
    %c0 = arith.constant 0 : index
    %c0_0 = arith.constant 0 : index
    %0 = vector.load %arg2[%c0, %c0_0] : memref<128x32xf32, #tpu.memory_space<vmem>>, vector<128x32xf32>
    %1 = arith.truncf %0 : vector<128x32xf32> to vector<128x32xbf16>
    %c0_1 = arith.constant 0 : index
    %c0_2 = arith.constant 0 : index
    %c0_3 = arith.constant 0 : index
    %2 = vector.load %arg1[%c0_1, %c0_2, %c0_3] : memref<1x128x128xbf16, #tpu.memory_space<vmem>>, vector<1x128x128xbf16>
    %3 = vector.shape_cast %2 : vector<1x128x128xbf16> to vector<128x128xbf16>
    %cst = arith.constant dense<0.000000e+00> : vector<128x32xf32>
    %4 = tpu.matmul %3, %1, %cst {dimension_numbers = #tpu.dot_dimension_numbers<[1], [0], [0], [1], [0, 0, 1, 1], [], []>} : vector<128x128xbf16>, vector<128x32xbf16>, vector<128x32xf32> -> vector<128x32xf32>
    %5 = arith.truncf %4 : vector<128x32xf32> to vector<128x32xbf16>
    %c0_4 = arith.constant 0 : index
    %c0_5 = arith.constant 0 : index
    %6 = vector.load %arg3[%c0_4, %c0_5] : memref<64x128xbf16, #tpu.memory_space<vmem>>, vector<32x128xbf16>
    %cst_6 = arith.constant dense<0.000000e+00> : vector<128x128xf32>
    %7 = tpu.matmul %5, %6, %cst_6 {dimension_numbers = #tpu.dot_dimension_numbers<[1], [0], [0], [1], [0, 0, 1, 1], [], []>} : vector<128x32xbf16>, vector<32x128xbf16>, vector<128x128xf32> -> vector<128x128xf32>
    %c32 = arith.constant 32 : index
    %c0_7 = arith.constant 0 : index
    %8 = vector.load %arg3[%c32, %c0_7] : memref<64x128xbf16, #tpu.memory_space<vmem>>, vector<32x128xbf16>
    %cst_8 = arith.constant dense<0.000000e+00> : vector<128x128xf32>
    %9 = tpu.matmul %1, %8, %cst_8 {dimension_numbers = #tpu.dot_dimension_numbers<[1], [0], [0], [1], [0, 0, 1, 1], [], []>} : vector<128x32xbf16>, vector<32x128xbf16>, vector<128x128xf32> -> vector<128x128xf32>
    %10 = arith.addf %7, %9 : vector<128x128xf32>
    %c0_9 = arith.constant 0 : index
    %c0_10 = arith.constant 0 : index
    %11 = vector.load %arg4[%c0_9, %c0_10] : memref<8x128xf32, #tpu.memory_space<vmem>>, vector<1x128xf32>
    %12 = vector.broadcast %11 : vector<1x128xf32> to vector<128x128xf32>
    %13 = arith.addf %10, %12 : vector<128x128xf32>
    %cst_11 = arith.constant 0.000000e+00 : f32
    %14 = vector.broadcast %cst_11 : f32 to vector<128x128xf32>
    %15 = arith.maximumf %13, %14 : vector<128x128xf32>
    %c1 = arith.constant 1 : index
    %c0_12 = arith.constant 0 : index
    %16 = vector.load %arg4[%c1, %c0_12] : memref<8x128xf32, #tpu.memory_space<vmem>>, vector<1x128xf32>
    %17 = vector.broadcast %16 : vector<1x128xf32> to vector<128x128xf32>
    %18 = arith.mulf %15, %17 : vector<128x128xf32>
    %c2 = arith.constant 2 : index
    %c0_13 = arith.constant 0 : index
    %19 = vector.load %arg4[%c2, %c0_13] : memref<8x128xf32, #tpu.memory_space<vmem>>, vector<1x128xf32>
    %20 = vector.broadcast %19 : vector<1x128xf32> to vector<128x128xf32>
    %21 = arith.addf %18, %20 : vector<128x128xf32>
    %22 = arith.truncf %21 : vector<128x128xf32> to vector<128x128xbf16>
    %c0_14 = arith.constant 0 : index
    %c0_15 = arith.constant 0 : index
    %23 = vector.load %arg5[%c0_14, %c0_15] : memref<128x128xbf16, #tpu.memory_space<vmem>>, vector<128x128xbf16>
    tpu.vector_store %arg5[%c0_14, %c0_15], %22 {strides = array<i32>} : memref<128x128xbf16, #tpu.memory_space<vmem>>, vector<128x128xbf16>,
    %c3 = arith.constant 3 : index
    %c0_16 = arith.constant 0 : index
    %24 = vector.load %arg4[%c3, %c0_16] : memref<8x128xf32, #tpu.memory_space<vmem>>, vector<1x128xf32>
    %25 = vector.broadcast %24 : vector<1x128xf32> to vector<128x128xf32>
    %26 = arith.mulf %21, %25 : vector<128x128xf32>
    %cst_17 = arith.constant dense<0.000000e+00> : vector<128xf32>
    %27 = vector.multi_reduction <add>, %26, %cst_17 [1] : vector<128x128xf32> to vector<128xf32>
    %28 = vector.shape_cast %27 : vector<128xf32> to vector<128x1xf32>
    %29 = math.tanh %28 : vector<128x1xf32>
    %c0_18 = arith.constant 0 : index
    %c0_19 = arith.constant 0 : index
    %30 = vector.load %arg6[%c0_18, %c0_19] : memref<128x1xf32, #tpu.memory_space<vmem>>, vector<128x1xf32>
    tpu.vector_store %arg6[%c0_18, %c0_19], %29 {strides = array<i32>} : memref<128x1xf32, #tpu.memory_space<vmem>>, vector<128x1xf32>,
    return
  }
  func.func @transform_0(%arg0: i32) -> (i32, i32, i32) {
    %c0_i32 = arith.constant 0 : i32
    %c0_i32_0 = arith.constant 0 : i32
    %c0_i32_1 = arith.constant 0 : i32
    return %arg0, %c0_i32, %c0_i32_0 : i32, i32, i32
  }
  func.func @transform_1(%arg0: i32) -> (i32, i32) {
    %c0_i32 = arith.constant 0 : i32
    %c0_i32_0 = arith.constant 0 : i32
    return %arg0, %c0_i32 : i32, i32
  }
  func.func @transform_2(%arg0: i32) -> (i32, i32) {
    %c0_i32 = arith.constant 0 : i32
    %c0_i32_0 = arith.constant 0 : i32
    %c0_i32_1 = arith.constant 0 : i32
    return %c0_i32, %c0_i32_0 : i32, i32
  }
  func.func @transform_3(%arg0: i32) -> (i32, i32) {
    %c0_i32 = arith.constant 0 : i32
    %c0_i32_0 = arith.constant 0 : i32
    %c0_i32_1 = arith.constant 0 : i32
    return %c0_i32, %c0_i32_0 : i32, i32
  }
  func.func @transform_4(%arg0: i32) -> (i32, i32) {
    %c0_i32 = arith.constant 0 : i32
    %c0_i32_0 = arith.constant 0 : i32
    return %arg0, %c0_i32 : i32, i32
  }
  func.func @transform_5(%arg0: i32) -> (i32, i32) {
    %c0_i32 = arith.constant 0 : i32
    %c0_i32_0 = arith.constant 0 : i32
    return %arg0, %c0_i32 : i32, i32
  }
}

module attributes {stable_mosaic.version = 11 : i64} {
  func.func @kernel(%arg0: i32, %arg1: memref<2xf32, #tpu.memory_space<smem>>, %arg2: memref<1x128x128xbf16, #tpu.memory_space<vmem>>, %arg3: memref<128x128xbf16, #tpu.memory_space<vmem>>, %arg4: memref<128x1xf32, #tpu.memory_space<vmem>>, %arg5: memref<1x1x256xf32, #tpu.memory_space<vmem>>, %arg6: memref<256x128xbf16, #tpu.memory_space<vmem>>, %arg7: memref<8x128xf32, #tpu.memory_space<vmem>>, %arg8: memref<128x128xbf16, #tpu.memory_space<vmem>>, %arg9: memref<128x1xf32, #tpu.memory_space<vmem>>, %arg10: memref<1x1x256xf32, #tpu.memory_space<vmem>>) attributes {dimension_semantics = [#tpu.dimension_semantics<parallel>], iteration_bounds = array<i64: 2>, scalar_prefetch = 1 : i64, scratch_operands = 0 : i64, tpu.core_type = #tpu.core_type<tc>, window_params = [{transform_indices = @transform_0, window_bounds = array<i64: 1, 128, 128>}, {transform_indices = @transform_1, window_bounds = array<i64: 128, 128>}, {transform_indices = @transform_2, window_bounds = array<i64: 128, 1>}, {transform_indices = @transform_3, window_bounds = array<i64: 1, 1, 256>}, {pipeline_mode = #tpu.pipeline_mode<synchronous>, transform_indices = @transform_4, window_bounds = array<i64: 256, 128>}, {pipeline_mode = #tpu.pipeline_mode<synchronous>, transform_indices = @transform_5, window_bounds = array<i64: 8, 128>}, {transform_indices = @transform_6, window_bounds = array<i64: 128, 128>}, {transform_indices = @transform_7, window_bounds = array<i64: 128, 1>}, {transform_indices = @transform_8, window_bounds = array<i64: 1, 1, 256>}]} {
    %0 = arith.index_cast %arg0 : i32 to index
    %1 = memref.load %arg1[%0] : memref<2xf32, #tpu.memory_space<smem>>
    %c0 = arith.constant 0 : index
    %c0_0 = arith.constant 0 : index
    %2 = vector.load %arg4[%c0, %c0_0] : memref<128x1xf32, #tpu.memory_space<vmem>>, vector<128x1xf32>
    %3 = vector.broadcast %1 : f32 to vector<128x1xf32>
    %4 = arith.cmpf oge, %2, %3 : vector<128x1xf32>
    %5 = arith.extui %4 : vector<128x1xi1> to vector<128x1xi32>
    %6 = arith.sitofp %5 : vector<128x1xi32> to vector<128x1xf32>
    %c0_1 = arith.constant 0 : index
    %c0_2 = arith.constant 0 : index
    %7 = vector.load %arg3[%c0_1, %c0_2] : memref<128x128xbf16, #tpu.memory_space<vmem>>, vector<128x128xbf16>
    %8 = arith.extf %7 : vector<128x128xbf16> to vector<128x128xf32>
    %9 = arith.mulf %6, %2 : vector<128x1xf32>
    %10 = vector.broadcast %9 : vector<128x1xf32> to vector<128x128xf32>
    %11 = arith.mulf %8, %10 : vector<128x128xf32>
    %cst = arith.constant 0.000000e+00 : f32
    %12 = vector.broadcast %cst : f32 to vector<128x1xf32>
    %13 = arith.cmpf ogt, %6, %12 : vector<128x1xf32>
    %cst_3 = arith.constant -1.000000e+30 : f32
    %14 = vector.shape_cast %13 : vector<128x1xi1> to vector<128x1xi1>
    %15 = vector.broadcast %14 : vector<128x1xi1> to vector<128x128xi1>
    %16 = vector.broadcast %cst_3 : f32 to vector<128x128xf32>
    %17 = arith.select %15, %11, %16 : vector<128x128xi1>, vector<128x128xf32>
    %cst_4 = arith.constant dense<0xFF800000> : vector<128xf32>
    %18 = vector.multi_reduction <maximumf>, %17, %cst_4 [0] : vector<128x128xf32> to vector<128xf32>
    %19 = vector.shape_cast %18 : vector<128xf32> to vector<1x128xf32>
    %20 = vector.shape_cast %6 : vector<128x1xf32> to vector<1x128x1xf32>
    %cst_5 = arith.constant dense<0.000000e+00> : vector<1xf32>
    %21 = vector.multi_reduction <add>, %20, %cst_5 [1, 2] : vector<1x128x1xf32> to vector<1xf32>
    %22 = vector.shape_cast %21 : vector<1xf32> to vector<1x1x1xf32>
    %23 = vector.extract %22[0, 0, 0] : f32 from vector<1x1x1xf32>
    %cst_6 = arith.constant 1.000000e+00 : f32
    %24 = arith.maximumf %23, %cst_6 : f32
    %cst_7 = arith.constant dense<0.000000e+00> : vector<128xf32>
    %25 = vector.multi_reduction <add>, %11, %cst_7 [0] : vector<128x128xf32> to vector<128xf32>
    %26 = vector.shape_cast %25 : vector<128xf32> to vector<1x128xf32>
    %27 = vector.broadcast %24 : f32 to vector<1x128xf32>
    %28 = arith.divf %26, %27 : vector<1x128xf32>
    %c0_8 = arith.constant 0 : index
    %c0_9 = arith.constant 0 : index
    %c0_10 = arith.constant 0 : index
    %29 = vector.load %arg5[%c0_8, %c0_9, %c0_10] : memref<1x1x256xf32, #tpu.memory_space<vmem>>, vector<1x1x256xf32>
    %30 = vector.shape_cast %29 : vector<1x1x256xf32> to vector<1x256xf32>
    %31 = tpu.concatenate %19, %28 in 1 : vector<1x128xf32>, vector<1x128xf32> -> vector<1x256xf32>
    %32 = arith.addf %30, %31 : vector<1x256xf32>
    %c0_11 = arith.constant 0 : index
    %c0_12 = arith.constant 0 : index
    %c0_13 = arith.constant 0 : index
    %33 = vector.load %arg10[%c0_11, %c0_12, %c0_13] : memref<1x1x256xf32, #tpu.memory_space<vmem>>, vector<1x1x256xf32>
    %34 = vector.shape_cast %33 : vector<1x1x256xf32> to vector<1x256xf32>
    %35 = vector.shape_cast %32 : vector<1x256xf32> to vector<1x1x256xf32>
    tpu.vector_store %arg10[%c0_11, %c0_12, %c0_13], %35 {strides = array<i32>} : memref<1x1x256xf32, #tpu.memory_space<vmem>>, vector<1x1x256xf32>,
    %c0_14 = arith.constant 0 : index
    %c0_15 = arith.constant 0 : index
    %c0_16 = arith.constant 0 : index
    %36 = vector.load %arg2[%c0_14, %c0_15, %c0_16] : memref<1x128x128xbf16, #tpu.memory_space<vmem>>, vector<1x128x128xbf16>
    %37 = vector.shape_cast %36 : vector<1x128x128xbf16> to vector<128x128xbf16>
    %38 = arith.truncf %11 : vector<128x128xf32> to vector<128x128xbf16>
    %cst_17 = arith.constant dense<0.000000e+00> : vector<128x128xf32>
    %39 = tpu.matmul %37, %38, %cst_17 {dimension_numbers = #tpu.dot_dimension_numbers<[1], [0], [0], [1], [0, 0, 1, 1], [], []>} : vector<128x128xbf16>, vector<128x128xbf16>, vector<128x128xf32> -> vector<128x128xf32>
    %40 = arith.truncf %39 : vector<128x128xf32> to vector<128x128xbf16>
    %c0_18 = arith.constant 0 : index
    %c0_19 = arith.constant 0 : index
    %41 = vector.load %arg6[%c0_18, %c0_19] : memref<256x128xbf16, #tpu.memory_space<vmem>>, vector<128x128xbf16>
    %cst_20 = arith.constant dense<0.000000e+00> : vector<128x128xf32>
    %42 = tpu.matmul %40, %41, %cst_20 {dimension_numbers = #tpu.dot_dimension_numbers<[1], [0], [0], [1], [0, 0, 1, 1], [], []>} : vector<128x128xbf16>, vector<128x128xbf16>, vector<128x128xf32> -> vector<128x128xf32>
    %c128 = arith.constant 128 : index
    %c0_21 = arith.constant 0 : index
    %43 = vector.load %arg6[%c128, %c0_21] : memref<256x128xbf16, #tpu.memory_space<vmem>>, vector<128x128xbf16>
    %cst_22 = arith.constant dense<0.000000e+00> : vector<128x128xf32>
    %44 = tpu.matmul %38, %43, %cst_22 {dimension_numbers = #tpu.dot_dimension_numbers<[1], [0], [0], [1], [0, 0, 1, 1], [], []>} : vector<128x128xbf16>, vector<128x128xbf16>, vector<128x128xf32> -> vector<128x128xf32>
    %45 = arith.addf %42, %44 : vector<128x128xf32>
    %c0_23 = arith.constant 0 : index
    %c0_24 = arith.constant 0 : index
    %46 = vector.load %arg7[%c0_23, %c0_24] : memref<8x128xf32, #tpu.memory_space<vmem>>, vector<1x128xf32>
    %47 = vector.broadcast %46 : vector<1x128xf32> to vector<128x128xf32>
    %48 = arith.addf %45, %47 : vector<128x128xf32>
    %cst_25 = arith.constant 0.000000e+00 : f32
    %49 = vector.broadcast %cst_25 : f32 to vector<128x128xf32>
    %50 = arith.maximumf %48, %49 : vector<128x128xf32>
    %c1 = arith.constant 1 : index
    %c0_26 = arith.constant 0 : index
    %51 = vector.load %arg7[%c1, %c0_26] : memref<8x128xf32, #tpu.memory_space<vmem>>, vector<1x128xf32>
    %52 = vector.broadcast %51 : vector<1x128xf32> to vector<128x128xf32>
    %53 = arith.mulf %50, %52 : vector<128x128xf32>
    %c2 = arith.constant 2 : index
    %c0_27 = arith.constant 0 : index
    %54 = vector.load %arg7[%c2, %c0_27] : memref<8x128xf32, #tpu.memory_space<vmem>>, vector<1x128xf32>
    %55 = vector.broadcast %54 : vector<1x128xf32> to vector<128x128xf32>
    %56 = arith.addf %53, %55 : vector<128x128xf32>
    %57 = arith.truncf %56 : vector<128x128xf32> to vector<128x128xbf16>
    %c0_28 = arith.constant 0 : index
    %c0_29 = arith.constant 0 : index
    %58 = vector.load %arg8[%c0_28, %c0_29] : memref<128x128xbf16, #tpu.memory_space<vmem>>, vector<128x128xbf16>
    tpu.vector_store %arg8[%c0_28, %c0_29], %57 {strides = array<i32>} : memref<128x128xbf16, #tpu.memory_space<vmem>>, vector<128x128xbf16>,
    %c3 = arith.constant 3 : index
    %c0_30 = arith.constant 0 : index
    %59 = vector.load %arg7[%c3, %c0_30] : memref<8x128xf32, #tpu.memory_space<vmem>>, vector<1x128xf32>
    %60 = vector.broadcast %59 : vector<1x128xf32> to vector<128x128xf32>
    %61 = arith.mulf %56, %60 : vector<128x128xf32>
    %cst_31 = arith.constant dense<0.000000e+00> : vector<128xf32>
    %62 = vector.multi_reduction <add>, %61, %cst_31 [1] : vector<128x128xf32> to vector<128xf32>
    %63 = vector.shape_cast %62 : vector<128xf32> to vector<128x1xf32>
    %64 = math.tanh %63 : vector<128x1xf32>
    %cst_32 = arith.constant 0.000000e+00 : f32
    %65 = vector.broadcast %cst_32 : f32 to vector<128x1xf32>
    %66 = arith.cmpf ogt, %6, %65 : vector<128x1xf32>
    %cst_33 = arith.constant -2.000000e+00 : f32
    %67 = vector.broadcast %cst_33 : f32 to vector<128x1xf32>
    %68 = arith.select %66, %64, %67 : vector<128x1xi1>, vector<128x1xf32>
    %c0_34 = arith.constant 0 : index
    %c0_35 = arith.constant 0 : index
    %69 = vector.load %arg9[%c0_34, %c0_35] : memref<128x1xf32, #tpu.memory_space<vmem>>, vector<128x1xf32>
    tpu.vector_store %arg9[%c0_34, %c0_35], %68 {strides = array<i32>} : memref<128x1xf32, #tpu.memory_space<vmem>>, vector<128x1xf32>,
    return
  }
  func.func @transform_0(%arg0: i32, %arg1: memref<2xf32, #tpu.memory_space<smem>>) -> (i32, i32, i32) {
    %c0_i32 = arith.constant 0 : i32
    %c0_i32_0 = arith.constant 0 : i32
    %c0_i32_1 = arith.constant 0 : i32
    return %arg0, %c0_i32, %c0_i32_0 : i32, i32, i32
  }
  func.func @transform_1(%arg0: i32, %arg1: memref<2xf32, #tpu.memory_space<smem>>) -> (i32, i32) {
    %c0_i32 = arith.constant 0 : i32
    %c0_i32_0 = arith.constant 0 : i32
    return %arg0, %c0_i32 : i32, i32
  }
  func.func @transform_2(%arg0: i32, %arg1: memref<2xf32, #tpu.memory_space<smem>>) -> (i32, i32) {
    %c0_i32 = arith.constant 0 : i32
    %c0_i32_0 = arith.constant 0 : i32
    return %arg0, %c0_i32 : i32, i32
  }
  func.func @transform_3(%arg0: i32, %arg1: memref<2xf32, #tpu.memory_space<smem>>) -> (i32, i32, i32) {
    %c0_i32 = arith.constant 0 : i32
    %c0_i32_0 = arith.constant 0 : i32
    %c0_i32_1 = arith.constant 0 : i32
    return %arg0, %c0_i32, %c0_i32_0 : i32, i32, i32
  }
  func.func @transform_4(%arg0: i32, %arg1: memref<2xf32, #tpu.memory_space<smem>>) -> (i32, i32) {
    %c0_i32 = arith.constant 0 : i32
    %c0_i32_0 = arith.constant 0 : i32
    %c0_i32_1 = arith.constant 0 : i32
    return %c0_i32, %c0_i32_0 : i32, i32
  }
  func.func @transform_5(%arg0: i32, %arg1: memref<2xf32, #tpu.memory_space<smem>>) -> (i32, i32) {
    %c0_i32 = arith.constant 0 : i32
    %c0_i32_0 = arith.constant 0 : i32
    %c0_i32_1 = arith.constant 0 : i32
    return %c0_i32, %c0_i32_0 : i32, i32
  }
  func.func @transform_6(%arg0: i32, %arg1: memref<2xf32, #tpu.memory_space<smem>>) -> (i32, i32) {
    %c0_i32 = arith.constant 0 : i32
    %c0_i32_0 = arith.constant 0 : i32
    return %arg0, %c0_i32 : i32, i32
  }
  func.func @transform_7(%arg0: i32, %arg1: memref<2xf32, #tpu.memory_space<smem>>) -> (i32, i32) {
    %c0_i32 = arith.constant 0 : i32
    %c0_i32_0 = arith.constant 0 : i32
    return %arg0, %c0_i32 : i32, i32
  }
  func.func @transform_8(%arg0: i32, %arg1: memref<2xf32, #tpu.memory_space<smem>>) -> (i32, i32, i32) {
    %c0_i32 = arith.constant 0 : i32
    %c0_i32_0 = arith.constant 0 : i32
    %c0_i32_1 = arith.constant 0 : i32
    return %arg0, %c0_i32, %c0_i32_0 : i32, i32, i32
  }
}

module attributes {stable_mosaic.version = 11 : i64} {
  func.func @_head_kernel(%arg0: i32, %arg1: memref<2x128x128xbf16, #tpu.memory_space<vmem>>, %arg2: memref<2x128x1xf32, #tpu.memory_space<vmem>>, %arg3: memref<2x1x1xf32, #tpu.memory_space<vmem>>, %arg4: memref<2x256xf32, #tpu.memory_space<vmem>>, %arg5: memref<256x128xbf16, #tpu.memory_space<vmem>>, %arg6: memref<1x128xf32, #tpu.memory_space<vmem>>, %arg7: memref<128x64xbf16, #tpu.memory_space<vmem>>, %arg8: memref<1x64xf32, #tpu.memory_space<vmem>>, %arg9: memref<64x6xbf16, #tpu.memory_space<vmem>>, %arg10: memref<1x6xf32, #tpu.memory_space<vmem>>, %arg11: memref<2x6xf32, #tpu.memory_space<vmem>>) attributes {dimension_semantics = [#tpu.dimension_semantics<parallel>], iteration_bounds = array<i64: 1>, scalar_prefetch = 0 : i64, scratch_operands = 0 : i64, tpu.core_type = #tpu.core_type<tc>, window_params = [{transform_indices = @transform_0, window_bounds = array<i64: 2, 128, 128>}, {transform_indices = @transform_1, window_bounds = array<i64: 2, 128, 1>}, {transform_indices = @transform_2, window_bounds = array<i64: 2, 1, 1>}, {transform_indices = @transform_3, window_bounds = array<i64: 2, 256>}, {pipeline_mode = #tpu.pipeline_mode<synchronous>, transform_indices = @transform_4, window_bounds = array<i64: 256, 128>}, {pipeline_mode = #tpu.pipeline_mode<synchronous>, transform_indices = @transform_5, window_bounds = array<i64: 1, 128>}, {pipeline_mode = #tpu.pipeline_mode<synchronous>, transform_indices = @transform_6, window_bounds = array<i64: 128, 64>}, {pipeline_mode = #tpu.pipeline_mode<synchronous>, transform_indices = @transform_7, window_bounds = array<i64: 1, 64>}, {pipeline_mode = #tpu.pipeline_mode<synchronous>, transform_indices = @transform_8, window_bounds = array<i64: 64, 6>}, {pipeline_mode = #tpu.pipeline_mode<synchronous>, transform_indices = @transform_9, window_bounds = array<i64: 1, 6>}, {transform_indices = @transform_10, window_bounds = array<i64: 2, 6>}]} {
    %c0 = arith.constant 0 : index
    %c0_0 = arith.constant 0 : index
    %c0_1 = arith.constant 0 : index
    %0 = vector.load %arg2[%c0, %c0_0, %c0_1] : memref<2x128x1xf32, #tpu.memory_space<vmem>>, vector<2x128x1xf32>
    %c0_2 = arith.constant 0 : index
    %c0_3 = arith.constant 0 : index
    %c0_4 = arith.constant 0 : index
    %1 = vector.load %arg3[%c0_2, %c0_3, %c0_4] : memref<2x1x1xf32, #tpu.memory_space<vmem>>, vector<2x1x1xf32>
    %2 = vector.broadcast %1 : vector<2x1x1xf32> to vector<2x128x1xf32>
    %3 = arith.cmpf oge, %0, %2 : vector<2x128x1xf32>
    %4 = arith.extui %3 : vector<2x128x1xi1> to vector<2x128x1xi32>
    %5 = arith.sitofp %4 : vector<2x128x1xi32> to vector<2x128x1xf32>
    %c0_5 = arith.constant 0 : index
    %c0_6 = arith.constant 0 : index
    %c0_7 = arith.constant 0 : index
    %6 = vector.load %arg1[%c0_5, %c0_6, %c0_7] : memref<2x128x128xbf16, #tpu.memory_space<vmem>>, vector<2x128x128xbf16>
    %7 = arith.extf %6 : vector<2x128x128xbf16> to vector<2x128x128xf32>
    %8 = arith.mulf %5, %0 : vector<2x128x1xf32>
    %9 = vector.broadcast %8 : vector<2x128x1xf32> to vector<2x128x128xf32>
    %10 = arith.mulf %7, %9 : vector<2x128x128xf32>
    %cst = arith.constant 0.000000e+00 : f32
    %11 = vector.broadcast %cst : f32 to vector<2x128x1xf32>
    %12 = arith.cmpf ogt, %5, %11 : vector<2x128x1xf32>
    %cst_8 = arith.constant -1.000000e+30 : f32
    %13 = vector.shape_cast %12 : vector<2x128x1xi1> to vector<2x128x1xi1>
    %14 = vector.broadcast %13 : vector<2x128x1xi1> to vector<2x128x128xi1>
    %15 = vector.broadcast %cst_8 : f32 to vector<2x128x128xf32>
    %16 = arith.select %14, %10, %15 : vector<2x128x128xi1>, vector<2x128x128xf32>
    %cst_9 = arith.constant dense<0xFF800000> : vector<2x128xf32>
    %17 = vector.multi_reduction <maximumf>, %16, %cst_9 [1] : vector<2x128x128xf32> to vector<2x128xf32>
    %cst_10 = arith.constant dense<0.000000e+00> : vector<2x1xf32>
    %18 = vector.multi_reduction <add>, %5, %cst_10 [1] : vector<2x128x1xf32> to vector<2x1xf32>
    %cst_11 = arith.constant 1.000000e+00 : f32
    %19 = vector.broadcast %cst_11 : f32 to vector<2x1xf32>
    %20 = arith.maximumf %18, %19 : vector<2x1xf32>
    %cst_12 = arith.constant dense<0.000000e+00> : vector<2x128xf32>
    %21 = vector.multi_reduction <add>, %10, %cst_12 [1] : vector<2x128x128xf32> to vector<2x128xf32>
    %22 = vector.broadcast %20 : vector<2x1xf32> to vector<2x128xf32>
    %23 = arith.divf %21, %22 : vector<2x128xf32>
    %c0_13 = arith.constant 0 : index
    %c0_14 = arith.constant 0 : index
    %24 = vector.load %arg4[%c0_13, %c0_14] : memref<2x256xf32, #tpu.memory_space<vmem>>, vector<2x256xf32>
    %25 = tpu.concatenate %17, %23 in 1 : vector<2x128xf32>, vector<2x128xf32> -> vector<2x256xf32>
    %26 = arith.addf %24, %25 : vector<2x256xf32>
    %27 = arith.truncf %26 : vector<2x256xf32> to vector<2x256xbf16>
    %c0_15 = arith.constant 0 : index
    %c0_16 = arith.constant 0 : index
    %28 = vector.load %arg5[%c0_15, %c0_16] : memref<256x128xbf16, #tpu.memory_space<vmem>>, vector<256x128xbf16>
    %cst_17 = arith.constant dense<0.000000e+00> : vector<2x128xf32>
    %29 = tpu.matmul %27, %28, %cst_17 {dimension_numbers = #tpu.dot_dimension_numbers<[1], [0], [0], [1], [0, 0, 1, 1], [], []>} : vector<2x256xbf16>, vector<256x128xbf16>, vector<2x128xf32> -> vector<2x128xf32>
    %c0_18 = arith.constant 0 : index
    %c0_19 = arith.constant 0 : index
    %30 = vector.load %arg6[%c0_18, %c0_19] : memref<1x128xf32, #tpu.memory_space<vmem>>, vector<1x128xf32>
    %31 = vector.broadcast %30 : vector<1x128xf32> to vector<2x128xf32>
    %32 = arith.addf %29, %31 : vector<2x128xf32>
    %cst_20 = arith.constant 0.000000e+00 : f32
    %33 = vector.broadcast %cst_20 : f32 to vector<2x128xf32>
    %34 = arith.maximumf %32, %33 : vector<2x128xf32>
    %35 = arith.truncf %34 : vector<2x128xf32> to vector<2x128xbf16>
    %c0_21 = arith.constant 0 : index
    %c0_22 = arith.constant 0 : index
    %36 = vector.load %arg7[%c0_21, %c0_22] : memref<128x64xbf16, #tpu.memory_space<vmem>>, vector<128x64xbf16>
    %cst_23 = arith.constant dense<0.000000e+00> : vector<2x64xf32>
    %37 = tpu.matmul %35, %36, %cst_23 {dimension_numbers = #tpu.dot_dimension_numbers<[1], [0], [0], [1], [0, 0, 1, 1], [], []>} : vector<2x128xbf16>, vector<128x64xbf16>, vector<2x64xf32> -> vector<2x64xf32>
    %c0_24 = arith.constant 0 : index
    %c0_25 = arith.constant 0 : index
    %38 = vector.load %arg8[%c0_24, %c0_25] : memref<1x64xf32, #tpu.memory_space<vmem>>, vector<1x64xf32>
    %39 = vector.broadcast %38 : vector<1x64xf32> to vector<2x64xf32>
    %40 = arith.addf %37, %39 : vector<2x64xf32>
    %cst_26 = arith.constant 0.000000e+00 : f32
    %41 = vector.broadcast %cst_26 : f32 to vector<2x64xf32>
    %42 = arith.maximumf %40, %41 : vector<2x64xf32>
    %43 = arith.truncf %42 : vector<2x64xf32> to vector<2x64xbf16>
    %c0_27 = arith.constant 0 : index
    %c0_28 = arith.constant 0 : index
    %44 = vector.load %arg9[%c0_27, %c0_28] : memref<64x6xbf16, #tpu.memory_space<vmem>>, vector<64x6xbf16>
    %cst_29 = arith.constant dense<0.000000e+00> : vector<2x6xf32>
    %45 = tpu.matmul %43, %44, %cst_29 {dimension_numbers = #tpu.dot_dimension_numbers<[1], [0], [0], [1], [0, 0, 1, 1], [], []>} : vector<2x64xbf16>, vector<64x6xbf16>, vector<2x6xf32> -> vector<2x6xf32>
    %c0_30 = arith.constant 0 : index
    %c0_31 = arith.constant 0 : index
    %46 = vector.load %arg10[%c0_30, %c0_31] : memref<1x6xf32, #tpu.memory_space<vmem>>, vector<1x6xf32>
    %47 = vector.broadcast %46 : vector<1x6xf32> to vector<2x6xf32>
    %48 = arith.addf %45, %47 : vector<2x6xf32>
    %cst_32 = arith.constant dense<0xFF800000> : vector<2xf32>
    %49 = vector.multi_reduction <maximumf>, %48, %cst_32 [1] : vector<2x6xf32> to vector<2xf32>
    %50 = vector.shape_cast %49 : vector<2xf32> to vector<2x1xf32>
    %51 = vector.broadcast %50 : vector<2x1xf32> to vector<2x6xf32>
    %52 = arith.subf %48, %51 : vector<2x6xf32>
    %53 = math.exp %52 : vector<2x6xf32>
    %cst_33 = arith.constant dense<0.000000e+00> : vector<2xf32>
    %54 = vector.multi_reduction <add>, %53, %cst_33 [1] : vector<2x6xf32> to vector<2xf32>
    %55 = vector.shape_cast %54 : vector<2xf32> to vector<2x1xf32>
    %56 = math.log %55 : vector<2x1xf32>
    %57 = vector.broadcast %56 : vector<2x1xf32> to vector<2x6xf32>
    %58 = arith.subf %52, %57 : vector<2x6xf32>
    %c0_34 = arith.constant 0 : index
    %c0_35 = arith.constant 0 : index
    %59 = vector.load %arg11[%c0_34, %c0_35] : memref<2x6xf32, #tpu.memory_space<vmem>>, vector<2x6xf32>
    tpu.vector_store %arg11[%c0_34, %c0_35], %58 {strides = array<i32>} : memref<2x6xf32, #tpu.memory_space<vmem>>, vector<2x6xf32>,
    return
  }
  func.func @transform_0(%arg0: i32) -> (i32, i32, i32) {
    %c0_i32 = arith.constant 0 : i32
    %c0_i32_0 = arith.constant 0 : i32
    %c0_i32_1 = arith.constant 0 : i32
    return %arg0, %c0_i32, %c0_i32_0 : i32, i32, i32
  }
  func.func @transform_1(%arg0: i32) -> (i32, i32, i32) {
    %c0_i32 = arith.constant 0 : i32
    %c0_i32_0 = arith.constant 0 : i32
    %c0_i32_1 = arith.constant 0 : i32
    return %arg0, %c0_i32, %c0_i32_0 : i32, i32, i32
  }
  func.func @transform_2(%arg0: i32) -> (i32, i32, i32) {
    %c0_i32 = arith.constant 0 : i32
    %c0_i32_0 = arith.constant 0 : i32
    %c0_i32_1 = arith.constant 0 : i32
    return %arg0, %c0_i32, %c0_i32_0 : i32, i32, i32
  }
  func.func @transform_3(%arg0: i32) -> (i32, i32) {
    %c0_i32 = arith.constant 0 : i32
    %c0_i32_0 = arith.constant 0 : i32
    return %arg0, %c0_i32 : i32, i32
  }
  func.func @transform_4(%arg0: i32) -> (i32, i32) {
    %c0_i32 = arith.constant 0 : i32
    %c0_i32_0 = arith.constant 0 : i32
    %c0_i32_1 = arith.constant 0 : i32
    return %c0_i32, %c0_i32_0 : i32, i32
  }
  func.func @transform_5(%arg0: i32) -> (i32, i32) {
    %c0_i32 = arith.constant 0 : i32
    %c0_i32_0 = arith.constant 0 : i32
    %c0_i32_1 = arith.constant 0 : i32
    return %c0_i32, %c0_i32_0 : i32, i32
  }
  func.func @transform_6(%arg0: i32) -> (i32, i32) {
    %c0_i32 = arith.constant 0 : i32
    %c0_i32_0 = arith.constant 0 : i32
    %c0_i32_1 = arith.constant 0 : i32
    return %c0_i32, %c0_i32_0 : i32, i32
  }
  func.func @transform_7(%arg0: i32) -> (i32, i32) {
    %c0_i32 = arith.constant 0 : i32
    %c0_i32_0 = arith.constant 0 : i32
    %c0_i32_1 = arith.constant 0 : i32
    return %c0_i32, %c0_i32_0 : i32, i32
  }
  func.func @transform_8(%arg0: i32) -> (i32, i32) {
    %c0_i32 = arith.constant 0 : i32
    %c0_i32_0 = arith.constant 0 : i32
    %c0_i32_1 = arith.constant 0 : i32
    return %c0_i32, %c0_i32_0 : i32, i32
  }
  func.func @transform_9(%arg0: i32) -> (i32, i32) {
    %c0_i32 = arith.constant 0 : i32
    %c0_i32_0 = arith.constant 0 : i32
    %c0_i32_1 = arith.constant 0 : i32
    return %c0_i32, %c0_i32_0 : i32, i32
  }
  func.func @transform_10(%arg0: i32) -> (i32, i32) {
    %c0_i32 = arith.constant 0 : i32
    %c0_i32_0 = arith.constant 0 : i32
    return %arg0, %c0_i32 : i32, i32
  }
}

</mosaic_0001>

<bundles_post_ra>
// kernel: gcn_forward.6
= control target key start
LH: loop header
LB: loop body
LE: loop exit
PB: predicated region body
PF: predicated region fallthrough
CT: control target
= control target key end

     0   :  { %s1403_s18 = smov 0   ;;  %s1639_s0 = inlined_call_operand.vmem [shape: bf16[2,128,128], index: 0, kind: input, shape index: {}]   ;;  %s1640_s1 = inlined_call_operand.vmem [shape: f32[256,32], index: 1, kind: input, shape index: {}]   ;;  %s1641_s2 = inlined_call_operand.vmem [shape: bf16[64,128], index: 2, kind: input, shape index: {}]   ;;  %s1642_s3 = inlined_call_operand.vmem [shape: f32[8,128], index: 3, kind: input, shape index: {}]   ;;  %s1643_s4 = inlined_call_operand.vmem [shape: bf16[256,128], index: 4, kind: output, shape index: {0}]   ;;  %s1644_s5 = inlined_call_operand.vmem [shape: f32[256,1], index: 5, kind: output, shape index: {1}]  }
   0x1 LB: > { %s1078_s19 = sadd.s32 4294967295, %s1371_s18   ;;  %p1082_p0 = scmp.ge.s32.totalorder %s1371_s18, 1  ;;  %s1371_s18 = sphi %s1403_s18, %s16_s18  }
   0x2   : > { %p201_p1 = scmp.lt.s32.totalorder %s1371_s18, 3 }
   0x4   : > { %p202_p2 = pnand %p1082_p0, %p201_p1 }
   0x5   : > { %s1085_s20 = sshll.u32 (!%p202_p2), %s1078_s19, 4  ;;  %p239_p3 = scmp.lt.s32.totalorder (!%p202_p2), %s1078_s19, 1 }
   0x6   : > { %205 = sbr.rel (%p202_p2) target bundleno = 643 (0x283), region = 36  ;;  %p245_p4 = scmp.lt.s32.totalorder (!%p202_p2), %s1085_s20, 31 }
   0xb   : > { %v1329_v0 = vld [vmem:[%s1641_s2 + $0x18] sm:$0xff]   ;;  %s1646_s19 = smov (!%p239_p3, %s1078_s19), 1  ;;  %v1330_v1 = vld [vmem:[%s1641_s2 + $0x10] sm:$0xff]   ;;  %s1648_s20 = smov (!%p245_p4, %s1085_s20), 31  ;;  %v1331_v2 = vld [vmem:[%s1641_s2 + $0x8] sm:$0xff]   ;;  %vm476_vm0 = vcmask 261120  }
   0xc   : > { %1273 = vmatprep.subr.bf16.mxu1 %v1329_v0  ;;  %s1141_s25 = sshll.u32 %s1646_s19, 6  ;;  %s1086_s26 = sshll.u32 %s1648_s20, 3  ;;  %v1332_v23 = vld [vmem:[%s1641_s2] sm:$0xff]   ;;  %vm959_vm1 = vcmask 7168  }
   0xd   : > { %1274 = vmatpush3.bf16.msra.mxu1 %v1329_v0  ;;  %s1423_s29 = scalar_lea.vmem %s1639_s0, %s1141_s25  ;;  %s1433_s9 = scalar_lea.vmem %s1640_s1, %s1086_s26 }
   0xe   : > { %1275 = vmatprep.subr.bf16.mxu1 %v1330_v1  ;;  %v1321_v3 = vld [vmem:[%s1423_s29] sm:$0xff]   ;;  %v277_v4 = vld [vmem:[%s1433_s9 + $0x70] sm:$0xff]  ;;  %v278_v5 = vld [vmem:[%s1433_s9 + $0x78] sm:$0xff]  ;;  %s1088_s22 = sshll.u32 %s1648_s20, 2 }
   0xf   : > { %v275_v6 = vld [vmem:[%s1433_s9 + $0x60] sm:$0xff]  ;;  %v286_v7 = vpack.c.bf16 %v278_v5, %v277_v4  ;;  %v276_v8 = vld [vmem:[%s1433_s9 + $0x68] sm:$0xff]  ;;  %1257 = vmatprep.mubr.bf16.mxu0 %v1321_v3  ;;  %v273_v10 = vld [vmem:[%s1433_s9 + $0x50] sm:$0xff]  ;;  %s1533_s25 = scalar_lea.vmem %s1643_s4, %s1088_s22 }
  0x10   : > { %v285_v9 = vpack.c.bf16 %v276_v8, %v275_v6  ;;  %v274_v11 = vld [vmem:[%s1433_s9 + $0x58] sm:$0xff]  ;;  %v267_v12 = vld [vmem:[%s1433_s9 + $0x20] sm:$0xff]  ;;  %v268_v13 = vld [vmem:[%s1433_s9 + $0x28] sm:$0xff] }
  0x11   : > { %1276 = vmatpush3.bf16.msra.mxu1 %v1330_v1  ;;  %1241 = vmatprep.subr.bf16.mxu0 %v286_v7  ;;  %v271_v14 = vld [vmem:[%s1433_s9 + $0x40] sm:$0xff]  ;;  %v265_v15 = vld [vmem:[%s1433_s9 + $0x10] sm:$0xff]  ;;  %v266_v16 = vld [vmem:[%s1433_s9 + $0x18] sm:$0xff]  ;;  %v284_v18 = vpack.c.bf16 %v274_v11, %v273_v10  ;;  %v281_v24 = vpack.c.bf16 %v268_v13, %v267_v12 }
  0x12   : > { %1293 = vmatprep.subr.bf16.mxu1 %v1331_v2  ;;  %1242 = vmatpush3.bf16.msra.mxu0 %v286_v7  ;;  %v263_v17 = vld [vmem:[%s1433_s9] sm:$0xff]  ;;  %v264_v19 = vld [vmem:[%s1433_s9 + $0x8] sm:$0xff]  ;;  %v280_v22 = vpack.c.bf16 %v266_v16, %v265_v15  ;;  %v269_v26 = vld [vmem:[%s1433_s9 + $0x30] sm:$0xff] }
  0x13   : > { %1243 = vmatprep.subr.bf16.mxu0 %v285_v9  ;;  %v272_v20 = vld [vmem:[%s1433_s9 + $0x48] sm:$0xff]  ;;  %v279_v21 = vpack.c.bf16 %v264_v19, %v263_v17  ;;  %v270_v27 = vld [vmem:[%s1433_s9 + $0x38] sm:$0xff]  ;;  %v1323_v30 = vld [vmem:[%s1423_s29 + $0x10] sm:$0xff]  }
  0x14   : > { %v283_v25 = vpack.c.bf16 %v272_v20, %v271_v14  ;;  %v282_v28 = vpack.c.bf16 %v270_v27, %v269_v26  ;;  %v1322_v29 = vld [vmem:[%s1423_s29 + $0x8] sm:$0xff]   ;;  %v1324_v31 = vld [vmem:[%s1423_s29 + $0x18] sm:$0xff]   ;;  %v1325_v32 = vld [vmem:[%s1423_s29 + $0x20] sm:$0xff]  }
  0x15   : > { %1277 = vmatprep.mubr.msk.bf16.mxu1 %vm476_vm0, %v279_v21  ;;  %v1326_v33 = vld [vmem:[%s1423_s29 + $0x28] sm:$0xff]   ;;  %v1327_v34 = vld [vmem:[%s1423_s29 + $0x30] sm:$0xff]   ;;  %v1328_v35 = vld [vmem:[%s1423_s29 + $0x38] sm:$0xff]   ;;  %s1602_s29 = scalar_lea.vmem %s1644_s5, %s1086_s26 }
  0x16   : > { %1244 = vmatpush3.bf16.msra.mxu0 %v285_v9  ;;  %1278 = vmatmul.mubr.msk.bf16.vlgmr.msra.gmra.mxu1 %vm476_vm0, %v280_v22  ;;  %v1495_v13 = vld [vmem:[%s1642_s3] ss:$0 sm:$0xff]  ;;  %v1501_v19 = vld [vmem:[%s1642_s3 + $0x1] ss:$0 sm:$0xff] }
  0x17   : > { %1245 = vmatprep.subr.bf16.mxu0 %v284_v18  ;;  %1294 = vmatpush3.bf16.msra.mxu1 %v1331_v2 }
  0x18   : > { %1281 = vmatprep.mubr.msk.bf16.mxu1 %vm476_vm0, %v281_v24  ;;  %1295 = vmatprep.subr.bf16.mxu1 %v1332_v23 }
  0x1a   : > { %1246 = vmatpush3.bf16.msra.mxu0 %v284_v18 }
  0x1b   : > { %1247 = vmatprep.subr.bf16.mxu0 %v283_v25  ;;  %1296 = vmatpush3.bf16.msra.mxu1 %v1332_v23 }
  0x1e   : > { %1248 = vmatpush3.bf16.msra.mxu0 %v283_v25  ;;  %1282 = vmatmul.mubr.msk.bf16.gmra.mxu1 %vm476_vm0, %v282_v28 }
  0x1f   : > { %1249 = vmatprep.subr.bf16.mxu0 %v282_v28  ;;  %1285 = vmatprep.mubr.msk.bf16.mxu1 %vm476_vm0, %v283_v25 }
  0x22   : > { %1250 = vmatpush3.bf16.msra.mxu0 %v282_v28 }
  0x23   : > { %1251 = vmatprep.subr.bf16.mxu0 %v281_v24 }
  0x26   : > { %1252 = vmatpush3.bf16.msra.mxu0 %v281_v24  ;;  %1286 = vmatmul.mubr.msk.bf16.gmra.mxu1 %vm476_vm0, %v284_v18  ;;  %v1507_v24 = vld [vmem:[%s1642_s3 + $0x2] ss:$0 sm:$0xff] }
  0x27   : > { %1253 = vmatprep.subr.bf16.mxu0 %v280_v22  ;;  %1289 = vmatprep.mubr.msk.bf16.mxu1 %vm476_vm0, %v285_v9 }
  0x2a   : > { %1254 = vmatpush3.bf16.msra.mxu0 %v280_v22 }
  0x2b   : > { %1255 = vmatprep.subr.bf16.mxu0 %v279_v21 }
  0x2e   : > { %1256 = vmatpush3.bf16.msra.mxu0 %v279_v21  ;;  %1290 = vmatmul.mubr.msk.bf16.gmra.mxu1 %vm476_vm0, %v286_v7 }
  0x31   : > { %1258 = vmatmul.mubr.bf16.vlgmr.msra.gmra.mxu0 %v1322_v29 }
  0x32   : > { %1261 = vmatprep.mubr.bf16.mxu0 %v1323_v30 }
  0x39   : > { %1262 = vmatmul.mubr.bf16.gmra.mxu0 %v1324_v31 }
  0x3a   : > { %1265 = vmatprep.mubr.bf16.mxu0 %v1325_v32 }
  0x41   : > { %1266 = vmatmul.mubr.bf16.gmra.mxu0 %v1326_v33 }
  0x42   : > { %1269 = vmatprep.mubr.bf16.mxu0 %v1327_v34  ;;  %v1516_v34 = vld [vmem:[%s1642_s3 + $0x3] ss:$0 sm:$0xff] }
  0x49   : > { %1270 = vmatmul.mubr.bf16.gmra.mxu0 %v1328_v35 }
  0xd6   : > { %v1279_v60 = vpop.f32.mrf.mxu1 }
  0xd8   : > { %v535_v61 = vpop.f32.mrf.mxu1 }
  0xda   : > { %v1280_v62 = vpop.f32.mrf.mxu1 }
  0xdc   : > { %v538_v63 = vpop.f32.mrf.mxu1 }
  0xde   : > { %v1283_v0 = vpop.f32.mrf.mxu1 }
  0xe0   : > { %v551_v1 = vpop.f32.mrf.mxu1 }
  0xe2   : > { %v1284_v2 = vpop.f32.mrf.mxu1 }
  0xe4   : > { %v554_v3 = vpop.f32.mrf.mxu1 }
  0xe6   : > { %v1287_v4 = vpop.f32.mrf.mxu1 }
  0xe8   : > { %v1478_v5 = vpop.f32.mrf.mxu1 }
  0xea   : > { %v1480_v6 = vpop.f32.mrf.mxu1 }
  0xec   : > { %v1482_v7 = vpop.f32.mrf.mxu1 }
  0xee   : > { %v1484_v8 = vpop.f32.mrf.mxu1 }
  0xf0   : > { %v1486_v9 = vpop.f32.mrf.mxu1 }
  0xf1   : > { %v1259_v36 = vpop.f32.mrf.mxu0 }
  0xf2   : > { %v1488_v10 = vpop.f32.mrf.mxu1 }
  0xf3   : > { %v385_v37 = vpop.f32.mrf.mxu0 }
  0xf4   : > { %v1490_v11 = vpop.f32.mrf.mxu1 }
  0xf5   : > { %v1260_v38 = vpop.f32.mrf.mxu0 }
  0xf6   : > { %v449_v41 = vpack.c.bf16 %v1260_v38, %v1259_v36 }
  0xf7   : > { %v388_v39 = vpop.f32.mrf.mxu0 }
  0xf8   : > { %v448_v40 = vpack.c.bf16 %v388_v39, %v385_v37 }
  0xf9   : > { %v1263_v42 = vpop.f32.mrf.mxu0 }
  0xfa   : > { %1297 = vmatprep.mubr.msk.bf16.mxu1 %vm476_vm0, %v448_v40 }
  0xfb   : > { %v401_v43 = vpop.f32.mrf.mxu0  ;;  %1298 = vmatmul.mubr.msk.bf16.vlgmr.msra.gmra.mxu1 %vm476_vm0, %v449_v41 }
  0xfd   : > { %v1264_v44 = vpop.f32.mrf.mxu0 }
  0xfe   : > { %v451_v47 = vpack.c.bf16 %v1264_v44, %v1263_v42 }
  0xff   : > { %v404_v45 = vpop.f32.mrf.mxu0 }
 0x100   : > { %v450_v46 = vpack.c.bf16 %v404_v45, %v401_v43 }
 0x101   : > { %v1267_v48 = vpop.f32.mrf.mxu0 }
 0x102   : > { %1301 = vmatprep.mubr.msk.bf16.mxu1 %vm476_vm0, %v450_v46 }
 0x103   : > { %v417_v49 = vpop.f32.mrf.mxu0  ;;  %1302 = vmatmul.mubr.msk.bf16.gmra.mxu1 %vm476_vm0, %v451_v47 }
 0x105   : > { %v1268_v50 = vpop.f32.mrf.mxu0 }
 0x106   : > { %v453_v53 = vpack.c.bf16 %v1268_v50, %v1267_v48 }
 0x107   : > { %v420_v51 = vpop.f32.mrf.mxu0 }
 0x108   : > { %v452_v52 = vpack.c.bf16 %v420_v51, %v417_v49 }
 0x109   : > { %v1271_v54 = vpop.f32.mrf.mxu0 }
 0x10a   : > { %1305 = vmatprep.mubr.msk.bf16.mxu1 %vm476_vm0, %v452_v52 }
 0x10b   : > { %v433_v55 = vpop.f32.mrf.mxu0  ;;  %1306 = vmatmul.mubr.msk.bf16.gmra.mxu1 %vm476_vm0, %v453_v53 }
 0x10d   : > { %v1272_v56 = vpop.f32.mrf.mxu0 }
 0x10e   : > { %v455_v59 = vpack.c.bf16 %v1272_v56, %v1271_v54 }
 0x10f   : > { %v436_v57 = vpop.f32.mrf.mxu0 }
 0x110   : > { %v454_v58 = vpack.c.bf16 %v436_v57, %v433_v55 }
 0x112   : > { %1309 = vmatprep.mubr.msk.bf16.mxu1 %vm476_vm0, %v454_v58 }
 0x113   : > { %1310 = vmatmul.mubr.msk.bf16.gmra.mxu1 %vm476_vm0, %v455_v59 }
 0x1bb   : > { %v1299_v12 = vpop.f32.mrf.mxu1 }
 0x1bc   : > { %v677_v14 = vadd.f32 %v1299_v12, %v1279_v60 }
 0x1bd   : > { %v668_v15 = vpop.f32.mrf.mxu1 }
 0x1be   : > { %v738_v16 = vadd.f32 %v1495_v13, %v677_v14  ;;  %v669_v17 = vadd.f32 %v668_v15, %v535_v61 }
 0x1bf   : > { %v1300_v18 = vpop.f32.mrf.mxu1 }
 0x1c0   : > { %v754_v20 = vmax.f32 %v738_v16, 0.0  ;;  %v736_v21 = vadd.f32 %v1495_v13, %v669_v17  ;;  %v680_v22 = vadd.f32 %v1300_v18, %v1280_v62 }
 0x1c1   : > { %v671_v23 = vpop.f32.mrf.mxu1 }
 0x1c2   : > { %v752_v25 = vmax.f32 %v736_v21, 0.0  ;;  %v739_v26 = vadd.f32 %v1495_v13, %v680_v22  ;;  %v672_v27 = vadd.f32 %v671_v23, %v538_v63  ;;  %v775_v28 = vmul.f32 %v1501_v19, %v754_v20 }
 0x1c3   : > { %v1303_v29 = vpop.f32.mrf.mxu1 }
 0x1c4   : > { %v755_v30 = vmax.f32 %v739_v26, 0.0  ;;  %v737_v31 = vadd.f32 %v1495_v13, %v672_v27  ;;  %v693_v32 = vadd.f32 %v1303_v29, %v1283_v0  ;;  %v796_v33 = vadd.f32 %v1507_v24, %v775_v28 }
 0x1c5   : > { %v684_v35 = vpop.f32.mrf.mxu1  ;;  %v773_v36 = vmul.f32 %v1501_v19, %v752_v25 }
 0x1c6   : > { %v776_v37 = vmul.f32 %v1501_v19, %v755_v30  ;;  %v753_v38 = vmax.f32 %v737_v31, 0.0  ;;  %v742_v39 = vadd.f32 %v1495_v13, %v693_v32  ;;  %v685_v40 = vadd.f32 %v684_v35, %v551_v1 }
 0x1c7   : > { %v1304_v41 = vpop.f32.mrf.mxu1  ;;  %v897_v42 = vmul.f32 %v1516_v34, %v796_v33  ;;  %v794_v43 = vadd.f32 %v1507_v24, %v773_v36 }
 0x1c8   : > { %v774_v44 = vmul.f32 %v1501_v19, %v753_v38  ;;  %v758_v45 = vmax.f32 %v742_v39, 0.0  ;;  %v740_v46 = vadd.f32 %v1495_v13, %v685_v40  ;;  %v696_v47 = vadd.f32 %v1304_v41, %v1284_v2 }
 0x1c9   : > { %915 = vadd.xlane.f32.xlu1 %v897_v42  ;;  %v687_v48 = vpop.f32.mrf.mxu1  ;;  %v895_v49 = vmul.f32 %v1516_v34, %v794_v43  ;;  %v797_v50 = vadd.f32 %v1507_v24, %v776_v37 }
 0x1ca   : > { %v779_v51 = vmul.f32 %v1501_v19, %v758_v45  ;;  %v756_v52 = vmax.f32 %v740_v46, 0.0  ;;  %v743_v53 = vadd.f32 %v1495_v13, %v696_v47  ;;  %v688_v54 = vadd.f32 %v687_v48, %v554_v3 }
 0x1cb   : > { %911 = vadd.xlane.f32.xlu0 %v895_v49  ;;  %v1307_v55 = vpop.f32.mrf.mxu1  ;;  %v898_v56 = vmul.f32 %v1516_v34, %v797_v50  ;;  %v1166_v57 = vpack.c.bf16 %v797_v50, %v796_v33  ;;  %v795_v58 = vadd.f32 %v1507_v24, %v774_v44 }
 0x1cc   : > { %v759_v59 = vmax.f32 %v743_v53, 0.0  ;;  %v741_v60 = vadd.f32 %v1495_v13, %v688_v54  ;;  %v709_v61 = vadd.f32 %v1307_v55, %v1287_v4  ;;  %v777_v62 = vmul.f32 %v1501_v19, %v756_v52 }
 0x1cd   : > { %917 = vadd.xlane.f32.xlu1 %v898_v56  ;;  %1198 = vst [vmem:[%s1533_s25 + $0x8] sm:$0xff] %v1166_v57   ;;  %v700_v63 = vpop.f32.mrf.mxu1  ;;  %v896_v0 = vmul.f32 %v1516_v34, %v795_v58  ;;  %v1161_v1 = vpack.c.bf16 %v795_v58, %v794_v43  ;;  %v800_v2 = vadd.f32 %v1507_v24, %v779_v51 }
 0x1ce   : > { %v780_v3 = vmul.f32 %v1501_v19, %v759_v59  ;;  %v757_v12 = vmax.f32 %v741_v60, 0.0  ;;  %v746_v14 = vadd.f32 %v1495_v13, %v709_v61  ;;  %v701_v15 = vadd.f32 %v700_v63, %v1478_v5 }
 0x1cf   : > { %913 = vadd.xlane.f32.xlu0 %v896_v0  ;;  %1162 = vst [vmem:[%s1533_s25] sm:$0xff] %v1161_v1   ;;  %v1308_v4 = vpop.f32.mrf.mxu1  ;;  %v901_v22 = vmul.f32 %v1516_v34, %v800_v2  ;;  %v798_v25 = vadd.f32 %v1507_v24, %v777_v62 }
 0x1d0   : > { %v778_v16 = vmul.f32 %v1501_v19, %v757_v12  ;;  %v762_v17 = vmax.f32 %v746_v14, 0.0  ;;  %v744_v18 = vadd.f32 %v1495_v13, %v701_v15  ;;  %v712_v20 = vadd.f32 %v1308_v4, %v1480_v6 }
 0x1d1   : > { %v703_v21 = vpop.f32.mrf.mxu1  ;;  %v801_v23 = vadd.f32 %v1507_v24, %v780_v3 }
 0x1d2   : > { %v783_v5 = vmul.f32 %v1501_v19, %v762_v17  ;;  %v760_v26 = vmax.f32 %v744_v18, 0.0  ;;  %v747_v27 = vadd.f32 %v1495_v13, %v712_v20  ;;  %v704_v28 = vadd.f32 %v703_v21, %v1482_v7 }
 0x1d3   : > { %923 = vadd.xlane.f32.xlu0 %v901_v22  ;;  %v1311_v29 = vpop.f32.mrf.mxu1  ;;  %v902_v30 = vmul.f32 %v1516_v34, %v801_v23  ;;  %v1176_v6 = vpack.c.bf16 %v801_v23, %v800_v2  ;;  %v799_v31 = vadd.f32 %v1507_v24, %v778_v16  ;;  %v899_v7 = vmul.f32 %v1516_v34, %v798_v25 }
 0x1d4   : > { %v763_v32 = vmax.f32 %v747_v27, 0.0  ;;  %v745_v33 = vadd.f32 %v1495_v13, %v704_v28  ;;  %v725_v35 = vadd.f32 %v1311_v29, %v1484_v8  ;;  %v781_v36 = vmul.f32 %v1501_v19, %v760_v26 }
 0x1d5   : > { %925 = vadd.xlane.f32.xlu1 %v902_v30  ;;  %1200 = vst [vmem:[%s1533_s25 + $0x18] sm:$0xff] %v1176_v6   ;;  %v716_v37 = vpop.f32.mrf.mxu1  ;;  %v1171_v38 = vpack.c.bf16 %v799_v31, %v798_v25  ;;  %v804_v39 = vadd.f32 %v1507_v24, %v783_v5  ;;  %v900_v8 = vmul.f32 %v1516_v34, %v799_v31 }
 0x1d6   : > { %v784_v40 = vmul.f32 %v1501_v19, %v763_v32  ;;  %v761_v41 = vmax.f32 %v745_v33, 0.0  ;;  %v750_v42 = vadd.f32 %v1495_v13, %v725_v35  ;;  %v717_v43 = vadd.f32 %v716_v37, %v1486_v9 }
 0x1d7   : > { %919 = vadd.xlane.f32.xlu0 %v899_v7  ;;  %v1312_v44 = vpop.f32.mrf.mxu1  ;;  %1199 = vst [vmem:[%s1533_s25 + $0x10] sm:$0xff] %v1171_v38   ;;  %v905_v50 = vmul.f32 %v1516_v34, %v804_v39  ;;  %v802_v9 = vadd.f32 %v1507_v24, %v781_v36 }
 0x1d8   : > { %v782_v45 = vmul.f32 %v1501_v19, %v761_v41  ;;  %v766_v46 = vmax.f32 %v750_v42, 0.0  ;;  %v748_v47 = vadd.f32 %v1495_v13, %v717_v43  ;;  %v728_v48 = vadd.f32 %v1312_v44, %v1488_v10 }
 0x1d9   : > { %921 = vadd.xlane.f32.xlu1 %v900_v8  ;;  %v719_v49 = vpop.f32.mrf.mxu1  ;;  %v805_v51 = vadd.f32 %v1507_v24, %v784_v40  ;;  %v903_v61 = vmul.f32 %v1516_v34, %v802_v9 }
 0x1da   : > { %v764_v52 = vmax.f32 %v748_v47, 0.0  ;;  %v751_v53 = vadd.f32 %v1495_v13, %v728_v48  ;;  %v720_v54 = vadd.f32 %v719_v49, %v1490_v11  ;;  %v803_v10 = vadd.f32 %v1507_v24, %v782_v45 }
 0x1db   : > { %931 = vadd.xlane.f32.xlu0 %v905_v50  ;;  %v906_v55 = vmul.f32 %v1516_v34, %v805_v51  ;;  %v1186_v56 = vpack.c.bf16 %v805_v51, %v804_v39  ;;  %v787_v57 = vmul.f32 %v1501_v19, %v766_v46 }
 0x1dc   : > { %v785_v58 = vmul.f32 %v1501_v19, %v764_v52  ;;  %v767_v59 = vmax.f32 %v751_v53, 0.0  ;;  %v749_v60 = vadd.f32 %v1495_v13, %v720_v54  ;;  %v1181_v62 = vpack.c.bf16 %v803_v10, %v802_v9 }
 0x1dd   : > { %933 = vadd.xlane.f32.xlu1 %v906_v55  ;;  %1202 = vst [vmem:[%s1533_s25 + $0x28] sm:$0xff] %v1186_v56   ;;  %v904_v1 = vmul.f32 %v1516_v34, %v803_v10  ;;  %v808_v3 = vadd.f32 %v1507_v24, %v787_v57 }
 0x1de   : > { %v788_v11 = vmul.f32 %v1501_v19, %v767_v59  ;;  %v765_v63 = vmax.f32 %v749_v60, 0.0  ;;  %v806_v0 = vadd.f32 %v1507_v24, %v785_v58  ;;  %1201 = vst [vmem:[%s1533_s25 + $0x20] sm:$0xff] %v1181_v62  }
 0x1df   : > { %927 = vadd.xlane.f32.xlu0 %v903_v61  ;;  %v909_v17 = vmul.f32 %v1516_v34, %v808_v3 }
 0x1e0   : > { %v786_v2 = vmul.f32 %v1501_v19, %v765_v63  ;;  %v907_v13 = vmul.f32 %v1516_v34, %v806_v0  ;;  %v809_v12 = vadd.f32 %v1507_v24, %v788_v11 }
 0x1e1   : > { %929 = vadd.xlane.f32.xlu1 %v904_v1 }
 0x1e2   : > { %v807_v14 = vadd.f32 %v1507_v24, %v786_v2  ;;  %v1196_v15 = vpack.c.bf16 %v809_v12, %v808_v3  ;;  %v910_v19 = vmul.f32 %v1516_v34, %v809_v12 }
 0x1e3   : > { %935 = vadd.xlane.f32.xlu0 %v907_v13 }
 0x1e4   : > { %v908_v4 = vmul.f32 %v1516_v34, %v807_v14  ;;  %v1191_v16 = vpack.c.bf16 %v807_v14, %v806_v0  ;;  %1204 = vst [vmem:[%s1533_s25 + $0x38] sm:$0xff] %v1196_v15  }
 0x1e6   : > { %937 = vadd.xlane.f32.xlu1 %v908_v4  ;;  %1203 = vst [vmem:[%s1533_s25 + $0x30] sm:$0xff] %v1191_v16  }
 0x1e7   : > { %939 = vadd.xlane.f32.xlu0 %v909_v17 }
 0x1ea   : > { %941 = vadd.xlane.f32.xlu1 %v910_v19 }
 0x252   : > { %v916_v18 = vpop.xlane.xlu1 %915 }
 0x253   : > { %1333 = vtanh.f32 %v916_v18 }
 0x254   : > { %v912_v20 = vpop.xlane.xlu0 %911 }
 0x255   : > { %1335 = vtanh.f32 %v912_v20 }
 0x256   : > { %v918_v24 = vpop.xlane.xlu1 %917 }
 0x257   : > { %1337 = vtanh.f32 %v918_v24 }
 0x258   : > { %v914_v21 = vpop.xlane.xlu0 %913 }
 0x259   : > { %1339 = vtanh.f32 %v914_v21 }
 0x25c   : > { %v924_v22 = vpop.xlane.xlu0 %923 }
 0x25d   : > { %1341 = vtanh.f32 %v924_v22 }
 0x25e   : > { %v926_v34 = vpop.xlane.xlu1 %925 }
 0x25f   : > { %1343 = vtanh.f32 %v926_v34 }
 0x260   : > { %v1334_v23 = vpop.eup %1333  ;;  %v920_v25 = vpop.xlane.xlu0 %919 }
 0x261   : > { %962 = vst.msk [vmem:[%s1602_s29 + $0x10] sm:$0xff] %vm959_vm1, %v1334_v23  ;;  %1345 = vtanh.f32 %v920_v25 }
 0x262   : > { %v1336_v5 = vpop.eup %1335  ;;  %v922_v26 = vpop.xlane.xlu1 %921 }
 0x263   : > { %960 = vst.msk [vmem:[%s1602_s29] sm:$0xff] %vm959_vm1, %v1336_v5  ;;  %1347 = vtanh.f32 %v922_v26 }
 0x264   : > { %v1338_v27 = vpop.eup %1337  ;;  %v932_v28 = vpop.xlane.xlu0 %931 }
 0x265   : > { %963 = vst.msk [vmem:[%s1602_s29 + $0x18] sm:$0xff] %vm959_vm1, %v1338_v27  ;;  %1349 = vtanh.f32 %v932_v28 }
 0x266   : > { %v1340_v29 = vpop.eup %1339  ;;  %v934_v30 = vpop.xlane.xlu1 %933 }
 0x267   : > { %961 = vst.msk [vmem:[%s1602_s29 + $0x8] sm:$0xff] %vm959_vm1, %v1340_v29  ;;  %1351 = vtanh.f32 %v934_v30 }
 0x268   : > { %v928_v6 = vpop.xlane.xlu0 %927 }
 0x269   : > { %1353 = vtanh.f32 %v928_v6 }
 0x26a   : > { %v1342_v31 = vpop.eup %1341  ;;  %v930_v32 = vpop.xlane.xlu1 %929 }
 0x26b   : > { %966 = vst.msk [vmem:[%s1602_s29 + $0x30] sm:$0xff] %vm959_vm1, %v1342_v31  ;;  %1355 = vtanh.f32 %v930_v32 }
 0x26c   : > { %v1344_v33 = vpop.eup %1343  ;;  %v936_v35 = vpop.xlane.xlu0 %935 }
 0x26d   : > { %967 = vst.msk [vmem:[%s1602_s29 + $0x38] sm:$0xff] %vm959_vm1, %v1344_v33  ;;  %1357 = vtanh.f32 %v936_v35 }
 0x26e   : > { %v1346_v36 = vpop.eup %1345 }
 0x26f   : > { %964 = vst.msk [vmem:[%s1602_s29 + $0x20] sm:$0xff] %vm959_vm1, %v1346_v36  ;;  %v938_v37 = vpop.xlane.xlu1 %937 }
 0x270   : > { %v1348_v7 = vpop.eup %1347  ;;  %1359 = vtanh.f32 %v938_v37  ;;  %v940_v38 = vpop.xlane.xlu0 %939 }
 0x271   : > { %965 = vst.msk [vmem:[%s1602_s29 + $0x28] sm:$0xff] %vm959_vm1, %v1348_v7  ;;  %1361 = vtanh.f32 %v940_v38 }
 0x272   : > { %v1350_v39 = vpop.eup %1349 }
 0x273   : > { %970 = vst.msk [vmem:[%s1602_s29 + $0x50] sm:$0xff] %vm959_vm1, %v1350_v39  ;;  %v942_v40 = vpop.xlane.xlu1 %941 }
 0x274   : > { %v1352_v41 = vpop.eup %1351  ;;  %1363 = vtanh.f32 %v942_v40 }
 0x275   : > { %971 = vst.msk [vmem:[%s1602_s29 + $0x58] sm:$0xff] %vm959_vm1, %v1352_v41 }
 0x276   : > { %v1354_v42 = vpop.eup %1353 }
 0x277   : > { %968 = vst.msk [vmem:[%s1602_s29 + $0x40] sm:$0xff] %vm959_vm1, %v1354_v42 }
 0x278   : > { %v1356_v43 = vpop.eup %1355 }
 0x279   : > { %969 = vst.msk [vmem:[%s1602_s29 + $0x48] sm:$0xff] %vm959_vm1, %v1356_v43 }
 0x27a   : > { %v1358_v44 = vpop.eup %1357 }
 0x27b   : > { %972 = vst.msk [vmem:[%s1602_s29 + $0x60] sm:$0xff] %vm959_vm1, %v1358_v44 }
 0x27d   : > { %v1360_v8 = vpop.eup %1359 }
 0x27e   : > { %v1362_v45 = vpop.eup %1361  ;;  %973 = vst.msk [vmem:[%s1602_s29 + $0x68] sm:$0xff] %vm959_vm1, %v1360_v8 }
 0x27f   : > { %974 = vst.msk [vmem:[%s1602_s29 + $0x70] sm:$0xff] %vm959_vm1, %v1362_v45 }
 0x281   : > { %v1364_v46 = vpop.eup %1363 }
 0x282   : > { %975 = vst.msk [vmem:[%s1602_s29 + $0x78] sm:$0xff] %vm959_vm1, %v1364_v46 }
 0x283 PF: > { %s16_s18 = sadd.s32 1, %s1371_s18  }
 0x284   : > { %p13_p5 = scmp.ge.s32.totalorder %s16_s18, 4  }
 0x286   :  { %15 = sbr.rel (!%p13_p5) target bundleno = 1 (0x1), region = 81 }

// kernel: gcn_forward.11
= control target key start
LH: loop header
LB: loop body
LE: loop exit
PB: predicated region body
PF: predicated region fallthrough
CT: control target
= control target key end

     0   :  { %vm733_vm0 = vcmask 7168   ;;  %v1576_v2 = vmov 0   ;;  %v1577_v6 = vmov 0.0   ;;  %s2402_s0 = inlined_call_operand.vmem [shape: bf16[2,128,128], index: 0, kind: input, shape index: {}]   ;;  %s2403_s1 = inlined_call_operand.vmem [shape: f32[2,128,1], index: 1, kind: input, shape index: {}]   ;;  %s2404_s2 = inlined_call_operand.vmem [shape: f32[2,1,1], index: 2, kind: input, shape index: {}]   ;;  %s2405_s3 = inlined_call_operand.vmem [shape: f32[2,256], index: 3, kind: input, shape index: {}]   ;;  %s2406_s4 = inlined_call_operand.vmem [shape: bf16[256,128], index: 4, kind: input, shape index: {}]   ;;  %s2407_s5 = inlined_call_operand.vmem [shape: f32[1,128], index: 5, kind: input, shape index: {}]   ;;  %s2408_s6 = inlined_call_operand.vmem [shape: bf16[128,64], index: 6, kind: input, shape index: {}]   ;;  %s2409_s7 = inlined_call_operand.vmem [shape: f32[1,64], index: 7, kind: input, shape index: {}]   ;;  %s2410_s8 = inlined_call_operand.vmem [shape: bf16[64,6], index: 8, kind: input, shape index: {}]   ;;  %s2411_s9 = inlined_call_operand.vmem [shape: f32[1,6], index: 9, kind: input, shape index: {}]   ;;  %s2412_s10 = inlined_call_operand.hbm [shape: f32[2,6], index: 10, kind: output, shape index: {}]  }
   0x1   :  { %v53_v0 = vld [vmem:[%s2403_s1 + $0x80] sm:$0xff]  ;;  %1517 = vset.pattern.permute.xlu1 %v1576_v2  ;;  %1516 = vset.pattern.permute.xlu0 %v1576_v2  ;;  %v54_v5 = vld [vmem:[%s2403_s1 + $0x88] sm:$0xff]  ;;  %v55_v9 = vld [vmem:[%s2403_s1 + $0x90] sm:$0xff] }
   0x2   :  { %v1642_v1 = vld [vmem:[%s2404_s2 + $0x1] ss:$0 sm:$0xff]  ;;  %v1653_v4 = vld [vmem:[%s2404_s2] ss:$0 sm:$0xff]  ;;  %v38_v8 = vld [vmem:[%s2403_s1 + $0x8] sm:$0xff]  ;;  %1479 = vmatprep.subr.bf16.mxu1 %v1577_v6 }
   0x3   :  { %vm99_vm1 = vcmp.ge.f32.partialorder %v53_v0, %v1642_v1  ;;  %v37_v3 = vld [vmem:[%s2403_s1] sm:$0xff]  ;;  %vm100_vm3 = vcmp.ge.f32.partialorder %v54_v5, %v1642_v1  ;;  %v39_v10 = vld [vmem:[%s2403_s1 + $0x10] sm:$0xff]  ;;  %v56_v15 = vld [vmem:[%s2403_s1 + $0x98] sm:$0xff]  ;;  %vm84_vm4 = vcmp.ge.f32.partialorder %v38_v8, %v1653_v4  ;;  %vm101_vm5 = vcmp.ge.f32.partialorder %v55_v9, %v1642_v1 }
   0x4   :  { %v1659_v7 = vsel %vm99_vm1, 1.0, %v1577_v6  ;;  %vm83_vm2 = vcmp.ge.f32.partialorder %v37_v3, %v1653_v4  ;;  %v1680_v14 = vsel %vm100_vm3, 1.0, %v1577_v6  ;;  %vm85_vm6 = vcmp.ge.f32.partialorder %v39_v10, %v1653_v4  ;;  %v40_v23 = vld [vmem:[%s2403_s1 + $0x18] sm:$0xff]  ;;  %v57_v24 = vld [vmem:[%s2403_s1 + $0xa0] sm:$0xff]  ;;  %v58_v39 = vld [vmem:[%s2403_s1 + $0xa8] sm:$0xff] }
   0x5   :  { %v259_v11 = vmul.f32 %v1659_v7, %v53_v0  ;;  %v771_v12 = vsel %vm733_vm0, %v1659_v7, 0.0  ;;  %v1677_v13 = vsel %vm83_vm2, 1.0, %v1577_v6  ;;  %v260_v18 = vmul.f32 %v1680_v14, %v54_v5  ;;  %v41_v25 = vld [vmem:[%s2403_s1 + $0x20] sm:$0xff]  ;;  %v42_v43 = vld [vmem:[%s2403_s1 + $0x28] sm:$0xff]  ;;  %v59_v44 = vld [vmem:[%s2403_s1 + $0xb0] sm:$0xff] }
   0x6   :  { %v243_v16 = vmul.f32 %v1677_v13, %v37_v3  ;;  %v734_v17 = vsel %vm733_vm0, %v1677_v13, 0.0  ;;  %v772_v19 = vsel %vm733_vm0, %v1680_v14, 0.0  ;;  %v1695_v21 = vsel %vm84_vm4, 1.0, %v1577_v6  ;;  %v43_v52 = vld [vmem:[%s2403_s1 + $0x30] sm:$0xff]  ;;  %v60_v55 = vld [vmem:[%s2403_s1 + $0xb8] sm:$0xff]  ;;  %v1780_v60 = vld [vmem:[%s2403_s1 + $0xc0] sm:$0xff] }
   0x7   :  { %357 = vperm.xlu1 %1517, %v259_v11   ;;  %v773_v20 = vadd.f32 %v772_v19, %v771_v12  ;;  %v1698_v22 = vsel %vm101_vm5, 1.0, %v1577_v6  ;;  %vm102_vm7 = vcmp.ge.f32.partialorder %v56_v15, %v1642_v1  ;;  %v244_v26 = vmul.f32 %v1695_v21, %v38_v8  ;;  %v44_v59 = vld [vmem:[%s2403_s1 + $0x38] sm:$0xff]  ;;  %v45_v8 = vld [vmem:[%s2403_s1 + $0x40] sm:$0xff]  ;;  %v62_v12 = vld [vmem:[%s2403_s1 + $0xc8] sm:$0xff] }
   0x8   :  { %277 = vperm.xlu0 %1516, %v243_v16   ;;  %v735_v27 = vsel %vm733_vm0, %v1695_v21, 0.0  ;;  %v774_v28 = vsel %vm733_vm0, %v1698_v22, 0.0  ;;  %v1716_v29 = vsel %vm85_vm6, 1.0, %v1577_v6  ;;  %v261_v31 = vmul.f32 %v1698_v22, %v55_v9 }
   0x9   :  { %v736_v30 = vadd.f32 %v735_v27, %v734_v17  ;;  %v775_v32 = vadd.f32 %v774_v28, %v773_v20  ;;  %v737_v33 = vsel %vm733_vm0, %v1716_v29, 0.0  ;;  %v1722_v34 = vsel %vm102_vm7, 1.0, %v1577_v6  ;;  %v46_v20 = vld [vmem:[%s2403_s1 + $0x48] sm:$0xff] }
   0xa   :  { %vm86_vm8 = vcmp.ge.f32.partialorder %v40_v23, %v1653_v4  ;;  %vm103_vm9 = vcmp.ge.f32.partialorder %v57_v24, %v1642_v1  ;;  %vm87_vm10 = vcmp.ge.f32.partialorder %v41_v25, %v1653_v4  ;;  %v245_v35 = vmul.f32 %v1716_v29, %v39_v10 }
   0xb   :  { %362 = vperm.xlu1 %1517, %v260_v18   ;;  %v738_v36 = vadd.f32 %v737_v33, %v736_v30  ;;  %v776_v37 = vsel %vm733_vm0, %v1722_v34, 0.0  ;;  %v1731_v38 = vsel %vm86_vm8, 1.0, %v1577_v6  ;;  %v1739_v42 = vsel %vm103_vm9, 1.0, %v1577_v6 }
   0xc   :  { %282 = vperm.xlu0 %1516, %v244_v26   ;;  %v777_v40 = vadd.f32 %v776_v37, %v775_v32  ;;  %v739_v41 = vsel %vm733_vm0, %v1731_v38, 0.0  ;;  %v262_v45 = vmul.f32 %v1722_v34, %v56_v15  ;;  %v778_v47 = vsel %vm733_vm0, %v1739_v42, 0.0 }
   0xd   :  { %v740_v46 = vadd.f32 %v739_v41, %v738_v36  ;;  %v1751_v48 = vsel %vm87_vm10, 1.0, %v1577_v6  ;;  %v246_v49 = vmul.f32 %v1731_v38, %v40_v23  ;;  %vm104_vm11 = vcmp.ge.f32.partialorder %v58_v39, %v1642_v1 }
   0xe   :  { %v779_v50 = vadd.f32 %v778_v47, %v777_v40  ;;  %v741_v51 = vsel %vm733_vm0, %v1751_v48, 0.0  ;;  %v1761_v54 = vsel %vm104_vm11, 1.0, %v1577_v6  ;;  %vm88_vm12 = vcmp.ge.f32.partialorder %v42_v43, %v1653_v4 }
   0xf   :  { %367 = vperm.xlu1 %1517, %v261_v31   ;;  %v742_v53 = vadd.f32 %v741_v51, %v740_v46  ;;  %vm105_vm13 = vcmp.ge.f32.partialorder %v59_v44, %v1642_v1  ;;  %v263_v56 = vmul.f32 %v1739_v42, %v57_v24  ;;  %v780_v57 = vsel %vm733_vm0, %v1761_v54, 0.0  ;;  %v1849_v46 = vld [vmem:[%s2403_s1 + $0xd0] sm:$0xff] }
  0x10   :  { %287 = vperm.xlu0 %1516, %v245_v35   ;;  %v1772_v58 = vsel %vm88_vm12, 1.0, %v1577_v6  ;;  %v247_v61 = vmul.f32 %v1751_v48, %v41_v25  ;;  %v781_v62 = vadd.f32 %v780_v57, %v779_v50  ;;  %v1786_v0 = vsel %vm105_vm13, 1.0, %v1577_v6 }
  0x11   :  { %v743_v63 = vsel %vm733_vm0, %v1772_v58, 0.0  ;;  %v782_v5 = vsel %vm733_vm0, %v1786_v0, 0.0  ;;  %vm89_vm14 = vcmp.ge.f32.partialorder %v43_v52, %v1653_v4  ;;  %vm106_vm15 = vcmp.ge.f32.partialorder %v60_v55, %v1642_v1 }
  0x12   :  { %v744_v3 = vadd.f32 %v743_v63, %v742_v53  ;;  %v783_v9 = vadd.f32 %v782_v5, %v781_v62  ;;  %v1796_v10 = vsel %vm89_vm14, 1.0, %v1577_v6  ;;  %v1799_v11 = vsel %vm106_vm15, 1.0, %v1577_v6  ;;  %v1876_v53 = vld [vmem:[%s2403_s1 + $0x58] sm:$0xff]  ;;  %v1903_v5 = vld [vmem:[%s2403_s1 + $0x60] sm:$0xff] }
  0x13   :  { %372 = vperm.xlu1 %1517, %v262_v45   ;;  %vm90_vm1 = vcmp.ge.f32.partialorder %v44_v59, %v1653_v4  ;;  %v745_v15 = vsel %vm733_vm0, %v1796_v10, 0.0  ;;  %v784_v16 = vsel %vm733_vm0, %v1799_v11, 0.0  ;;  %vm107_vm2 = vcmp.ge.f32.partialorder %v1780_v60, %v1642_v1 }
  0x14   :  { %292 = vperm.xlu0 %1516, %v246_v49   ;;  %v746_v17 = vadd.f32 %v745_v15, %v744_v3  ;;  %v785_v18 = vadd.f32 %v784_v16, %v783_v9  ;;  %v1810_v19 = vsel %vm90_vm1, 1.0, %v1577_v6  ;;  %v264_v23 = vmul.f32 %v1761_v54, %v58_v39 }
  0x15   :  { %v747_v24 = vsel %vm733_vm0, %v1810_v19, 0.0  ;;  %v1821_v25 = vsel %vm107_vm2, 1.0, %v1577_v6  ;;  %vm91_vm3 = vcmp.ge.f32.partialorder %v45_v8, %v1653_v4  ;;  %v248_v26 = vmul.f32 %v1772_v58, %v42_v43 }
  0x16   :  { %v748_v27 = vadd.f32 %v747_v24, %v746_v17  ;;  %v786_v28 = vsel %vm733_vm0, %v1821_v25, 0.0  ;;  %v1828_v30 = vsel %vm91_vm3, 1.0, %v1577_v6  ;;  %vm108_vm4 = vcmp.ge.f32.partialorder %v62_v12, %v1642_v1 }
  0x17   :  { %377 = vperm.xlu1 %1517, %v263_v56   ;;  %v787_v31 = vadd.f32 %v786_v28, %v785_v18  ;;  %v749_v32 = vsel %vm733_vm0, %v1828_v30, 0.0  ;;  %v1834_v35 = vsel %vm108_vm4, 1.0, %v1577_v6  ;;  %vm92_vm5 = vcmp.ge.f32.partialorder %v46_v20, %v1653_v4 }
  0x18   :  { %297 = vperm.xlu0 %1516, %v247_v61   ;;  %v750_v33 = vadd.f32 %v749_v32, %v748_v27  ;;  %v265_v36 = vmul.f32 %v1786_v0, %v59_v44  ;;  %v788_v37 = vsel %vm733_vm0, %v1834_v35, 0.0  ;;  %v1841_v39 = vsel %vm92_vm5, 1.0, %v1577_v6  ;;  %v1854_v44 = vld [vmem:[%s2403_s1 + $0x50] sm:$0xff] }
  0x19   :  { %v249_v40 = vmul.f32 %v1796_v10, %v43_v52  ;;  %v789_v41 = vadd.f32 %v788_v37, %v787_v31  ;;  %v751_v43 = vsel %vm733_vm0, %v1841_v39, 0.0  ;;  %v266_v47 = vmul.f32 %v1799_v11, %v60_v55  ;;  %v1871_v52 = vld [vmem:[%s2403_s1 + $0xd8] sm:$0xff]  ;;  %v1948_v32 = vld [vmem:[%s2403_s1 + $0xf0] sm:$0xff] }
  0x1a   :  { %v752_v45 = vadd.f32 %v751_v43, %v750_v33  ;;  %v250_v49 = vmul.f32 %v1810_v19, %v44_v59  ;;  %vm109_vm6 = vcmp.ge.f32.partialorder %v1849_v46, %v1642_v1  ;;  %vm93_vm7 = vcmp.ge.f32.partialorder %v1854_v44, %v1653_v4  ;;  %v1953_v33 = vld [vmem:[%s2403_s1 + $0x70] sm:$0xff] }
  0x1b   :  { %382 = vperm.xlu1 %1517, %v264_v23   ;;  %v1863_v50 = vsel %vm109_vm6, 1.0, %v1577_v6  ;;  %v1866_v51 = vsel %vm93_vm7, 1.0, %v1577_v6  ;;  %v267_v57 = vmul.f32 %v1821_v25, %v1780_v60  ;;  %v251_v62 = vmul.f32 %v1828_v30, %v45_v8  ;;  %v1898_v60 = vld [vmem:[%s2403_s1 + $0xe0] sm:$0xff] }
  0x1c   :  { %302 = vperm.xlu0 %1516, %v248_v26   ;;  %v790_v55 = vsel %vm733_vm0, %v1863_v50, 0.0  ;;  %v753_v56 = vsel %vm733_vm0, %v1866_v51, 0.0  ;;  %vm110_vm8 = vcmp.ge.f32.partialorder %v1871_v52, %v1642_v1  ;;  %vm94_vm9 = vcmp.ge.f32.partialorder %v1876_v53, %v1653_v4 }
  0x1d   :  { %v791_v59 = vadd.f32 %v790_v55, %v789_v41  ;;  %v754_v61 = vadd.f32 %v753_v56, %v752_v45  ;;  %v1890_v63 = vsel %vm110_vm8, 1.0, %v1577_v6  ;;  %v1893_v3 = vsel %vm94_vm9, 1.0, %v1577_v6 }
  0x1e   :  { %v792_v8 = vsel %vm733_vm0, %v1890_v63, 0.0  ;;  %v755_v9 = vsel %vm733_vm0, %v1893_v3, 0.0  ;;  %v268_v15 = vmul.f32 %v1834_v35, %v62_v12  ;;  %v252_v18 = vmul.f32 %v1841_v39, %v46_v20  ;;  %v1926_v20 = vld [vmem:[%s2403_s1 + $0xe8] sm:$0xff] }
  0x1f   :  { %387 = vperm.xlu1 %1517, %v265_v36   ;;  %v793_v16 = vadd.f32 %v792_v8, %v791_v59  ;;  %v756_v17 = vadd.f32 %v755_v9, %v754_v61  ;;  %vm468_vm10 = vcmp.gt.f32.partialorder %v1695_v21, 0.0  ;;  %vm467_vm11 = vcmp.gt.f32.partialorder %v1677_v13, 0.0  ;;  %v1931_v13 = vld [vmem:[%s2403_s1 + $0x68] sm:$0xff] }
  0x20   :  { %307 = vperm.xlu0 %1516, %v249_v40   ;;  %vm111_vm12 = vcmp.ge.f32.partialorder %v1898_v60, %v1642_v1  ;;  %vm95_vm13 = vcmp.ge.f32.partialorder %v1903_v5, %v1653_v4  ;;  %v500_v26 = vsel %vm468_vm10, 1, %v1576_v2  ;;  %v499_v27 = vsel %vm467_vm11, 1, %v1576_v2 }
  0x21   :  { %v1918_v23 = vsel %vm111_vm12, 1.0, %v1577_v6  ;;  %v1921_v12 = vsel %vm95_vm13, 1.0, %v1577_v6  ;;  %vm470_vm14 = vcmp.gt.f32.partialorder %v1731_v38, 0.0  ;;  %vm469_vm15 = vcmp.gt.f32.partialorder %v1716_v29, 0.0 }
  0x22   :  { %v794_v21 = vsel %vm733_vm0, %v1918_v23, 0.0  ;;  %v757_v24 = vsel %vm733_vm0, %v1921_v12, 0.0  ;;  %vm112_vm1 = vcmp.ge.f32.partialorder %v1926_v20, %v1642_v1  ;;  %vm96_vm2 = vcmp.ge.f32.partialorder %v1931_v13, %v1653_v4 }
  0x23   :  { %392 = vperm.xlu1 %1517, %v266_v47   ;;  %v795_v28 = vadd.f32 %v794_v21, %v793_v16  ;;  %v758_v31 = vadd.f32 %v757_v24, %v756_v17  ;;  %vm484_vm3 = vcmp.gt.f32.partialorder %v1680_v14, 0.0  ;;  %vm483_vm4 = vcmp.gt.f32.partialorder %v1659_v7, 0.0 }
  0x24   :  { %312 = vperm.xlu0 %1516, %v250_v49   ;;  %v1958_v38 = vsel %vm112_vm1, 1.0, %v1577_v6  ;;  %v1961_v36 = vsel %vm96_vm2, 1.0, %v1577_v6  ;;  %v502_v41 = vsel %vm470_vm14, 1, %v1576_v2  ;;  %vm478_vm5 = vcmp.gt.f32.partialorder %v1893_v3, 0.0 }
  0x25   :  { %v796_v37 = vsel %vm733_vm0, %v1958_v38, 0.0  ;;  %v759_v40 = vsel %vm733_vm0, %v1961_v36, 0.0  ;;  %v501_v7 = vsel %vm469_vm15, 1, %v1576_v2  ;;  %v516_v45 = vsel %vm484_vm3, 1, %v1576_v2 }
  0x26   :  { %v797_v43 = vadd.f32 %v796_v37, %v795_v28  ;;  %v760_v14 = vadd.f32 %v759_v40, %v758_v31  ;;  %v1974_v47 = vsel %vm478_vm5, 1, %v1576_v2  ;;  %vm494_vm6 = vcmp.gt.f32.partialorder %v1890_v63, 0.0 }
  0x27   :  { %397 = vperm.xlu1 %1517, %v267_v57   ;;  %v515_v49 = vsel %vm483_vm4, 1, %v1576_v2  ;;  %v1979_v55 = vsel %vm494_vm6, 1, %v1576_v2  ;;  %vm113_vm7 = vcmp.ge.f32.partialorder %v1948_v32, %v1642_v1  ;;  %vm97_vm8 = vcmp.ge.f32.partialorder %v1953_v33, %v1653_v4 }
  0x28   :  { %317 = vperm.xlu0 %1516, %v251_v62  }
  0x2b   :  { %402 = vperm.xlu1 %1517, %v268_v15  }
  0x2c   :  { %322 = vperm.xlu0 %1516, %v252_v18  }
  0x2f   :  { %535 = vperm.xlu1 %1517, %v500_v26  }
  0x30   :  { %532 = vperm.xlu0 %1516, %v499_v27  }
  0x31   :  { %15 = vsyncpa [#allocation3], 0  ;;  %v1986_v29 = vsel %vm113_vm7, 1.0, %v1577_v6  ;;  %v1989_v56 = vsel %vm97_vm8, 1.0, %v1577_v6  ;;  %vm480_vm9 = vcmp.gt.f32.partialorder %v1961_v36, 0.0  ;;  %vm479_vm10 = vcmp.gt.f32.partialorder %v1921_v12, 0.0 }
  0x32   :  { %v1996_v57 = vld [vmem:[%s2403_s1 + $0xf8] sm:$0xff]  ;;  %vm486_vm11 = vcmp.gt.f32.partialorder %v1722_v34, 0.0  ;;  %vm485_vm12 = vcmp.gt.f32.partialorder %v1698_v22, 0.0  ;;  %v798_v61 = vsel %vm733_vm0, %v1986_v29, 0.0  ;;  %v761_v62 = vsel %vm733_vm0, %v1989_v56, 0.0 }
  0x33   :  { %541 = vperm.xlu1 %1517, %v502_v41   ;;  %v2001_v59 = vld [vmem:[%s2403_s1 + $0x78] sm:$0xff]  ;;  %v799_v8 = vadd.f32 %v798_v61, %v797_v43  ;;  %v762_v9 = vadd.f32 %v761_v62, %v760_v14  ;;  %v2010_v15 = vsel %vm480_vm9, 1, %v1576_v2  ;;  %v2013_v16 = vsel %vm479_vm10, 1, %v1576_v2 }
  0x34   :  { %538 = vperm.xlu0 %1516, %v501_v7   ;;  %vm496_vm13 = vcmp.gt.f32.partialorder %v1958_v38, 0.0  ;;  %vm495_vm14 = vcmp.gt.f32.partialorder %v1918_v23, 0.0  ;;  %vm114_vm15 = vcmp.ge.f32.partialorder %v1996_v57, %v1642_v1  ;;  %vm98_vm1 = vcmp.ge.f32.partialorder %v2001_v59, %v1653_v4 }
  0x35   :  { %v2022_v17 = vsel %vm496_vm13, 1, %v1576_v2  ;;  %v2025_v18 = vsel %vm495_vm14, 1, %v1576_v2  ;;  %v2028_v21 = vsel %vm114_vm15, 1.0, %v1577_v6  ;;  %v2031_v24 = vsel %vm98_vm1, 1.0, %v1577_v6 }
  0x36   :  { %v518_v1 = vsel %vm486_vm11, 1, %v1576_v2  ;;  %v517_v4 = vsel %vm485_vm12, 1, %v1576_v2  ;;  %v800_v26 = vsel %vm733_vm0, %v2028_v21, 0.0  ;;  %v763_v27 = vsel %vm733_vm0, %v2031_v24, 0.0 }
  0x37   :  { %583 = vperm.xlu1 %1517, %v516_v45   ;;  %v2043_v28 = vadd.f32 %v800_v26, %v799_v8  ;;  %v2045_v31 = vadd.f32 %v763_v27, %v762_v9  ;;  %vm482_vm2 = vcmp.gt.f32.partialorder %v2031_v24, 0.0  ;;  %vm481_vm3 = vcmp.gt.f32.partialorder %v1989_v56, 0.0 }
  0x38   :  { %580 = vperm.xlu0 %1516, %v515_v49   ;;  %v2050_v34 = vsel %vm482_vm2, 1, %v1576_v2  ;;  %v2053_v22 = vsel %vm481_vm3, 1, %v1576_v2  ;;  %v269_v37 = vmul.f32 %v1863_v50, %v1849_v46  ;;  %vm498_vm0 = vcmp.gt.f32.partialorder %v2028_v21, 0.0  ;;  %v1435_v49 = vld [vmem:[%s2402_s0 + $0x40] sm:$0xff]  }
  0x39   :  { %vm497_vm4 = vcmp.gt.f32.partialorder %v1986_v29, 0.0  ;;  %v253_v40 = vmul.f32 %v1866_v51, %v1854_v44  ;;  %v2062_v41 = vsel %vm498_vm0, 1, %v1576_v2  ;;  %vm472_vm5 = vcmp.gt.f32.partialorder %v1772_v58, 0.0 }
  0x3a   :  { %v2065_v43 = vsel %vm497_vm4, 1, %v1576_v2  ;;  %vm471_vm6 = vcmp.gt.f32.partialorder %v1751_v48, 0.0  ;;  %v504_v46 = vsel %vm472_vm5, 1, %v1576_v2  ;;  %vm488_vm7 = vcmp.gt.f32.partialorder %v1761_v54, 0.0 }
  0x3b   :  { %589 = vperm.xlu1 %1517, %v518_v1   ;;  %v503_v14 = vsel %vm471_vm6, 1, %v1576_v2  ;;  %vm487_vm8 = vcmp.gt.f32.partialorder %v1739_v42, 0.0  ;;  %v520_v44 = vsel %vm488_vm7, 1, %v1576_v2  ;;  %v270_v48 = vmul.f32 %v1890_v63, %v1871_v52  ;;  %v1521_v1 = vld [vmem:[%s2406_s4 + $0x30] sm:$0xff]  }
  0x3c   :  { %586 = vperm.xlu0 %1516, %v517_v4   ;;  %v519_v7 = vsel %vm487_vm8, 1, %v1576_v2  ;;  %v254_v58 = vmul.f32 %v1893_v3, %v1876_v53  ;;  %vm474_vm9 = vcmp.gt.f32.partialorder %v1810_v19, 0.0  ;;  %vm473_vm10 = vcmp.gt.f32.partialorder %v1796_v10, 0.0 }
  0x3d   :  { %v506_v42 = vsel %vm474_vm9, 1, %v1576_v2  ;;  %v505_v54 = vsel %vm473_vm10, 1, %v1576_v2  ;;  %vm490_vm11 = vcmp.gt.f32.partialorder %v1799_v11, 0.0  ;;  %vm489_vm12 = vcmp.gt.f32.partialorder %v1786_v0, 0.0 }
  0x3e   :  { %v522_v52 = vsel %vm490_vm11, 1, %v1576_v2  ;;  %v521_v53 = vsel %vm489_vm12, 1, %v1576_v2  ;;  %v271_v10 = vmul.f32 %v1918_v23, %v1898_v60  ;;  %v255_v19 = vmul.f32 %v1921_v12, %v1903_v5 }
  0x3f   :  { %407 = vperm.xlu1 %1517, %v269_v37   ;;  %vm476_vm13 = vcmp.gt.f32.partialorder %v1841_v39, 0.0  ;;  %vm475_vm14 = vcmp.gt.f32.partialorder %v1828_v30, 0.0  ;;  %vm492_vm15 = vcmp.gt.f32.partialorder %v1834_v35, 0.0  ;;  %vm491_vm1 = vcmp.gt.f32.partialorder %v1821_v25, 0.0 }
  0x40   :  { %327 = vperm.xlu0 %1516, %v253_v40   ;;  %v508_v0 = vsel %vm476_vm13, 1, %v1576_v2  ;;  %v507_v11 = vsel %vm475_vm14, 1, %v1576_v2  ;;  %v524_v63 = vsel %vm492_vm15, 1, %v1576_v2  ;;  %v523_v3 = vsel %vm491_vm1, 1, %v1576_v2  ;;  %v1522_v40 = vld [vmem:[%s2406_s4 + $0x68] sm:$0xff]  }
  0x41   :  { %v272_v30 = vmul.f32 %v1958_v38, %v1926_v20  ;;  %v256_v39 = vmul.f32 %v1961_v36, %v1931_v13  ;;  %vm477_vm2 = vcmp.gt.f32.partialorder %v1866_v51, 0.0  ;;  %vm493_vm3 = vcmp.gt.f32.partialorder %v1863_v50, 0.0 }
  0x42   :  { %v509_v25 = vsel %vm477_vm2, 1, %v1576_v2  ;;  %v525_v35 = vsel %vm493_vm3, 1, %v1576_v2  ;;  %v273_v60 = vmul.f32 %v1986_v29, %v1948_v32  ;;  %v802_v5 = vrot.slane %v2043_v28, 4  ;;  %v1518_v29 = vld [vmem:[%s2406_s4 + $0x78] sm:$0xff]  }
  0x43   :  { %547 = vperm.xlu1 %1517, %v504_v46   ;;  %v257_v51 = vmul.f32 %v1989_v56, %v1953_v33  ;;  %v765_v23 = vrot.slane %v2045_v31, 4  ;;  %v274_v13 = vmul.f32 %v2028_v21, %v1996_v57  ;;  %v258_v33 = vmul.f32 %v2031_v24, %v2001_v59  ;;  %v1365_v56 = vld [vmem:[%s2402_s0] sm:$0xff]   ;;  %v1519_v57 = vld [vmem:[%s2406_s4 + $0x38] sm:$0xff]   ;;  %1443 = vmatprep.subr.bf16.mxu0 %v1518_v29  ;;  %v1520_v21 = vld [vmem:[%s2406_s4 + $0x70] sm:$0xff]  }
  0x44   :  { %544 = vperm.xlu0 %1516, %v503_v14   ;;  %v803_v50 = vadd.f32 %v802_v5, %v2043_v28  ;;  %v1398_v61 = vunpack.c.l.bf16 %v1435_v49  ;;  %v1399_v8 = vunpack.c.h.bf16 %v1435_v49  ;;  %1444 = vmatpush3.bf16.msra.mxu0 %v1519_v57  ;;  %v1428_v24 = vld [vmem:[%s2402_s0 + $0x8] sm:$0xff]   ;;  %v1528_v5 = vld [vmem:[%s2406_s4 + $0x50] sm:$0xff]  }
  0x45   :  { %v766_v12 = vadd.f32 %v765_v23, %v2045_v31  ;;  %1445 = vmatprep.subr.bf16.mxu0 %v1520_v21  ;;  %v1370_v37 = vunpack.c.l.bf16 %v1428_v24 }
  0x46   :  { %v804_v2 = vrot.slane %v803_v50, 2 }
  0x47   :  { %595 = vperm.xlu1 %1517, %v520_v44   ;;  %v767_v20 = vrot.slane %v766_v12, 2 }
  0x48   :  { %592 = vperm.xlu0 %1516, %v519_v7   ;;  %v805_v32 = vadd.f32 %v804_v2, %v803_v50  ;;  %1446 = vmatpush3.bf16.msra.mxu0 %v1521_v1 }
  0x49   :  { %v768_v38 = vadd.f32 %v767_v20, %v766_v12  ;;  %1447 = vmatprep.subr.bf16.mxu0 %v1522_v40 }
  0x4a   :  { %v806_v36 = vrot.slane %v805_v32, 1 }
  0x4b   :  { %412 = vperm.xlu1 %1517, %v270_v48   ;;  %v769_v45 = vrot.slane %v768_v38, 1 }
  0x4c   :  { %332 = vperm.xlu0 %1516, %v254_v58  }
  0x4f   :  { %553 = vperm.xlu1 %1517, %v506_v42   ;;  %v1371_v42 = vunpack.c.h.bf16 %v1428_v24  ;;  %v1533_v24 = vld [vmem:[%s2406_s4] sm:$0xff]  }
  0x50   :  { %550 = vperm.xlu0 %1516, %v505_v54   ;;  %v1437_v54 = vld [vmem:[%s2402_s0 + $0x50] sm:$0xff]  }
  0x51   :  { %v1407_v20 = vunpack.c.h.bf16 %v1437_v54 }
  0x53   :  { %601 = vperm.xlu1 %1517, %v522_v52   ;;  %v1524_v52 = vld [vmem:[%s2406_s4 + $0x60] sm:$0xff]  }
  0x54   :  { %598 = vperm.xlu0 %1516, %v521_v53  }
  0x57   :  { %417 = vperm.xlu1 %1517, %v271_v10   ;;  %v1429_v10 = vld [vmem:[%s2402_s0 + $0x10] sm:$0xff]  }
  0x58   :  { %337 = vperm.xlu0 %1516, %v255_v19   ;;  %v1525_v19 = vld [vmem:[%s2406_s4 + $0x20] sm:$0xff]  }
  0x5b   :  { %559 = vperm.xlu1 %1517, %v508_v0  }
  0x5c   :  { %556 = vperm.xlu0 %1516, %v507_v11  }
  0x5f   :  { %607 = vperm.xlu1 %1517, %v524_v63  }
  0x60   :  { %604 = vperm.xlu0 %1516, %v523_v3  }
  0x63   :  { %422 = vperm.xlu1 %1517, %v272_v30   ;;  %v1406_v30 = vunpack.c.l.bf16 %v1437_v54 }
  0x64   :  { %342 = vperm.xlu0 %1516, %v256_v39  }
  0x67   :  { %565 = vperm.xlu1 %1517, %v1974_v47   ;;  %v807_v47 = vadd.f32 %v806_v36, %v805_v32  ;;  %v1530_v36 = vld [vmem:[%s2406_s4 + $0x48] sm:$0xff]  }
  0x68   :  { %562 = vperm.xlu0 %1516, %v509_v25   ;;  %v1374_v25 = vunpack.c.l.bf16 %v1429_v10 }
  0x69   :  { %v809_v9 = vmax.f32 %v807_v47, 1.0  ;;  %v1430_v47 = vld [vmem:[%s2402_s0 + $0x18] sm:$0xff]  }
  0x6b   :  { %613 = vperm.xlu1 %1517, %v1979_v55   ;;  %v770_v55 = vadd.f32 %v769_v45, %v768_v38  ;;  %v1438_v38 = vld [vmem:[%s2402_s0 + $0x58] sm:$0xff]  }
  0x6c   :  { %610 = vperm.xlu0 %1516, %v525_v35   ;;  %v1526_v35 = vld [vmem:[%s2406_s4 + $0x58] sm:$0xff]   ;;  %v1410_v57 = vunpack.c.l.bf16 %v1438_v38  ;;  %v1411_v21 = vunpack.c.h.bf16 %v1438_v38 }
  0x6f   :  { %427 = vperm.xlu1 %1517, %v273_v60   ;;  %v1527_v60 = vld [vmem:[%s2406_s4 + $0x18] sm:$0xff]  }
  0x70   :  { %347 = vperm.xlu0 %1516, %v257_v51  }
  0x73   :  { %571 = vperm.xlu1 %1517, %v2010_v15   ;;  %v1366_v15 = vunpack.c.l.bf16 %v1365_v56 }
  0x74   :  { %568 = vperm.xlu0 %1516, %v2013_v16   ;;  %v1367_v16 = vunpack.c.h.bf16 %v1365_v56 }
  0x77   :  { %619 = vperm.xlu1 %1517, %v2022_v17   ;;  %v808_v17 = vmax.f32 %v770_v55, 1.0 }
  0x78   :  { %616 = vperm.xlu0 %1516, %v2025_v18   ;;  %v1436_v18 = vld [vmem:[%s2402_s0 + $0x48] sm:$0xff]  }
  0x79   :  { %v1402_v31 = vunpack.c.l.bf16 %v1436_v18  ;;  %v1403_v48 = vunpack.c.h.bf16 %v1436_v18 }
  0x7b   :  { %432 = vperm.xlu1 %1517, %v274_v13   ;;  %v1529_v13 = vld [vmem:[%s2406_s4 + $0x10] sm:$0xff]  }
  0x7c   :  { %352 = vperm.xlu0 %1516, %v258_v33   ;;  %v1375_v33 = vunpack.c.h.bf16 %v1429_v10 }
  0x7f   :  { %577 = vperm.xlu1 %1517, %v2050_v34  }
  0x80   :  { %574 = vperm.xlu0 %1516, %v2053_v22  }
  0x82   :  { %v358_v59 = vpop.permute.xlu1 %357 }
  0x83   :  { %v278_v62 = vpop.permute.xlu0 %277  ;;  %625 = vperm.xlu1 %1517, %v2062_v41   ;;  %v2153_v26 = vmul.f32 %v1398_v61, %v358_v59  ;;  %v1531_v59 = vld [vmem:[%s2406_s4 + $0x8] sm:$0xff]  }
  0x84   :  { %622 = vperm.xlu0 %1516, %v2065_v43   ;;  %v2157_v34 = vmul.f32 %v1366_v15, %v278_v62  ;;  %v1523_v43 = vld [vmem:[%s2406_s4 + $0x28] sm:$0xff]   ;;  %v1378_v62 = vunpack.c.l.bf16 %v1430_v47 }
  0x85   :  { %1448 = vmatpush3.bf16.msra.mxu0 %v1523_v43 }
  0x86   :  { %v363_v4 = vpop.permute.xlu1 %362  ;;  %1449 = vmatprep.subr.bf16.mxu0 %v1524_v52 }
  0x87   :  { %v2155_v27 = vmul.f32 %v1399_v8, %v363_v4  ;;  %v283_v28 = vpop.permute.xlu0 %282  ;;  %859 = vperm.xlu1 %1517, %v809_v9   ;;  %v1532_v8 = vld [vmem:[%s2406_s4 + $0x40] sm:$0xff]   ;;  %v1379_v4 = vunpack.c.h.bf16 %v1430_v47 }
  0x88   :  { %v2159_v22 = vmul.f32 %v1367_v16, %v283_v28  ;;  %854 = vperm.xlu0 %1516, %v808_v17   ;;  %v1439_v28 = vld [vmem:[%s2402_s0 + $0x60] sm:$0xff]  }
  0x89   :  { %v831_v41 = vadd.f32 %v2155_v27, %v2153_v26  ;;  %1450 = vmatpush3.bf16.msra.mxu0 %v1525_v19 }
  0x8a   :  { %v810_v46 = vadd.f32 %v2159_v22, %v2157_v34  ;;  %v368_v14 = vpop.permute.xlu1 %367  ;;  %1451 = vmatprep.subr.bf16.mxu0 %v1526_v35 }
  0x8b   :  { %v2171_v44 = vmul.f32 %v1402_v31, %v368_v14  ;;  %v288_v7 = vpop.permute.xlu0 %287  ;;  %v1414_v14 = vunpack.c.l.bf16 %v1439_v28 }
  0x8c   :  { %v2173_v58 = vmul.f32 %v1370_v37, %v288_v7  ;;  %v1431_v37 = vld [vmem:[%s2402_s0 + $0x20] sm:$0xff]  }
  0x8d   :  { %v832_v53 = vadd.f32 %v831_v41, %v2171_v44  ;;  %1452 = vmatpush3.bf16.msra.mxu0 %v1527_v60 }
  0x8e   :  { %v811_v0 = vadd.f32 %v810_v46, %v2173_v58  ;;  %v373_v11 = vpop.permute.xlu1 %372  ;;  %1453 = vmatprep.subr.bf16.mxu0 %v1528_v5 }
  0x8f   :  { %v2189_v63 = vmul.f32 %v1403_v48, %v373_v11  ;;  %v293_v3 = vpop.permute.xlu0 %292  ;;  %v1382_v48 = vunpack.c.l.bf16 %v1431_v37 }
  0x90   :  { %v2191_v39 = vmul.f32 %v1371_v42, %v293_v3  ;;  %v1383_v3 = vunpack.c.h.bf16 %v1431_v37 }
  0x91   :  { %v833_v51 = vadd.f32 %v832_v53, %v2189_v63  ;;  %1454 = vmatpush3.bf16.msra.mxu0 %v1529_v13  ;;  %v1534_v53 = vld [vmem:[%s2408_s6 + $0x38] sm:$0xff]  }
  0x92   :  { %v812_v23 = vadd.f32 %v811_v0, %v2191_v39  ;;  %v378_v50 = vpop.permute.xlu1 %377  ;;  %1455 = vmatprep.subr.bf16.mxu0 %v1530_v36  ;;  %v1415_v0 = vunpack.c.h.bf16 %v1439_v28  ;;  %1480 = vmatpush3.bf16.msra.mxu1 %v1534_v53  ;;  %v1537_v36 = vld [vmem:[%s2408_s6 + $0x20] sm:$0xff]  }
  0x93   :  { %v2204_v12 = vmul.f32 %v1406_v30, %v378_v50  ;;  %v298_v2 = vpop.permute.xlu0 %297  ;;  %v1535_v30 = vld [vmem:[%s2408_s6 + $0x30] sm:$0xff]   ;;  %1481 = vmatprep.subr.bf16.mxu1 %v1577_v6  ;;  %v1536_v50 = vld [vmem:[%s2408_s6 + $0x28] sm:$0xff]  }
  0x94   :  { %v2209_v32 = vmul.f32 %v1374_v25, %v298_v2 }
  0x95   :  { %v834_v45 = vadd.f32 %v833_v51, %v2204_v12  ;;  %1456 = vmatpush3.bf16.msra.mxu0 %v1531_v59 }
  0x96   :  { %v813_v49 = vadd.f32 %v812_v23, %v2209_v32  ;;  %v383_v55 = vpop.permute.xlu1 %382  ;;  %1457 = vmatprep.subr.bf16.mxu0 %v1532_v8  ;;  %1482 = vmatpush3.bf16.msra.mxu1 %v1535_v30 }
  0x97   :  { %v2222_v29 = vmul.f32 %v1407_v20, %v383_v55  ;;  %v303_v56 = vpop.permute.xlu0 %302  ;;  %1483 = vmatprep.subr.bf16.mxu1 %v1577_v6 }
  0x98   :  { %v2227_v61 = vmul.f32 %v1375_v33, %v303_v56 }
  0x99   :  { %v835_v9 = vadd.f32 %v834_v45, %v2222_v29  ;;  %1458 = vmatpush3.bf16.msra.mxu0 %v1533_v24 }
  0x9a   :  { %v814_v15 = vadd.f32 %v813_v49, %v2227_v61  ;;  %v388_v16 = vpop.permute.xlu1 %387  ;;  %1499 = vmatprep.subr.bf16.mxu0 %v1577_v6  ;;  %1484 = vmatpush3.bf16.msra.mxu1 %v1536_v50 }
  0x9b   :  { %v2234_v17 = vmul.f32 %v1410_v57, %v388_v16  ;;  %v308_v18 = vpop.permute.xlu0 %307  ;;  %1485 = vmatprep.subr.bf16.mxu1 %v1577_v6 }
  0x9c   :  { %v2239_v1 = vmul.f32 %v1378_v62, %v308_v18 }
  0x9d   :  { %v836_v31 = vadd.f32 %v835_v9, %v2234_v17 }
  0x9e   :  { %v815_v40 = vadd.f32 %v814_v15, %v2239_v1  ;;  %v393_v41 = vpop.permute.xlu1 %392  ;;  %1486 = vmatpush3.bf16.msra.mxu1 %v1537_v36 }
  0x9f   :  { %v2249_v43 = vmul.f32 %v1411_v21, %v393_v41  ;;  %v313_v46 = vpop.permute.xlu0 %312  ;;  %1487 = vmatprep.subr.bf16.mxu1 %v1577_v6 }
  0xa0   :  { %v2251_v7 = vmul.f32 %v1379_v4, %v313_v46 }
  0xa1   :  { %v837_v42 = vadd.f32 %v836_v31, %v2249_v43 }
  0xa2   :  { %v816_v54 = vadd.f32 %v815_v40, %v2251_v7  ;;  %v398_v52 = vpop.permute.xlu1 %397 }
  0xa3   :  { %v2259_v10 = vmul.f32 %v1414_v14, %v398_v52  ;;  %v318_v19 = vpop.permute.xlu0 %317 }
  0xa4   :  { %v2261_v11 = vmul.f32 %v1382_v48, %v318_v19 }
  0xa5   :  { %v838_v25 = vadd.f32 %v837_v42, %v2259_v10 }
  0xa6   :  { %v817_v35 = vadd.f32 %v816_v54, %v2261_v11  ;;  %v403_v60 = vpop.permute.xlu1 %402 }
  0xa7   :  { %v2269_v5 = vmul.f32 %v1415_v0, %v403_v60  ;;  %v323_v51 = vpop.permute.xlu0 %322 }
  0xa8   :  { %v2271_v23 = vmul.f32 %v1383_v3, %v323_v51 }
  0xa9   :  { %v2277_v2 = vadd.f32 %v838_v25, %v2269_v5 }
  0xaa   :  { %v2281_v20 = vadd.f32 %v817_v35, %v2271_v23  ;;  %v536_v13 = vpop.permute.xlu1 %535 }
  0xab   :  { %vm628_vm0 = vcmp.eq.s32.totalorder %v536_v13, 1  ;;  %v533_v33 = vpop.permute.xlu0 %532 }
  0xac   :  { %v660_v38 = vsel %vm628_vm0, %v2159_v22, -1e+30  ;;  %vm627_vm4 = vcmp.eq.s32.totalorder %v533_v33, 1  ;;  %v1538_v22 = vld [vmem:[%s2408_s6 + $0x18] sm:$0xff]  }
  0xad   :  { %v659_v45 = vsel %vm627_vm4, %v2157_v34, -1e+30  ;;  %1488 = vmatpush3.bf16.msra.mxu1 %v1538_v22 }
  0xae   :  { %v542_v47 = vpop.permute.xlu1 %541  ;;  %1489 = vmatprep.subr.bf16.mxu1 %v1577_v6 }
  0xaf   :  { %vm630_vm5 = vcmp.eq.s32.totalorder %v542_v47, 1  ;;  %v539_v49 = vpop.permute.xlu0 %538 }
  0xb0   :  { %v662_v55 = vsel %vm630_vm5, %v2191_v39, -1e+30  ;;  %vm629_vm6 = vcmp.eq.s32.totalorder %v539_v49, 1 }
  0xb1   :  { %v692_v56 = vmax.f32 %v660_v38, %v662_v55  ;;  %v661_v57 = vsel %vm629_vm6, %v2173_v58, -1e+30 }
  0xb2   :  { %v691_v59 = vmax.f32 %v659_v45, %v661_v57  ;;  %v584_v34 = vpop.permute.xlu1 %583  ;;  %v1432_v57 = vld [vmem:[%s2402_s0 + $0x28] sm:$0xff]  }
  0xb3   :  { %vm644_vm7 = vcmp.eq.s32.totalorder %v584_v34, 1  ;;  %v581_v62 = vpop.permute.xlu0 %580 }
  0xb4   :  { %v676_v8 = vsel %vm644_vm7, %v2155_v27, -1e+30  ;;  %vm643_vm8 = vcmp.eq.s32.totalorder %v581_v62, 1  ;;  %v1441_v62 = vld [vmem:[%s2402_s0 + $0x70] sm:$0xff]  }
  0xb5   :  { %v675_v39 = vsel %vm643_vm8, %v2153_v26, -1e+30 }
  0xb6   :  { %v590_v9 = vpop.permute.xlu1 %589 }
  0xb7   :  { %vm646_vm9 = vcmp.eq.s32.totalorder %v590_v9, 1  ;;  %v587_v15 = vpop.permute.xlu0 %586  ;;  %v1387_v9 = vunpack.c.h.bf16 %v1432_v57 }
  0xb8   :  { %v678_v16 = vsel %vm646_vm9, %v2189_v63, -1e+30  ;;  %vm645_vm10 = vcmp.eq.s32.totalorder %v587_v15, 1 }
  0xb9   :  { %v713_v58 = vmax.f32 %v676_v8, %v678_v16  ;;  %v677_v18 = vsel %vm645_vm10, %v2171_v44, -1e+30 }
  0xba   :  { %v712_v21 = vmax.f32 %v675_v39, %v677_v18  ;;  %v2300_v24 = vpop.permute.xlu1 %407  ;;  %v1433_v39 = vld [vmem:[%s2402_s0 + $0x30] sm:$0xff]  }
  0xbb   :  { %v2302_v4 = vpop.permute.xlu0 %327 }
  0xbe   :  { %v548_v27 = vpop.permute.xlu1 %547 }
  0xbf   :  { %vm632_vm11 = vcmp.eq.s32.totalorder %v548_v27, 1  ;;  %v545_v28 = vpop.permute.xlu0 %544  ;;  %v1390_v27 = vunpack.c.l.bf16 %v1433_v39 }
  0xc0   :  { %v664_v26 = vsel %vm632_vm11, %v2227_v61, -1e+30  ;;  %vm631_vm12 = vcmp.eq.s32.totalorder %v545_v28, 1  ;;  %v1442_v28 = vld [vmem:[%s2402_s0 + $0x78] sm:$0xff]  }
  0xc1   :  { %v694_v31 = vmax.f32 %v692_v56, %v664_v26  ;;  %v663_v37 = vsel %vm631_vm12, %v2209_v32, -1e+30 }
  0xc2   :  { %v693_v40 = vmax.f32 %v691_v59, %v663_v37  ;;  %v596_v63 = vpop.permute.xlu1 %595  ;;  %v1434_v37 = vld [vmem:[%s2402_s0 + $0x38] sm:$0xff]  }
  0xc3   :  { %vm648_vm13 = vcmp.eq.s32.totalorder %v596_v63, 1  ;;  %v593_v41 = vpop.permute.xlu0 %592  ;;  %v1391_v63 = vunpack.c.h.bf16 %v1433_v39 }
  0xc4   :  { %v680_v44 = vsel %vm648_vm13, %v2222_v29, -1e+30  ;;  %vm647_vm14 = vcmp.eq.s32.totalorder %v593_v41, 1 }
  0xc5   :  { %v715_v46 = vmax.f32 %v713_v58, %v680_v44  ;;  %v679_v14 = vsel %vm647_vm14, %v2204_v12, -1e+30  ;;  %v1422_v58 = vunpack.c.l.bf16 %v1441_v62 }
  0xc6   :  { %v714_v48 = vmax.f32 %v712_v21, %v679_v14  ;;  %v413_v42 = vpop.permute.xlu1 %412 }
  0xc7   :  { %v333_v54 = vpop.permute.xlu0 %332 }
  0xca   :  { %v554_v52 = vpop.permute.xlu1 %553 }
  0xcb   :  { %vm634_vm15 = vcmp.eq.s32.totalorder %v554_v52, 1  ;;  %v551_v61 = vpop.permute.xlu0 %550  ;;  %v1394_v52 = vunpack.c.l.bf16 %v1434_v37 }
  0xcc   :  { %v666_v53 = vsel %vm634_vm15, %v2251_v7, -1e+30  ;;  %vm633_vm1 = vcmp.eq.s32.totalorder %v551_v61, 1 }
  0xcd   :  { %v696_v32 = vmax.f32 %v694_v31, %v666_v53  ;;  %v665_v19 = vsel %vm633_vm1, %v2239_v1, -1e+30  ;;  %v1423_v31 = vunpack.c.h.bf16 %v1441_v62 }
  0xce   :  { %v695_v0 = vmax.f32 %v693_v40, %v665_v19  ;;  %v602_v3 = vpop.permute.xlu1 %601  ;;  %v446_v40 = vmul.f32 %v1387_v9, %v333_v54 }
  0xcf   :  { %vm650_vm2 = vcmp.eq.s32.totalorder %v602_v3, 1  ;;  %v599_v29 = vpop.permute.xlu0 %598 }
  0xd0   :  { %v682_v30 = vsel %vm650_vm2, %v2249_v43, -1e+30  ;;  %vm649_vm3 = vcmp.eq.s32.totalorder %v599_v29, 1 }
  0xd1   :  { %v717_v12 = vmax.f32 %v715_v46, %v682_v30  ;;  %v681_v25 = vsel %vm649_vm3, %v2234_v17, -1e+30  ;;  %v1426_v46 = vunpack.c.l.bf16 %v1442_v28 }
  0xd2   :  { %v716_v35 = vmax.f32 %v714_v48, %v681_v25  ;;  %v418_v60 = vpop.permute.xlu1 %417  ;;  %v1395_v25 = vunpack.c.h.bf16 %v1434_v37 }
  0xd3   :  { %v338_v51 = vpop.permute.xlu0 %337  ;;  %v463_v44 = vmul.f32 %v1422_v58, %v418_v60 }
  0xd4   :  { %v447_v48 = vmul.f32 %v1390_v27, %v338_v51 }
  0xd6   :  { %v560_v50 = vpop.permute.xlu1 %559 }
  0xd7   :  { %vm636_vm0 = vcmp.eq.s32.totalorder %v560_v50, 1  ;;  %v557_v7 = vpop.permute.xlu0 %556 }
  0xd8   :  { %v668_v13 = vsel %vm636_vm0, %v2271_v23, -1e+30  ;;  %vm635_vm4 = vcmp.eq.s32.totalorder %v557_v7, 1  ;;  %vm869_vm0 = vcmask 1041409  }
  0xd9   :  { %v2313_v1 = vmax.f32 %v696_v32, %v668_v13  ;;  %v667_v33 = vsel %vm635_vm4, %v2261_v11, -1e+30  ;;  %v1440_v11 = vld [vmem:[%s2402_s0 + $0x68] sm:$0xff]   ;;  %vm1579_vm4 = vmmov 0  }
  0xda   :  { %v2316_v38 = vmax.f32 %v695_v0, %v667_v33  ;;  %v608_v43 = vpop.permute.xlu1 %607  ;;  %v1418_v59 = vunpack.c.l.bf16 %v1440_v11  ;;  %v1419_v8 = vunpack.c.h.bf16 %v1440_v11  ;;  %v1427_v0 = vunpack.c.h.bf16 %v1442_v28  ;;  %1495 = vmatprep.mubr.msk.bf16.mxu1 %vm1579_vm4, %v1577_v6 }
  0xdb   :  { %vm652_vm5 = vcmp.eq.s32.totalorder %v608_v43, 1  ;;  %v605_v36 = vpop.permute.xlu0 %604 }
  0xdc   :  { %v684_v17 = vsel %vm652_vm5, %v2269_v5, -1e+30  ;;  %vm651_vm6 = vcmp.eq.s32.totalorder %v605_v36, 1  ;;  %v461_v16 = vmul.f32 %v1418_v59, %v2300_v24  ;;  %v462_v26 = vmul.f32 %v1419_v8, %v413_v42 }
  0xdd   :  { %v2319_v45 = vmax.f32 %v717_v12, %v684_v17  ;;  %v683_v47 = vsel %vm651_vm6, %v2259_v10, -1e+30  ;;  %v1386_v10 = vunpack.c.l.bf16 %v1432_v57  ;;  %vm1226_vm5 = vcmask 523264  }
  0xde   :  { %v2322_v49 = vmax.f32 %v716_v35, %v683_v47  ;;  %v423_v23 = vpop.permute.xlu1 %422  ;;  %v840_v24 = vadd.f32 %v2277_v2, %v461_v16  ;;  %vm1270_vm6 = vcmask 41984  }
  0xdf   :  { %v343_v55 = vpop.permute.xlu0 %342  ;;  %v445_v21 = vmul.f32 %v1386_v10, %v2302_v4  ;;  %v464_v42 = vmul.f32 %v1423_v31, %v423_v23 }
  0xe0   :  { %v841_v61 = vadd.f32 %v840_v24, %v462_v26  ;;  %v448_v32 = vmul.f32 %v1391_v63, %v343_v55 }
  0xe1   :  { %v819_v4 = vadd.f32 %v2281_v20, %v445_v21 }
  0xe2   :  { %v566_v22 = vpop.permute.xlu1 %565  ;;  %v842_v3 = vadd.f32 %v841_v61, %v463_v44 }
  0xe3   :  { %v563_v56 = vpop.permute.xlu0 %562  ;;  %vm638_vm7 = vcmp.eq.s32.totalorder %v566_v22, 1  ;;  %v820_v53 = vadd.f32 %v819_v4, %v446_v40 }
  0xe4   :  { %v670_v54 = vsel %vm638_vm7, %v446_v40, -1e+30  ;;  %vm637_vm8 = vcmp.eq.s32.totalorder %v563_v56, 1  ;;  %v843_v35 = vadd.f32 %v842_v3, %v464_v42 }
  0xe5   :  { %v821_v2 = vadd.f32 %v820_v53, %v447_v48  ;;  %v700_v60 = vmax.f32 %v2313_v1, %v670_v54  ;;  %v669_v51 = vsel %vm637_vm8, %v445_v21, -1e+30  ;;  %v1578_v54 = vmov 1983009808  }
  0xe6   :  { %v2330_v5 = vpop.permute.xlu1 %613  ;;  %v699_v23 = vmax.f32 %v2316_v38, %v669_v51 }
  0xe7   :  { %v2332_v34 = vpop.permute.xlu0 %610  ;;  %v822_v20 = vadd.f32 %v821_v2, %v448_v32  ;;  %vm654_vm11 = vcmp.eq.s32.totalorder %v2330_v5, 1 }
  0xe8   :  { %vm653_vm12 = vcmp.eq.s32.totalorder %v2332_v34, 1  ;;  %v686_v22 = vsel %vm654_vm11, %v462_v26, -1e+30 }
  0xe9   :  { %v685_v1 = vsel %vm653_vm12, %v461_v16, -1e+30  ;;  %v721_v9 = vmax.f32 %v2319_v45, %v686_v22 }
  0xea   :  { %v428_v15 = vpop.permute.xlu1 %427  ;;  %v720_v38 = vmax.f32 %v2322_v49, %v685_v1  ;;  %v866_v1 = vld [vmem:[%s2405_s3] sm:$0xf] }
  0xeb   :  { %v348_v18 = vpop.permute.xlu0 %347  ;;  %v465_v29 = vmul.f32 %v1426_v46, %v428_v15 }
  0xec   :  { %v449_v12 = vmul.f32 %v1394_v52, %v348_v18 }
  0xed   :  { %v844_v7 = vadd.f32 %v843_v35, %v465_v29 }
  0xee   :  { %v572_v41 = vpop.permute.xlu1 %571  ;;  %v823_v36 = vadd.f32 %v822_v20, %v449_v12 }
  0xef   :  { %v569_v14 = vpop.permute.xlu0 %568  ;;  %vm640_vm9 = vcmp.eq.s32.totalorder %v572_v41, 1 }
  0xf0   :  { %vm639_vm10 = vcmp.eq.s32.totalorder %v569_v14, 1  ;;  %v672_v13 = vsel %vm640_vm9, %v448_v32, -1e+30 }
  0xf1   :  { %v671_v17 = vsel %vm639_vm10, %v447_v48, -1e+30  ;;  %v702_v56 = vmax.f32 %v700_v60, %v672_v13 }
  0xf2   :  { %v620_v19 = vpop.permute.xlu1 %619  ;;  %v701_v5 = vmax.f32 %v699_v23, %v671_v17 }
  0xf3   :  { %v617_v30 = vpop.permute.xlu0 %616  ;;  %vm656_vm13 = vcmp.eq.s32.totalorder %v620_v19, 1 }
  0xf4   :  { %vm655_vm14 = vcmp.eq.s32.totalorder %v617_v30, 1  ;;  %v688_v59 = vsel %vm656_vm13, %v464_v42, -1e+30  ;;  %v878_v30 = vlaneseq }
  0xf5   :  { %v687_v62 = vsel %vm655_vm14, %v463_v44, -1e+30  ;;  %v723_v21 = vmax.f32 %v721_v9, %v688_v59  ;;  %v1543_v9 = vld [vmem:[%s2410_s8 + $0x10] sm:$0xff]  }
  0xf6   :  { %v433_v50 = vpop.permute.xlu1 %432  ;;  %v722_v27 = vmax.f32 %v720_v38, %v687_v62  ;;  %v879_v51 = vshrl.u32 %v878_v30, 7  ;;  %v1540_v62 = vld [vmem:[%s2408_s6 + $0x8] sm:$0xff]  }
  0xf7   :  { %v466_v33 = vmul.f32 %v1427_v0, %v433_v50  ;;  %v353_v43 = vpop.permute.xlu0 %352 }
  0xf8   :  { %v450_v47 = vmul.f32 %v1395_v25, %v353_v43 }
  0xf9   :  { %v845_v55 = vadd.f32 %v844_v7, %v466_v33 }
  0xfa   :  { %v824_v11 = vadd.f32 %v823_v36, %v450_v47  ;;  %v578_v57 = vpop.permute.xlu1 %577 }
  0xfb   :  { %v846_v34 = vrot.slane %v845_v55, 4  ;;  %vm642_vm15 = vcmp.eq.s32.totalorder %v578_v57, 1  ;;  %v575_v10 = vpop.permute.xlu0 %574 }
  0xfc   :  { %v825_v8 = vrot.slane %v824_v11, 4  ;;  %v674_v39 = vsel %vm642_vm15, %v450_v47, -1e+30  ;;  %vm641_vm1 = vcmp.eq.s32.totalorder %v575_v10, 1  ;;  %v1539_v10 = vld [vmem:[%s2408_s6 + $0x10] sm:$0xff]  }
  0xfd   :  { %v704_v15 = vmax.f32 %v702_v56, %v674_v39  ;;  %v673_v58 = vsel %vm641_vm1, %v449_v12, -1e+30  ;;  %v847_v28 = vadd.f32 %v846_v34, %v845_v55  ;;  %1490 = vmatpush3.bf16.msra.mxu1 %v1539_v10  ;;  %v1542_v39 = vld [vmem:[%s2410_s8 + $0x18] sm:$0xff]  }
  0xfe   :  { %v703_v18 = vmax.f32 %v701_v5, %v673_v58  ;;  %v626_v16 = vpop.permute.xlu1 %625  ;;  %v826_v31 = vadd.f32 %v825_v8, %v824_v11  ;;  %1491 = vmatprep.subr.bf16.mxu1 %v1577_v6  ;;  %v1541_v8 = vld [vmem:[%s2408_s6] sm:$0xff]  }
  0xff   :  { %vm658_vm2 = vcmp.eq.s32.totalorder %v626_v16, 1  ;;  %v623_v26 = vpop.permute.xlu0 %622  ;;  %v848_v46 = vrot.slane %v847_v28, 2 }
 0x100   :  { %v705_v37 = vmax.f32 %v703_v18, %v704_v15  ;;  %v690_v40 = vsel %vm658_vm2, %v466_v33, -1e+30  ;;  %vm657_vm3 = vcmp.eq.s32.totalorder %v623_v26, 1  ;;  %v827_v14 = vrot.slane %v826_v31, 2  ;;  %v1332_v15 = vld [vmem:[%s2407_s5] ss:$0 sm:$0xff] }
 0x101   :  { %v725_v63 = vmax.f32 %v723_v21, %v690_v40  ;;  %v689_v41 = vsel %vm657_vm3, %v465_v29, -1e+30  ;;  %v849_v42 = vadd.f32 %v848_v46, %v847_v28  ;;  %v876_v29 = vunpack.c.l.s4 %v1578_v54  ;;  %1492 = vmatpush3.bf16.msra.mxu1 %v1540_v62  ;;  %v1349_v40 = vld [vmem:[%s2409_s7] ss:$0 sm:$0xff]  ;;  %s1580_s7 = smov [#allocation2]  }
 0x102   :  { %v706_v24 = vrot.slane %v705_v37, 4  ;;  %v724_v44 = vmax.f32 %v722_v27, %v689_v41  ;;  %v860_v45 = vpop.permute.xlu1 %859  ;;  %v828_v53 = vadd.f32 %v827_v14, %v826_v31  ;;  %1493 = vmatprep.subr.bf16.mxu1 %v1577_v6  ;;  %v1544_v31 = vld [vmem:[%s2410_s8 + $0x8] sm:$0xff]  }
 0x103   :  { %1546 = vrcp.f32 %v860_v45  ;;  %v855_v49 = vpop.permute.xlu0 %854  ;;  %v850_v3 = vrot.slane %v849_v42, 1  ;;  %v877_v60 = vunpack.c.0.s8 %v876_v29 }
 0x104   :  { %v707_v4 = vmax.f32 %v705_v37, %v706_v24  ;;  %v726_v48 = vmax.f32 %v724_v44, %v725_v63  ;;  %1548 = vrcp.f32 %v855_v49  ;;  %v829_v2 = vrot.slane %v828_v53, 1  ;;  %v1545_v37 = vld [vmem:[%s2410_s8] sm:$0xff]   ;;  %s1290_s8 = sshll.u32 %s1580_s7, 4  ;;  %s1291_s8 = int_to_ptr.vmem [resolvable:$true] %s1290_s8 }
 0x105   :  { %v851_v20 = vadd.f32 %v850_v3, %v849_v42  ;;  %v880_v23 = vsub.s32 %v877_v60, %v879_v51  ;;  %1494 = vmatpush3.bf16.msra.mxu1 %v1541_v8  ;;  %p1559_p1 = scmp.lt.s32.totalorder %s1291_s8, %s1291_s8 }
 0x106   :  { %v708_v52 = vrot.slane %v707_v4, 2  ;;  %v727_v61 = vrot.slane %v726_v48, 4  ;;  %v830_v7 = vadd.f32 %v829_v2, %v828_v53 }
 0x108   :  { %v709_v32 = vmax.f32 %v707_v4, %v708_v52  ;;  %v728_v19 = vmax.f32 %v726_v48, %v727_v61 }
 0x10a   :  { %v729_v0 = vrot.slane %v728_v19, 2  ;;  %v710_v12 = vrot.slane %v709_v32, 1 }
 0x10c   :  { %v730_v25 = vmax.f32 %v728_v19, %v729_v0  ;;  %v711_v13 = vmax.f32 %v709_v32, %v710_v12 }
 0x10e   :  { %v731_v35 = vrot.slane %v730_v25, 1 }
 0x110   :  { %v1547_v50 = vpop.eup %1546  ;;  %v732_v33 = vmax.f32 %v730_v25, %v731_v35 }
 0x111   :  { %v1549_v43 = vpop.eup %1548  ;;  %v865_v36 = vmul.f32 %v1547_v50, %v851_v20 }
 0x112   :  { %v863_v17 = vmul.f32 %v1549_v43, %v830_v7  ;;  %v870_v47 = vsel %vm869_vm0, %v732_v33, %v711_v13 }
 0x114   :  { %v873_v55 = vsel %vm869_vm0, %v865_v36, %v863_v17 }
 0x115   :  { %v874_v22 = vcombine.low %v870_v47, %v873_v55 }
 0x117   :  { %v881_v56 = vrot.slane %v874_v22, %v880_v23 }
 0x119   :  { %v883_v11 = vadd.f32 %v881_v56, %v866_v1 }
 0x11b   :  { %v891_v57 = vrot.slane %v883_v11, %v880_v23 }
 0x11d   :  { %v892_v5 = vcombine.high %v891_v57, %v891_v57  ;;  %v895_v34 = vpack.c.bf16 %v891_v57, %v891_v57 }
 0x11f   :  { %v896_v59 = vpack.c.bf16 %v892_v5, %v892_v5 }
 0x121   :  { %1064 = vmatprep.mubr.bf16.mxu0 %v896_v59 }
 0x122   :  { %1065 = vmatmul.mubr.bf16.vlgmr.msra.gmra.mxu0 %v895_v34 }
 0x123   :  { %1507 = vmatprep.mubr.msk.bf16.mxu0 %vm1579_vm4, %v1577_v6  ;;  %1500 = vmatpush3.bf16.msra.mxu0 %v1542_v39 }
 0x124   :  { %1501 = vmatprep.subr.bf16.mxu0 %v1577_v6 }
 0x127   :  { %1502 = vmatpush3.bf16.msra.mxu0 %v1543_v9 }
 0x128   :  { %1503 = vmatprep.subr.bf16.mxu0 %v1577_v6 }
 0x12b   :  { %1504 = vmatpush3.bf16.msra.mxu0 %v1544_v31 }
 0x12c   :  { %1505 = vmatprep.subr.bf16.mxu0 %v1577_v6  ;;  %v1358_v6 = vld [vmem:[%s2411_s9] ss:$0 sm:$0xff]  ;;  %s1554_s9 = scalar_lea.vmem %s1291_s8, 32 }
 0x12d   :  { %p1555_p0 = scmp.ne.s32.totalorder %s1291_s8, %s1554_s9  ;;  %p1560_p2 = scmp.lt.s32.totalorder %s1554_s9, %s1554_s9 }
 0x12f   :  { %1506 = vmatpush3.bf16.msra.mxu0 %v1545_v37  ;;  %p1561_p3 = por %p1560_p2, %p1559_p1 }
 0x131   :  { %p1562_p4 = pnand %p1561_p3, %p1555_p0 }
 0x1e2   :  { %v1459_v38 = vpop.f32.mrf.mxu0 }
 0x1e4   :  { %v1460_v58 = vpop.f32.mrf.mxu0 }
 0x1e5   :  { %v1461_v18 = vadd.f32 %v1460_v58, %v1459_v38 }
 0x1e6   :  { %v1462_v16 = vpop.f32.mrf.mxu0 }
 0x1e7   :  { %v1067_v21 = vadd.f32 %v1461_v18, %v1332_v15 }
 0x1e8   :  { %v1463_v27 = vpop.f32.mrf.mxu0 }
 0x1e9   :  { %v1072_v28 = vmax.f32 %v1067_v21, 0.0 }
 0x1eb   :  { %v1073_v26 = vpack.c.bf16 %v1072_v28, %v1072_v28 }
 0x1ed   :  { %1496 = vmatmul.mubr.bf16.vlgmr.msra.gmra.mxu1 %v1073_v26 }
 0x2ad   :  { %v1179_v63 = vpop.f32.mrf.mxu1 }
 0x2ae   :  { %v1180_v41 = vadd.f32 %v1349_v40, %v1179_v63 }
 0x2af   :  { %v1497_v24 = vpop.f32.mrf.mxu1 }
 0x2b0   :  { %v1185_v44 = vmax.f32 %v1180_v41, 0.0 }
 0x2b1   :  { %v1182_v45 = vpop.f32.mrf.mxu1 }
 0x2b2   :  { %v1186_v46 = vpack.c.bf16 %v1185_v44, %v1185_v44 }
 0x2b3   :  { %v1498_v49 = vpop.f32.mrf.mxu1 }
 0x2b4   :  { %1508 = vmatmul.mubr.msk.bf16.vlgmr.msra.gmra.mxu0 %vm1226_vm5, %v1186_v46 }
 0x374   :  { %v1264_v14 = vpop.f32.mrf.mxu0 }
 0x375   :  { %v1265_v4 = vadd.f32 %v1358_v6, %v1264_v14 }
 0x376   :  { %v1509_v48 = vpop.f32.mrf.mxu0 }
 0x377   :  { %v1271_v52 = vsel %vm1270_vm6, %v1265_v4, -inf }
 0x378   :  { %1272 = vmax.xlane.f32.xlu0 %v1271_v52  ;;  %v1267_v61 = vpop.f32.mrf.mxu0 }
 0x37a   :  { %v1510_v42 = vpop.f32.mrf.mxu0 }
 0x401   :  { %v1273_v53 = vpop.xlane.xlu0 %1272 }
 0x402   :  { %v1274_v32 = vsub.f32 %v1265_v4, %v1273_v53 }
 0x404   :  { %v1275_v19 = vmul.f32 1.442695, %v1274_v32 }
 0x406   :  { %1550 = vpow2.f32 %v1275_v19 }
 0x413   :  { %v1551_v0 = vpop.eup %1550 }
 0x414   :  { %v1277_v3 = vsel %vm1270_vm6, %v1551_v0, 0.0 }
 0x415   :  { %1278 = vadd.xlane.f32.xlu1 %v1277_v3 }
 0x49e   :  { %v1279_v54 = vpop.xlane.xlu1 %1278 }
 0x49f   :  { %1552 = vlog2.f32 %v1279_v54 }
 0x4ac   :  { %v1553_v29 = vpop.eup %1552 }
 0x4ad   :  { %v1281_v30 = vmul.f32 0.6931472, %v1553_v29 }
 0x4af   :  { %v1282_v2 = vsub.f32 %v1274_v32, %v1281_v30 }
 0x4b1   :  { %1283 = vst.msk [vmem:[#allocation2] sm:$0x3] %vm1270_vm6, %v1282_v2 }
 0x4b2   :  { %1565 = shalt.err (!%p1562_p4)
}
 0x4b3   :  { %1293 = dma.vmem_to_hbm [thread:$0]  %s1291_s8, 32, %s2412_s10, [#allocation3]  }
 0x4b4   :  { %1574 = dma.done.wait [#allocation3], 32  }
 0x4b5   :  { %1575 = vsyncadd [#allocation3], 4294967264 }
 0x4b6   :  { %1297 = vsyncpa [#allocation3], 1 }

// kernel: gcn_forward.7
= control target key start
LH: loop header
LB: loop body
LE: loop exit
PB: predicated region body
PF: predicated region fallthrough
CT: control target
= control target key end

     0   :  { %s2849_s0 = inlined_call_operand.vmem [shape: f32[2], index: 0, kind: input, shape index: {}]   ;;  %s2850_s1 = inlined_call_operand.vmem [shape: bf16[2,128,128], index: 1, kind: input, shape index: {}]   ;;  %s2851_s2 = inlined_call_operand.vmem [shape: bf16[256,128], index: 2, kind: input, shape index: {}]   ;;  %s2852_s3 = inlined_call_operand.vmem [shape: f32[256,1], index: 3, kind: input, shape index: {}]   ;;  %s2853_s4 = inlined_call_operand.vmem [shape: f32[2,1,256], index: 4, kind: input, shape index: {}]   ;;  %s2854_s5 = inlined_call_operand.vmem [shape: bf16[256,128], index: 5, kind: input, shape index: {}]   ;;  %s2855_s6 = inlined_call_operand.vmem [shape: f32[8,128], index: 6, kind: input, shape index: {}]   ;;  %s2856_s7 = inlined_call_operand.vmem [shape: bf16[256,128], index: 7, kind: output, shape index: {0}]   ;;  %s2857_s8 = inlined_call_operand.vmem [shape: f32[256,1], index: 8, kind: output, shape index: {1}]   ;;  %s2858_s9 = inlined_call_operand.vmem [shape: f32[2,1,256], index: 9, kind: output, shape index: {2}]  }
   0x1   :  { %s15_s11 = sshll.u32 %s2849_s0, 4  ;;  %s16_s11 = int_to_ptr.vmem [resolvable:$true] %s15_s11 }
   0x2   :  { %s2167_s12 = scalar_lea.vmem %s16_s11, 16  ;;  %p2172_p1 = scmp.lt.s32.totalorder %s16_s11, %s16_s11 }
   0x3   :  { %p2168_p0 = scmp.ne.s32.totalorder %s16_s11, %s2167_s12  ;;  %p2173_p2 = scmp.lt.s32.totalorder %s2167_s12, %s2167_s12 }
   0x5   :  { %p2174_p3 = por %p2173_p2, %p2172_p1 }
   0x7   :  { %p2175_p4 = pnand %p2174_p3, %p2168_p0 }
   0x9   :  { %2178 = shalt.err (!%p2175_p4)  }
   0xa   :  { %s2189_s13 = smov [#allocation3]  }
   0xb   :  { %18 = dma.vmem_to_smem %s16_s11, 16, %s2189_s13, [#allocation2] }
   0xc   :  { %2183 = dma.done.wait [#allocation2], 16 }
   0xd   :  { %2184 = vsyncadd [#allocation2], 4294967280 }
   0xe   :  { %20 = sfence }
   0xf   :  { %s2247_s14 = smov 0  }
  0x10 LB: > { %s2253_s0 = sadd.s32 4294967295, %s2187_s14   ;;  %p1754_p5 = scmp.ge.s32.totalorder %s2187_s14, 1  ;;  %s2187_s14 = sphi %s2247_s14, %s26_s14  }
  0x11   : > { %p305_p6 = scmp.lt.s32.totalorder %s2187_s14, 3 }
  0x13   : > { %p306_p7 = pnand %p1754_p5, %p305_p6 }
  0x14   : > { %s1757_s15 = sshll.u32 (!%p306_p7), %s2253_s0, 4  ;;  %s400_s16 = sld [smem:[#allocation3 + %s2253_s0]] (!%p306_p7) }
  0x15   : > { %309 = sbr.rel (%p306_p7) target bundleno = 793 (0x319), region = 44  ;;  %p368_p8 = scmp.lt.s32.totalorder (!%p306_p7), %s1757_s15, 31 }
  0x16   : > { %p362_p9 = scmp.lt.s32.totalorder (!%p306_p7), %s2253_s0, 1  ;;  %s2192_s27 = smov (!%p306_p7), 1.0  }
  0x1a   : > { %v2190_v0 = vmov 0   ;;  %s2872_s15 = smov (!%p368_p8, %s1757_s15), 31  ;;  %v2271_v1 = vstv %s400_s16  ;;  %v2191_v8 = vmov 0.0   ;;  %v2109_v21 = vld [vmem:[%s2854_s5 + $0x78] sm:$0xff]   ;;  %v2110_v22 = vld [vmem:[%s2854_s5 + $0x70] sm:$0xff]   ;;  %v2111_v33 = vld [vmem:[%s2854_s5 + $0x68] sm:$0xff]  }
  0x1b   : > { %2108 = vset.pattern.permute.xlu1 %v2190_v0  ;;  %2107 = vset.pattern.permute.xlu0 %v2190_v0  ;;  %s1760_s17 = sshll.u32 %s2872_s15, 3  ;;  %vm743_vm10 = vcmask 7168   ;;  %v2112_v42 = vld [vmem:[%s2854_s5 + $0x60] sm:$0xff]   ;;  %v2113_v54 = vld [vmem:[%s2854_s5 + $0x58] sm:$0xff]   ;;  %v2114_v61 = vld [vmem:[%s2854_s5 + $0x50] sm:$0xff]   ;;  %s2874_s0 = smov (!%p362_p9, %s2253_s0), 1 }
  0x1c   : > { %s2269_s20 = scalar_lea.vmem %s2852_s3, %s1760_s17  ;;  %2012 = vmatprep.subr.bf16.mxu1 %v2109_v21  ;;  %s1829_s19 = sshll.u32 %s2874_s0, 6 }
  0x1d   : > { %v415_v2 = vld [vmem:[%s2269_s20 + $0x70] sm:$0xff]  ;;  %v413_v3 = vld [vmem:[%s2269_s20 + $0x60] sm:$0xff]  ;;  %v416_v4 = vld [vmem:[%s2269_s20 + $0x78] sm:$0xff]  ;;  %2013 = vmatpush3.bf16.msra.mxu1 %v2109_v21  ;;  %s2439_s22 = scalar_lea.vmem %s2850_s1, %s1829_s19  ;;  %s1758_s23 = sshll.u32 %s2872_s15, 2 }
  0x1e   : > { %vm432_vm0 = vcmp.ge.f32.partialorder %v415_v2, %v2271_v1  ;;  %vm430_vm1 = vcmp.ge.f32.partialorder %v413_v3, %v2271_v1  ;;  %vm433_vm2 = vcmp.ge.f32.partialorder %v416_v4, %v2271_v1  ;;  %v414_v5 = vld [vmem:[%s2269_s20 + $0x68] sm:$0xff]  ;;  %v412_v6 = vld [vmem:[%s2269_s20 + $0x58] sm:$0xff]  ;;  %v411_v7 = vld [vmem:[%s2269_s20 + $0x50] sm:$0xff]  ;;  %2014 = vmatprep.subr.bf16.mxu1 %v2110_v22  ;;  %s2514_s26 = scalar_lea.vmem %s2851_s2, %s1758_s23  ;;  %s1761_s29 = sshll.u32 %s2874_s0, 1 }
  0x1f   : > { %v2283_v9 = vsel %vm432_vm0, 1.0, %v2191_v8  ;;  %v2286_v10 = vsel %vm430_vm1, 1.0, %v2191_v8  ;;  %v2289_v11 = vsel %vm433_vm2, 1.0, %v2191_v8  ;;  %vm431_vm3 = vcmp.ge.f32.partialorder %v414_v5, %v2271_v1  ;;  %v410_v15 = vld [vmem:[%s2269_s20 + $0x48] sm:$0xff]  ;;  %v409_v16 = vld [vmem:[%s2269_s20 + $0x40] sm:$0xff]  ;;  %v408_v23 = vld [vmem:[%s2269_s20 + $0x38] sm:$0xff]  ;;  %s382_s11 = scalar_lea.vmem %s2853_s4, %s1761_s29  ;;  %s398_s16 = scalar_lea.vmem %s2858_s9, %s1761_s29 }
  0x20   : > { %v512_v12 = vmul.f32 %v2283_v9, %v415_v2  ;;  %v510_v13 = vmul.f32 %v2286_v10, %v413_v3  ;;  %v2295_v14 = vsel %vm431_vm3, 1.0, %v2191_v8  ;;  %vm429_vm4 = vcmp.ge.f32.partialorder %v412_v6, %v2271_v1  ;;  %v407_v24 = vld [vmem:[%s2269_s20 + $0x30] sm:$0xff]  ;;  %v2322_v27 = vld [vmem:[%s2269_s20 + $0x8] sm:$0xff]  ;;  %v2333_v32 = vld [vmem:[%s2269_s20] sm:$0xff]  ;;  %s2780_s30 = scalar_lea.vmem %s2857_s8, %s1760_s17 }
  0x21   : > { %vm428_vm5 = vcmp.ge.f32.partialorder %v411_v7, %v2271_v1  ;;  %v513_v17 = vmul.f32 %v2289_v11, %v416_v4  ;;  %v511_v18 = vmul.f32 %v2295_v14, %v414_v5  ;;  %v2304_v19 = vsel %vm429_vm4, 1.0, %v2191_v8  ;;  %v406_v30 = vld [vmem:[%s2269_s20 + $0x28] sm:$0xff]  ;;  %v403_v31 = vld [vmem:[%s2269_s20 + $0x10] sm:$0xff]  ;;  %v405_v34 = vld [vmem:[%s2269_s20 + $0x20] sm:$0xff]  ;;  %2015 = vmatpush3.bf16.msra.mxu1 %v2110_v22 }
  0x22   : > { %586 = vperm.xlu0 %2107, %v512_v12   ;;  %576 = vperm.xlu1 %2108, %v510_v13   ;;  %v2307_v20 = vsel %vm428_vm5, 1.0, %v2191_v8  ;;  %vm427_vm6 = vcmp.ge.f32.partialorder %v410_v15, %v2271_v1  ;;  %vm426_vm7 = vcmp.ge.f32.partialorder %v409_v16, %v2271_v1  ;;  %v509_v25 = vmul.f32 %v2304_v19, %v412_v6  ;;  %v404_v35 = vld [vmem:[%s2269_s20 + $0x18] sm:$0xff]  ;;  %v2115_v5 = vld [vmem:[%s2854_s5 + $0x48] sm:$0xff]  }
  0x23   : > { %v508_v26 = vmul.f32 %v2307_v20, %v411_v7  ;;  %v2325_v28 = vsel %vm427_vm6, 1.0, %v2191_v8  ;;  %v2328_v29 = vsel %vm426_vm7, 1.0, %v2191_v8  ;;  %vm425_vm8 = vcmp.ge.f32.partialorder %v408_v23, %v2271_v1  ;;  %2016 = vmatprep.subr.bf16.mxu1 %v2111_v33 }
  0x24   : > { %vm424_vm9 = vcmp.ge.f32.partialorder %v407_v24, %v2271_v1  ;;  %vm419_vm11 = vcmp.ge.f32.partialorder %v2322_v27, %v2271_v1  ;;  %v507_v36 = vmul.f32 %v2325_v28, %v410_v15  ;;  %v506_v37 = vmul.f32 %v2328_v29, %v409_v16  ;;  %v2116_v15 = vld [vmem:[%s2854_s5 + $0x40] sm:$0xff]  }
  0x25   : > { %vm420_vm12 = vcmp.ge.f32.partialorder %v403_v31, %v2271_v1  ;;  %v2348_v38 = vsel %vm425_vm8, 1.0, %v2191_v8  ;;  %v2351_v39 = vsel %vm424_vm9, 1.0, %v2191_v8  ;;  %v2354_v40 = vsel %vm419_vm11, 1.0, %v2191_v8  ;;  %2017 = vmatpush3.bf16.msra.mxu1 %v2111_v33 }
  0x26   : > { %591 = vperm.xlu0 %2107, %v513_v17   ;;  %581 = vperm.xlu1 %2108, %v511_v18   ;;  %vm418_vm13 = vcmp.ge.f32.partialorder %v2333_v32, %v2271_v1  ;;  %vm423_vm14 = vcmp.ge.f32.partialorder %v406_v30, %v2271_v1  ;;  %vm422_vm15 = vcmp.ge.f32.partialorder %v405_v34, %v2271_v1  ;;  %v745_v41 = vsel %vm743_vm10, %v2354_v40, 0.0 }
  0x27   : > { %vm421_vm0 = vcmp.ge.f32.partialorder %v404_v35, %v2271_v1  ;;  %v2367_v43 = vsel %vm420_vm12, 1.0, %v2191_v8  ;;  %v2370_v44 = vsel %vm418_vm13, 1.0, %v2191_v8  ;;  %v505_v45 = vmul.f32 %v2348_v38, %v408_v23  ;;  %2018 = vmatprep.subr.bf16.mxu1 %v2112_v42 }
  0x28   : > { %v504_v46 = vmul.f32 %v2351_v39, %v407_v24  ;;  %v747_v47 = vsel %vm743_vm10, %v2367_v43, 0.0  ;;  %v744_v48 = vsel %vm743_vm10, %v2370_v44, 0.0  ;;  %v2379_v49 = vsel %vm423_vm14, 1.0, %v2191_v8 }
  0x29   : > { %v2382_v50 = vsel %vm422_vm15, 1.0, %v2191_v8  ;;  %v2385_v51 = vsel %vm421_vm0, 1.0, %v2191_v8  ;;  %v746_v52 = vadd.f32 %v745_v41, %v744_v48  ;;  %v503_v56 = vmul.f32 %v2379_v49, %v406_v30  ;;  %2019 = vmatpush3.bf16.msra.mxu1 %v2112_v42 }
  0x2a   : > { %571 = vperm.xlu1 %2108, %v509_v25   ;;  %566 = vperm.xlu0 %2107, %v508_v26   ;;  %v749_v53 = vsel %vm743_vm10, %v2385_v51, 0.0  ;;  %v502_v57 = vmul.f32 %v2382_v50, %v405_v34  ;;  %v751_v58 = vsel %vm743_vm10, %v2382_v50, 0.0  ;;  %v753_v60 = vsel %vm743_vm10, %v2379_v49, 0.0  ;;  %v2117_v25 = vld [vmem:[%s2439_s22] sm:$0xff]  }
  0x2b   : > { %v748_v55 = vadd.f32 %v747_v47, %v746_v52  ;;  %2020 = vmatprep.subr.bf16.mxu1 %v2113_v54  ;;  %v755_v63 = vsel %vm743_vm10, %v2351_v39, 0.0  ;;  %v501_v1 = vmul.f32 %v2385_v51, %v404_v35  ;;  %v500_v2 = vmul.f32 %v2367_v43, %v403_v31  ;;  %1996 = vmatprep.mubr.bf16.mxu0 %v2117_v25 }
  0x2c   : > { %v757_v4 = vsel %vm743_vm10, %v2348_v38, 0.0  ;;  %v759_v7 = vsel %vm743_vm10, %v2328_v29, 0.0  ;;  %v499_v8 = vmul.f32 %v2354_v40, %v2322_v27  ;;  %v498_v12 = vmul.f32 %v2370_v44, %v2333_v32 }
  0x2d   : > { %v750_v59 = vadd.f32 %v749_v53, %v748_v55  ;;  %2021 = vmatpush3.bf16.msra.mxu1 %v2113_v54  ;;  %vm610_vm1 = vcmp.gt.f32.partialorder %v2370_v44, 0.0  ;;  %v761_v17 = vsel %vm743_vm10, %v2325_v28, 0.0  ;;  %vm611_vm2 = vcmp.gt.f32.partialorder %v2354_v40, 0.0 }
  0x2e   : > { %561 = vperm.xlu1 %2108, %v507_v36   ;;  %556 = vperm.xlu0 %2107, %v506_v37   ;;  %v626_v18 = vsel %vm610_vm1, 1, %v2190_v0  ;;  %vm612_vm3 = vcmp.gt.f32.partialorder %v2367_v43, 0.0  ;;  %v765_v22 = vsel %vm743_vm10, %v2304_v19, 0.0  ;;  %v763_v23 = vsel %vm743_vm10, %v2307_v20, 0.0 }
  0x2f   : > { %v752_v62 = vadd.f32 %v751_v58, %v750_v59  ;;  %2022 = vmatprep.subr.bf16.mxu1 %v2114_v61  ;;  %v627_v24 = vsel %vm611_vm2, 1, %v2190_v0  ;;  %v628_v26 = vsel %vm612_vm3, 1, %v2190_v0  ;;  %vm613_vm4 = vcmp.gt.f32.partialorder %v2385_v51, 0.0 }
  0x30   : > { %v767_v31 = vsel %vm743_vm10, %v2286_v10, 0.0  ;;  %v629_v32 = vsel %vm613_vm4, 1, %v2190_v0  ;;  %vm614_vm5 = vcmp.gt.f32.partialorder %v2382_v50, 0.0  ;;  %v769_v34 = vsel %vm743_vm10, %v2295_v14, 0.0 }
  0x31   : > { %v754_v3 = vadd.f32 %v753_v60, %v752_v62  ;;  %2023 = vmatpush3.bf16.msra.mxu1 %v2114_v61  ;;  %v630_v35 = vsel %vm614_vm5, 1, %v2190_v0  ;;  %vm615_vm6 = vcmp.gt.f32.partialorder %v2379_v49, 0.0  ;;  %v771_v37 = vsel %vm743_vm10, %v2283_v9, 0.0  ;;  %v1924_v60 = vld [vmem:[%s2514_s26 + $0x38] sm:$0xff]   ;;  %v1923_v61 = vld [vmem:[%s2514_s26 + $0x30] sm:$0xff]  }
  0x32   : > { %551 = vperm.xlu1 %2108, %v505_v45   ;;  %546 = vperm.xlu0 %2107, %v504_v46   ;;  %v631_v41 = vsel %vm615_vm6, 1, %v2190_v0  ;;  %vm616_vm7 = vcmp.gt.f32.partialorder %v2351_v39, 0.0  ;;  %v773_v45 = vsel %vm743_vm10, %v2289_v11, 0.0  ;;  %vm617_vm8 = vcmp.gt.f32.partialorder %v2348_v38, 0.0 }
  0x33   : > { %v756_v6 = vadd.f32 %v755_v63, %v754_v3  ;;  %2024 = vmatprep.subr.bf16.mxu1 %v2115_v5  ;;  %v632_v46 = vsel %vm616_vm7, 1, %v2190_v0  ;;  %v633_v48 = vsel %vm617_vm8, 1, %v2190_v0  ;;  %vm2859_vm9 = vcmp.gt.f32.partialorder %v2325_v28, 0.0 }
  0x34   : > { %v635_v52 = vsel %vm2859_vm9, 1, %v2190_v0  ;;  %vm620_vm11 = vcmp.gt.f32.partialorder %v2307_v20, 0.0  ;;  %vm621_vm12 = vcmp.gt.f32.partialorder %v2304_v19, 0.0  ;;  %vm2863_vm13 = vcmp.gt.f32.partialorder %v2286_v10, 0.0 }
  0x35   : > { %v758_v13 = vadd.f32 %v757_v4, %v756_v6  ;;  %2025 = vmatpush3.bf16.msra.mxu1 %v2115_v5  ;;  %v636_v53 = vsel %vm620_vm11, 1, %v2190_v0  ;;  %v637_v54 = vsel %vm621_vm12, 1, %v2190_v0  ;;  %v638_v55 = vsel %vm2863_vm13, 1, %v2190_v0  ;;  %v1922_v4 = vld [vmem:[%s2514_s26 + $0x28] sm:$0xff]  }
  0x36   : > { %541 = vperm.xlu1 %2108, %v503_v56   ;;  %536 = vperm.xlu0 %2107, %v502_v57   ;;  %vm2862_vm14 = vcmp.gt.f32.partialorder %v2295_v14, 0.0  ;;  %vm2864_vm15 = vcmp.gt.f32.partialorder %v2328_v29, 0.0  ;;  %vm2861_vm0 = vcmp.gt.f32.partialorder %v2283_v9, 0.0  ;;  %vm2860_vm9 = vcmp.gt.f32.partialorder %v2289_v11, 0.0 }
  0x37   : > { %v760_v16 = vadd.f32 %v759_v7, %v758_v13  ;;  %2026 = vmatprep.subr.bf16.mxu1 %v2116_v15  ;;  %v639_v56 = vsel %vm2862_vm14, 1, %v2190_v0  ;;  %v634_v57 = vsel %vm2864_vm15, 1, %v2190_v0  ;;  %v640_v58 = vsel %vm2861_vm0, 1, %v2190_v0 }
  0x38   : > { %v641_v59 = vsel %vm2860_vm9, 1, %v2190_v0  ;;  %v1877_v0 = vunpack.c.h.bf16 %v1924_v60  ;;  %v1873_v3 = vunpack.c.h.bf16 %v1923_v61  ;;  %v1869_v7 = vunpack.c.h.bf16 %v1922_v4 }
  0x39   : > { %v762_v21 = vadd.f32 %v761_v17, %v760_v16  ;;  %2027 = vmatpush3.bf16.msra.mxu1 %v2116_v15  ;;  %v1921_v17 = vld [vmem:[%s2514_s26 + $0x20] sm:$0xff]  }
  0x3a   : > { %531 = vperm.xlu1 %2108, %v501_v1   ;;  %526 = vperm.xlu0 %2107, %v500_v2   ;;  %v1876_v1 = vunpack.c.l.bf16 %v1924_v60  ;;  %v1872_v2 = vunpack.c.l.bf16 %v1923_v61 }
  0x3b   : > { %v764_v27 = vadd.f32 %v763_v23, %v762_v21  ;;  %v1865_v23 = vunpack.c.h.bf16 %v1921_v17 }
  0x3d   : > { %v766_v30 = vadd.f32 %v765_v22, %v764_v27  ;;  %v1864_v27 = vunpack.c.l.bf16 %v1921_v17 }
  0x3e   : > { %521 = vperm.xlu1 %2108, %v499_v8   ;;  %516 = vperm.xlu0 %2107, %v498_v12   ;;  %v1868_v8 = vunpack.c.l.bf16 %v1922_v4 }
  0x3f   : > { %v768_v33 = vadd.f32 %v767_v31, %v766_v30  ;;  %v1920_v30 = vld [vmem:[%s2514_s26 + $0x18] sm:$0xff]  }
  0x41   : > { %v770_v36 = vadd.f32 %v769_v34, %v768_v33  ;;  %v1861_v33 = vunpack.c.h.bf16 %v1920_v30 }
  0x42   : > { %643 = vperm.xlu1 %2108, %v626_v18  }
  0x43   : > { %v772_v42 = vadd.f32 %v771_v37, %v770_v36  ;;  %v1860_v37 = vunpack.c.l.bf16 %v1920_v30 }
  0x45   : > { %v774_v47 = vadd.f32 %v773_v45, %v772_v42 }
  0x46   : > { %646 = vperm.xlu1 %2108, %v627_v24  }
  0x4a   : > { %649 = vperm.xlu1 %2108, %v628_v26  }
  0x4e   : > { %652 = vperm.xlu1 %2108, %v629_v32  }
  0x52   : > { %655 = vperm.xlu1 %2108, %v630_v35  }
  0x56   : > { %658 = vperm.xlu1 %2108, %v631_v41   ;;  %v1919_v41 = vld [vmem:[%s2514_s26 + $0x10] sm:$0xff]  }
  0x5a   : > { %661 = vperm.xlu1 %2108, %v632_v46   ;;  %v1857_v46 = vunpack.c.h.bf16 %v1919_v41 }
  0x5d   : > { %775 = vadd.xlane.f32.xlu0 %v774_v47 }
  0x5e   : > { %664 = vperm.xlu1 %2108, %v633_v48  }
  0x62   : > { %670 = vperm.xlu1 %2108, %v635_v52  }
  0x66   : > { %673 = vperm.xlu1 %2108, %v636_v53   ;;  %v1856_v53 = vunpack.c.l.bf16 %v1919_v41 }
  0x6a   : > { %676 = vperm.xlu1 %2108, %v637_v54   ;;  %v1918_v54 = vld [vmem:[%s2514_s26 + $0x8] sm:$0xff]  }
  0x6b   : > { %v1852_v61 = vunpack.c.l.bf16 %v1918_v54 }
  0x6e   : > { %679 = vperm.xlu1 %2108, %v638_v55  }
  0x72   : > { %682 = vperm.xlu1 %2108, %v639_v56  }
  0x73   : > { %667 = vperm.xlu0 %2107, %v634_v57   ;;  %v1853_v57 = vunpack.c.h.bf16 %v1918_v54 }
  0x76   : > { %685 = vperm.xlu1 %2108, %v640_v58  }
  0x77   : > { %688 = vperm.xlu0 %2107, %v641_v59  }
  0x9d   : > { %v587_v62 = vpop.permute.xlu0 %586  ;;  %v577_v63 = vpop.permute.xlu1 %576 }
  0x9e   : > { %v2519_v12 = vmul.f32 %v1876_v1, %v587_v62  ;;  %v2521_v13 = vmul.f32 %v1872_v2, %v577_v63  ;;  %v1847_v62 = vld [vmem:[%s2514_s26] sm:$0xff]  }
  0x9f   : > { %v1849_v2 = vunpack.c.h.bf16 %v1847_v62 }
  0xa1   : > { %v592_v5 = vpop.permute.xlu0 %591  ;;  %v582_v6 = vpop.permute.xlu1 %581 }
  0xa2   : > { %v2523_v15 = vmul.f32 %v1877_v0, %v592_v5  ;;  %v2525_v16 = vmul.f32 %v1873_v3, %v582_v6  ;;  %v1848_v5 = vunpack.c.l.bf16 %v1847_v62 }
  0xa4   : > { %v2530_v18 = vpack.c.bf16 %v2523_v15, %v2519_v12  ;;  %v2539_v26 = vpack.c.bf16 %v2525_v16, %v2521_v13 }
  0xa5   : > { %v572_v21 = vpop.permute.xlu1 %571  ;;  %v567_v22 = vpop.permute.xlu0 %566 }
  0xa6   : > { %v2532_v24 = vmul.f32 %v1869_v7, %v572_v21  ;;  %v2534_v25 = vmul.f32 %v1868_v8, %v567_v22  ;;  %1980 = vmatprep.subr.bf16.mxu0 %v2530_v18 }
  0xa7   : > { %1981 = vmatpush3.bf16.msra.mxu0 %v2530_v18 }
  0xa8   : > { %1982 = vmatprep.subr.bf16.mxu0 %v2539_v26  ;;  %v2550_v36 = vpack.c.bf16 %v2532_v24, %v2534_v25 }
  0xa9   : > { %v562_v31 = vpop.permute.xlu1 %561  ;;  %v557_v32 = vpop.permute.xlu0 %556 }
  0xaa   : > { %v2544_v34 = vmul.f32 %v1865_v23, %v562_v31  ;;  %v2546_v35 = vmul.f32 %v1864_v27, %v557_v32  ;;  %v2125_v31 = vld [vmem:[%s2854_s5 + $0x38] sm:$0xff]  }
  0xab   : > { %1983 = vmatpush3.bf16.msra.mxu0 %v2539_v26  ;;  %2076 = vmatprep.subr.bf16.mxu1 %v2125_v31 }
  0xac   : > { %1984 = vmatprep.subr.bf16.mxu0 %v2550_v36  ;;  %v854_v52 = vpack.c.bf16 %v2544_v34, %v2546_v35 }
  0xad   : > { %v552_v42 = vpop.permute.xlu1 %551  ;;  %v547_v45 = vpop.permute.xlu0 %546 }
  0xae   : > { %v2555_v47 = vmul.f32 %v1861_v33, %v552_v42  ;;  %v2557_v48 = vmul.f32 %v1860_v37, %v547_v45  ;;  %v2126_v37 = vld [vmem:[%s2854_s5 + $0x30] sm:$0xff]   ;;  %v2118_v42 = vld [vmem:[%s2439_s22 + $0x8] sm:$0xff]  }
  0xaf   : > { %1985 = vmatpush3.bf16.msra.mxu0 %v2550_v36  ;;  %v2119_v45 = vld [vmem:[%s2439_s22 + $0x10] sm:$0xff]  }
  0xb0   : > { %1986 = vmatprep.subr.bf16.mxu0 %v854_v52  ;;  %v853_v60 = vpack.c.bf16 %v2555_v47, %v2557_v48 }
  0xb1   : > { %v542_v55 = vpop.permute.xlu1 %541  ;;  %v537_v56 = vpop.permute.xlu0 %536 }
  0xb2   : > { %v2563_v58 = vmul.f32 %v1857_v46, %v542_v55  ;;  %v2565_v59 = vmul.f32 %v1856_v53, %v537_v56  ;;  %v2127_v55 = vld [vmem:[%s2854_s5 + $0x28] sm:$0xff]  }
  0xb3   : > { %1987 = vmatpush3.bf16.msra.mxu0 %v854_v52 }
  0xb4   : > { %1988 = vmatprep.subr.bf16.mxu0 %v853_v60  ;;  %v852_v4 = vpack.c.bf16 %v2563_v58, %v2565_v59 }
  0xb5   : > { %v532_v63 = vpop.permute.xlu1 %531  ;;  %v527_v1 = vpop.permute.xlu0 %526 }
  0xb6   : > { %v2570_v0 = vmul.f32 %v1853_v57, %v532_v63  ;;  %v2572_v3 = vmul.f32 %v1852_v61, %v527_v1  ;;  %v2128_v61 = vld [vmem:[%s2854_s5 + $0x20] sm:$0xff]   ;;  %v2120_v63 = vld [vmem:[%s2439_s22 + $0x18] sm:$0xff]  }
  0xb7   : > { %1989 = vmatpush3.bf16.msra.mxu0 %v853_v60 }
  0xb8   : > { %1990 = vmatprep.subr.bf16.mxu0 %v852_v4  ;;  %v851_v21 = vpack.c.bf16 %v2570_v0, %v2572_v3 }
  0xb9   : > { %v522_v6 = vpop.permute.xlu1 %521  ;;  %v517_v7 = vpop.permute.xlu0 %516 }
  0xba   : > { %v2576_v8 = vmul.f32 %v1849_v2, %v522_v6  ;;  %v594_v17 = vmul.f32 %v1848_v5, %v517_v7 }
  0xbb   : > { %1991 = vmatpush3.bf16.msra.mxu0 %v852_v4 }
  0xbc   : > { %v785_v22 = vadd.f32 %v2576_v8, %v594_v17  ;;  %1992 = vmatprep.subr.bf16.mxu0 %v851_v21  ;;  %v850_v23 = vpack.c.bf16 %v2576_v8, %v594_v17 }
  0xbd   : > { %v644_v27 = vpop.permute.xlu1 %643 }
  0xbe   : > { %v786_v30 = vadd.f32 %v785_v22, %v2572_v3  ;;  %2028 = vmatprep.mubr.bf16.mxu1 %v850_v23  ;;  %vm690_vm9 = vcmp.eq.s32.totalorder %v644_v27, 1  ;;  %v2122_v22 = vld [vmem:[%s2439_s22 + $0x28] sm:$0xff]  }
  0xbf   : > { %1993 = vmatpush3.bf16.msra.mxu0 %v851_v21  ;;  %2029 = vmatmul.mubr.bf16.vlgmr.msra.gmra.mxu1 %v851_v21 }
  0xc0   : > { %v787_v32 = vadd.f32 %v786_v30, %v2570_v0  ;;  %1994 = vmatprep.subr.bf16.mxu0 %v850_v23  ;;  %2032 = vmatprep.mubr.bf16.mxu1 %v852_v4  ;;  %v706_v4 = vsel %vm690_vm9, %v594_v17, -1e+30 }
  0xc1   : > { %v647_v33 = vpop.permute.xlu1 %646  ;;  %2084 = vmatpush3.bf16.msra.mxu1 %v2125_v31 }
  0xc2   : > { %v788_v41 = vadd.f32 %v787_v32, %v2565_v59  ;;  %2077 = vmatprep.subr.bf16.mxu1 %v2126_v37  ;;  %vm691_vm14 = vcmp.eq.s32.totalorder %v647_v33, 1 }
  0xc3   : > { %1995 = vmatpush3.bf16.msra.mxu0 %v850_v23  ;;  %v707_v23 = vsel %vm691_vm14, %v2576_v8, -1e+30 }
  0xc4   : > { %v789_v46 = vadd.f32 %v788_v41, %v2563_v58  ;;  %2044 = vmatprep.subr.bf16.mxu0 %v2125_v31 }
  0xc5   : > { %v650_v53 = vpop.permute.xlu1 %649  ;;  %2085 = vmatpush3.bf16.msra.mxu1 %v2126_v37 }
  0xc6   : > { %v790_v54 = vadd.f32 %v789_v46, %v2557_v48  ;;  %1997 = vmatmul.mubr.bf16.vlgmr.msra.gmra.mxu0 %v2118_v42  ;;  %2078 = vmatprep.subr.bf16.mxu1 %v2127_v55  ;;  %vm692_vm9 = vcmp.eq.s32.totalorder %v650_v53, 1 }
  0xc7   : > { %2033 = vmatmul.mubr.bf16.gmra.mxu1 %v853_v60  ;;  %2000 = vmatprep.mubr.bf16.mxu0 %v2119_v45  ;;  %v2121_v60 = vld [vmem:[%s2439_s22 + $0x20] sm:$0xff]   ;;  %v708_v30 = vsel %vm692_vm9, %v2572_v3, -1e+30 }
  0xc8   : > { %v791_v56 = vadd.f32 %v790_v54, %v2555_v47  ;;  %2036 = vmatprep.mubr.bf16.mxu1 %v854_v52  ;;  %2045 = vmatpush3.bf16.msra.mxu0 %v2125_v31 }
  0xc9   : > { %v653_v57 = vpop.permute.xlu1 %652  ;;  %2046 = vmatprep.subr.bf16.mxu0 %v2126_v37  ;;  %2086 = vmatpush3.bf16.msra.mxu1 %v2127_v55 }
  0xca   : > { %v792_v62 = vadd.f32 %v791_v56, %v2546_v35  ;;  %2079 = vmatprep.subr.bf16.mxu1 %v2128_v61  ;;  %vm693_vm15 = vcmp.eq.s32.totalorder %v653_v57, 1 }
  0xcb   : > { %v709_v32 = vsel %vm693_vm15, %v2570_v0, -1e+30 }
  0xcc   : > { %v793_v1 = vadd.f32 %v792_v62, %v2544_v34  ;;  %2047 = vmatpush3.bf16.msra.mxu0 %v2126_v37 }
  0xcd   : > { %v656_v2 = vpop.permute.xlu1 %655  ;;  %2048 = vmatprep.subr.bf16.mxu0 %v2127_v55  ;;  %2087 = vmatpush3.bf16.msra.mxu1 %v2128_v61 }
  0xce   : > { %v794_v52 = vadd.f32 %v793_v1, %v2534_v25  ;;  %vm694_vm0 = vcmp.eq.s32.totalorder %v656_v2, 1  ;;  %2001 = vmatmul.mubr.bf16.gmra.mxu0 %v2120_v63 }
  0xcf   : > { %v710_v5 = vsel %vm694_vm0, %v2565_v59, -1e+30  ;;  %2037 = vmatmul.mubr.bf16.gmra.mxu1 %v2550_v36  ;;  %2004 = vmatprep.mubr.bf16.mxu0 %v2121_v60  ;;  %v2123_v59 = vld [vmem:[%s2439_s22 + $0x30] sm:$0xff]  }
  0xd0   : > { %v2610_v6 = vadd.f32 %v794_v52, %v2532_v24  ;;  %v722_v7 = vmax.f32 %v706_v4, %v710_v5  ;;  %2040 = vmatprep.mubr.bf16.mxu1 %v2539_v26  ;;  %2049 = vmatpush3.bf16.msra.mxu0 %v2127_v55 }
  0xd1   : > { %v659_v21 = vpop.permute.xlu1 %658  ;;  %2050 = vmatprep.subr.bf16.mxu0 %v2128_v61 }
  0xd2   : > { %vm695_vm13 = vcmp.eq.s32.totalorder %v659_v21, 1 }
  0xd3   : > { %v711_v17 = vsel %vm695_vm13, %v2563_v58, -1e+30  ;;  %v2124_v58 = vld [vmem:[%s2439_s22 + $0x38] sm:$0xff]  }
  0xd4   : > { %v723_v36 = vmax.f32 %v707_v23, %v711_v17  ;;  %2051 = vmatpush3.bf16.msra.mxu0 %v2128_v61 }
  0xd5   : > { %v662_v27 = vpop.permute.xlu1 %661 }
  0xd6   : > { %vm696_vm0 = vcmp.eq.s32.totalorder %v662_v27, 1  ;;  %2005 = vmatmul.mubr.bf16.gmra.mxu0 %v2122_v22 }
  0xd7   : > { %v712_v26 = vsel %vm696_vm0, %v2557_v48, -1e+30  ;;  %2041 = vmatmul.mubr.bf16.gmra.mxu1 %v2530_v18  ;;  %2008 = vmatprep.mubr.bf16.mxu0 %v2123_v59 }
  0xd8   : > { %v724_v31 = vmax.f32 %v708_v30, %v712_v26  ;;  %v2130_v30 = vld [vmem:[%s2854_s5 + $0x10] sm:$0xff]   ;;  %v2131_v26 = vld [vmem:[%s2854_s5 + $0x8] sm:$0xff]  }
  0xd9   : > { %v665_v8 = vpop.permute.xlu1 %664 }
  0xda   : > { %vm697_vm14 = vcmp.eq.s32.totalorder %v665_v8, 1  ;;  %v796_v8 = vadd.f32 %v2610_v6, %v2521_v13  ;;  %v2193_v6 = vmov 1966171168  }
  0xdb   : > { %v713_v33 = vsel %vm697_vm14, %v2555_v47, -1e+30 }
  0xdc   : > { %v725_v37 = vmax.f32 %v709_v32, %v713_v33 }
  0xdd   : > { %v671_v41 = vpop.permute.xlu1 %670 }
  0xde   : > { %vm699_vm13 = vcmp.eq.s32.totalorder %v671_v41, 1  ;;  %2009 = vmatmul.mubr.bf16.gmra.mxu0 %v2124_v58  ;;  %v797_v58 = vadd.f32 %v796_v8, %v2525_v16 }
  0xdf   : > { %v715_v3 = vsel %vm699_vm13, %v2544_v34, -1e+30 }
  0xe0   : > { %v727_v42 = vmax.f32 %v723_v36, %v715_v3  ;;  %v798_v32 = vadd.f32 %v797_v58, %v2519_v12 }
  0xe1   : > { %v674_v48 = vpop.permute.xlu1 %673 }
  0xe2   : > { %vm700_vm9 = vcmp.eq.s32.totalorder %v674_v48, 1  ;;  %v799_v33 = vadd.f32 %v798_v32, %v2523_v15 }
  0xe3   : > { %v716_v18 = vsel %vm700_vm9, %v2534_v25, -1e+30 }
  0xe4   : > { %v728_v45 = vmax.f32 %v724_v31, %v716_v18  ;;  %v2132_v31 = vld [vmem:[%s2854_s5] sm:$0xff]  }
  0xe5   : > { %v677_v46 = vpop.permute.xlu1 %676 }
  0xe6   : > { %vm701_vm0 = vcmp.eq.s32.totalorder %v677_v46, 1  ;;  %v776_v53 = vpop.xlane.xlu0 %775 }
  0xe7   : > { %v717_v54 = vsel %vm701_vm0, %v2532_v24, -1e+30  ;;  %v777_v0 = vrot.slane %v776_v53, 4 }
  0xe8   : > { %v729_v55 = vmax.f32 %v725_v37, %v717_v54  ;;  %v800_v37 = vrot.slane %v799_v33, 4 }
  0xe9   : > { %v778_v47 = vadd.f32 %v777_v0, %v776_v53  ;;  %v680_v56 = vpop.permute.xlu1 %679  ;;  %v816_v53 = vlaneseq }
  0xea   : > { %vm702_vm14 = vcmp.eq.s32.totalorder %v680_v56, 1  ;;  %v801_v3 = vadd.f32 %v800_v37, %v799_v33 }
  0xeb   : > { %v779_v57 = vrot.slane %v778_v47, 2  ;;  %v718_v24 = vsel %vm702_vm14, %v2521_v13, -1e+30  ;;  %v817_v0 = vshrl.u32 %v816_v53, 7 }
  0xec   : > { %v802_v18 = vrot.slane %v801_v3, 2 }
  0xed   : > { %v683_v61 = vpop.permute.xlu1 %682  ;;  %v780_v62 = vadd.f32 %v779_v57, %v778_v47 }
  0xee   : > { %vm703_vm15 = vcmp.eq.s32.totalorder %v683_v61, 1  ;;  %v668_v34 = vpop.permute.xlu0 %667  ;;  %v803_v46 = vadd.f32 %v802_v18, %v801_v3 }
  0xef   : > { %vm698_vm13 = vcmp.eq.s32.totalorder %v668_v34, 1  ;;  %v781_v63 = vrot.slane %v780_v62, 1  ;;  %v719_v25 = vsel %vm703_vm15, %v2525_v16, -1e+30  ;;  %v814_v16 = vunpack.c.l.s4 %v2193_v6 }
  0xf0   : > { %v714_v60 = vsel %vm698_vm13, %v2546_v35, -1e+30  ;;  %v731_v5 = vmax.f32 %v727_v42, %v719_v25  ;;  %vm831_vm15 = vcmp.lt.s32.totalorder %v816_v53, 256 }
  0xf1   : > { %v726_v1 = vmax.f32 %v722_v7, %v714_v60  ;;  %v686_v2 = vpop.permute.xlu1 %685  ;;  %v782_v52 = vadd.f32 %v781_v63, %v780_v62  ;;  %v2129_v7 = vld [vmem:[%s2854_s5 + $0x18] sm:$0xff]   ;;  %v809_v63 = vld [vmem:[%s382_s11] sm:$0x3] }
  0xf2   : > { %vm704_vm9 = vcmp.eq.s32.totalorder %v686_v2, 1  ;;  %v689_v4 = vpop.permute.xlu0 %688  ;;  %2052 = vmatprep.subr.bf16.mxu0 %v2129_v7  ;;  %2080 = vmatprep.subr.bf16.mxu1 %v2129_v7 }
  0xf3   : > { %v730_v21 = vmax.f32 %v726_v1, %v718_v24  ;;  %v720_v22 = vsel %vm704_vm9, %v2519_v12, -1e+30  ;;  %vm705_vm0 = vcmp.eq.s32.totalorder %v689_v4, 1  ;;  %2092 = vpush %v782_v52  ;;  %2053 = vmatpush3.bf16.msra.mxu0 %v2129_v7  ;;  %2088 = vmatpush3.bf16.msra.mxu1 %v2129_v7  ;;  %v804_v12 = vrot.slane %v803_v46, 1 }
  0xf4   : > { %v732_v23 = vmax.f32 %v728_v45, %v720_v22  ;;  %v721_v17 = vsel %vm705_vm0, %v2523_v15, -1e+30  ;;  %2054 = vmatprep.subr.bf16.mxu0 %v2130_v30  ;;  %2081 = vmatprep.subr.bf16.mxu1 %v2130_v30  ;;  %v815_v15 = vunpack.c.0.s8 %v814_v16 }
  0xf5   : > { %v734_v59 = vmax.f32 %v730_v21, %v731_v5  ;;  %v733_v36 = vmax.f32 %v729_v55, %v721_v17  ;;  %v805_v55 = vadd.f32 %v804_v12, %v803_v46 }
  0xf6   : > { %v818_v61 = vsub.s32 %v815_v15, %v817_v0  ;;  %v2664_v0 = vld [vmem:[%s2855_s6] ss:$0 sm:$0xff] }
  0xf7   : > { %v735_v27 = vmax.f32 %v732_v23, %v733_v36  ;;  %2055 = vmatpush3.bf16.msra.mxu0 %v2130_v30  ;;  %2089 = vmatpush3.bf16.msra.mxu1 %v2130_v30 }
  0xf8   : > { %2056 = vmatprep.subr.bf16.mxu0 %v2131_v26  ;;  %2082 = vmatprep.subr.bf16.mxu1 %v2131_v26 }
  0xf9   : > { %v736_v35 = vmax.f32 %v734_v59, %v735_v27 }
  0xfb   : > { %2057 = vmatpush3.bf16.msra.mxu0 %v2131_v26  ;;  %2090 = vmatpush3.bf16.msra.mxu1 %v2131_v26  ;;  %v737_v41 = vrot.slane %v736_v35, 4 }
  0xfc   : > { %2058 = vmatprep.subr.bf16.mxu0 %v2132_v31  ;;  %2083 = vmatprep.subr.bf16.mxu1 %v2132_v31 }
  0xfd   : > { %v738_v42 = vmax.f32 %v736_v35, %v737_v41 }
  0xff   : > { %2059 = vmatpush3.bf16.msra.mxu0 %v2132_v31  ;;  %2091 = vmatpush3.bf16.msra.mxu1 %v2132_v31  ;;  %v739_v45 = vrot.slane %v738_v42, 2 }
 0x101   : > { %v740_v13 = vmax.f32 %v738_v42, %v739_v45 }
 0x103   : > { %v741_v54 = vrot.slane %v740_v13, 1 }
 0x105   : > { %v742_v56 = vmax.f32 %v740_v13, %v741_v54 }
 0x124   : > { %s2093_s26 = spop %2092 }
 0x125   : > { %s784_s28 = smax.f32 %s2192_s27, %s2093_s26 }
 0x126   : > { %v806_v48 = vstv %s784_s28  ;;  %s2709_s28 = scalar_lea.vmem %s2856_s7, %s1758_s23 }
 0x127   : > { %2133 = vrcp.f32 %v806_v48 }
 0x134   : > { %v2134_v47 = vpop.eup %2133 }
 0x135   : > { %v808_v57 = vmul.f32 %v2134_v47, %v805_v55 }
 0x137   : > { %v812_v62 = vcombine.low %v742_v56, %v808_v57 }
 0x139   : > { %v819_v34 = vrot.slane %v812_v62, %v818_v61  ;;  %v2672_v62 = vld [vmem:[%s2855_s6 + $0x1] ss:$0 sm:$0xff] }
 0x13b   : > { %v826_v25 = vrot.slane %v819_v34, %v818_v61 }
 0x13d   : > { %v828_v60 = vadd.f32 %v826_v25, %v809_v63 }
 0x13f   : > { %833 = vst.msk [vmem:[%s398_s16] sm:$0x3] %vm831_vm15, %v828_v60 }
 0x17f   : > { %v2030_v3 = vpop.f32.mrf.mxu1 }
 0x181   : > { %v1125_v42 = vpop.f32.mrf.mxu1 }
 0x183   : > { %v2031_v48 = vpop.f32.mrf.mxu1 }
 0x185   : > { %v1128_v18 = vpop.f32.mrf.mxu1 }
 0x186   : > { %v1998_v1 = vpop.f32.mrf.mxu0 }
 0x187   : > { %v2034_v45 = vpop.f32.mrf.mxu1 }
 0x188   : > { %v940_v2 = vpop.f32.mrf.mxu0 }
 0x189   : > { %v1141_v46 = vpop.f32.mrf.mxu1 }
 0x18a   : > { %v1999_v52 = vpop.f32.mrf.mxu0 }
 0x18b   : > { %v1004_v5 = vpack.c.bf16 %v1999_v52, %v1998_v1  ;;  %v2035_v13 = vpop.f32.mrf.mxu1 }
 0x18c   : > { %v943_v24 = vpop.f32.mrf.mxu0 }
 0x18d   : > { %v1003_v4 = vpack.c.bf16 %v943_v24, %v940_v2  ;;  %v1144_v6 = vpop.f32.mrf.mxu1 }
 0x18e   : > { %v2002_v21 = vpop.f32.mrf.mxu0 }
 0x18f   : > { %2060 = vmatprep.mubr.bf16.mxu0 %v1003_v4  ;;  %v2038_v16 = vpop.f32.mrf.mxu1 }
 0x190   : > { %v956_v22 = vpop.f32.mrf.mxu0  ;;  %2061 = vmatmul.mubr.bf16.vlgmr.msra.gmra.mxu0 %v1004_v5 }
 0x191   : > { %v2655_v53 = vpop.f32.mrf.mxu1 }
 0x192   : > { %v2003_v23 = vpop.f32.mrf.mxu0 }
 0x193   : > { %v1006_v36 = vpack.c.bf16 %v2003_v23, %v2002_v21  ;;  %v2657_v12 = vpop.f32.mrf.mxu1  ;;  %v2682_v21 = vld [vmem:[%s2855_s6 + $0x2] ss:$0 sm:$0xff] }
 0x194   : > { %v959_v17 = vpop.f32.mrf.mxu0 }
 0x195   : > { %v1005_v59 = vpack.c.bf16 %v959_v17, %v956_v22  ;;  %v2659_v54 = vpop.f32.mrf.mxu1 }
 0x196   : > { %v2006_v27 = vpop.f32.mrf.mxu0 }
 0x197   : > { %2064 = vmatprep.mubr.bf16.mxu0 %v1005_v59  ;;  %v2666_v47 = vpop.f32.mrf.mxu1 }
 0x198   : > { %v972_v35 = vpop.f32.mrf.mxu0  ;;  %2065 = vmatmul.mubr.bf16.gmra.mxu0 %v1006_v36 }
 0x199   : > { %v2675_v1 = vpop.f32.mrf.mxu1 }
 0x19a   : > { %v2007_v7 = vpop.f32.mrf.mxu0 }
 0x19b   : > { %v1008_v31 = vpack.c.bf16 %v2007_v7, %v2006_v27  ;;  %v2689_v27 = vld [vmem:[%s2855_s6 + $0x3] ss:$0 sm:$0xff] }
 0x19c   : > { %v975_v30 = vpop.f32.mrf.mxu0 }
 0x19d   : > { %v1007_v26 = vpack.c.bf16 %v975_v30, %v972_v35  ;;  %v2691_v35 = vpop.f32.mrf.mxu1 }
 0x19e   : > { %v2010_v8 = vpop.f32.mrf.mxu0 }
 0x19f   : > { %2068 = vmatprep.mubr.bf16.mxu1 %v1007_v26 }
 0x1a0   : > { %v988_v58 = vpop.f32.mrf.mxu0  ;;  %2069 = vmatmul.mubr.bf16.vlgmr.msra.gmra.mxu1 %v1008_v31 }
 0x1a2   : > { %v2011_v32 = vpop.f32.mrf.mxu0 }
 0x1a3   : > { %v1010_v41 = vpack.c.bf16 %v2011_v32, %v2010_v8 }
 0x1a4   : > { %v991_v33 = vpop.f32.mrf.mxu0 }
 0x1a5   : > { %v1009_v37 = vpack.c.bf16 %v991_v33, %v988_v58 }
 0x1a7   : > { %2072 = vmatprep.mubr.bf16.mxu1 %v1009_v37 }
 0x1a8   : > { %2073 = vmatmul.mubr.bf16.gmra.mxu1 %v1010_v41 }
 0x250   : > { %v2062_v15 = vpop.f32.mrf.mxu0 }
 0x251   : > { %v1279_v55 = vadd.f32 %v2062_v15, %v2030_v3 }
 0x252   : > { %v1270_v56 = vpop.f32.mrf.mxu0 }
 0x253   : > { %v1340_v57 = vadd.f32 %v2664_v0, %v1279_v55  ;;  %v1271_v61 = vadd.f32 %v1270_v56, %v1125_v42 }
 0x254   : > { %v2063_v34 = vpop.f32.mrf.mxu0 }
 0x255   : > { %v1356_v63 = vmax.f32 %v1340_v57, 0.0  ;;  %v1338_v25 = vadd.f32 %v2664_v0, %v1271_v61  ;;  %v1282_v60 = vadd.f32 %v2063_v34, %v2031_v48 }
 0x256   : > { %v1273_v2 = vpop.f32.mrf.mxu0 }
 0x257   : > { %v1377_v52 = vmul.f32 %v2672_v62, %v1356_v63  ;;  %v1354_v24 = vmax.f32 %v1338_v25, 0.0  ;;  %v1341_v4 = vadd.f32 %v2664_v0, %v1282_v60  ;;  %v1274_v5 = vadd.f32 %v1273_v2, %v1128_v18  ;;  %v2700_v18 = vpop.f32.mrf.mxu1 }
 0x258   : > { %v2066_v22 = vpop.f32.mrf.mxu0 }
 0x259   : > { %v1375_v23 = vmul.f32 %v2672_v62, %v1354_v24  ;;  %v1357_v17 = vmax.f32 %v1341_v4, 0.0  ;;  %v1339_v59 = vadd.f32 %v2664_v0, %v1274_v5  ;;  %v1295_v36 = vadd.f32 %v2066_v22, %v2034_v45 }
 0x25a   : > { %v1286_v7 = vpop.f32.mrf.mxu0  ;;  %v1398_v30 = vadd.f32 %v2682_v21, %v1377_v52 }
 0x25b   : > { %v1378_v26 = vmul.f32 %v2672_v62, %v1357_v17  ;;  %v1355_v31 = vmax.f32 %v1339_v59, 0.0  ;;  %v1344_v8 = vadd.f32 %v2664_v0, %v1295_v36  ;;  %v1287_v58 = vadd.f32 %v1286_v7, %v1141_v46 }
 0x25c   : > { %v2067_v32 = vpop.f32.mrf.mxu0  ;;  %v1499_v33 = vmul.f32 %v2689_v27, %v1398_v30  ;;  %v1396_v37 = vadd.f32 %v2682_v21, %v1375_v23 }
 0x25d   : > { %v1376_v41 = vmul.f32 %v2672_v62, %v1355_v31  ;;  %v1360_v3 = vmax.f32 %v1344_v8, 0.0  ;;  %v1342_v42 = vadd.f32 %v2664_v0, %v1287_v58  ;;  %v1298_v48 = vadd.f32 %v2067_v32, %v2035_v13 }
 0x25e   : > { %1517 = vadd.xlane.f32.xlu0 %v1499_v33  ;;  %v1289_v45 = vpop.f32.mrf.mxu0  ;;  %v1497_v15 = vmul.f32 %v2689_v27, %v1396_v37  ;;  %v1399_v55 = vadd.f32 %v2682_v21, %v1378_v26 }
 0x25f   : > { %v1381_v46 = vmul.f32 %v2672_v62, %v1360_v3  ;;  %v1358_v56 = vmax.f32 %v1342_v42, 0.0  ;;  %v1345_v13 = vadd.f32 %v2664_v0, %v1298_v48  ;;  %v1290_v57 = vadd.f32 %v1289_v45, %v1144_v6 }
 0x260   : > { %1513 = vadd.xlane.f32.xlu1 %v1497_v15  ;;  %v2070_v61 = vpop.f32.mrf.mxu1  ;;  %v1500_v34 = vmul.f32 %v2689_v27, %v1399_v55  ;;  %v1886_v63 = vpack.c.bf16 %v1399_v55, %v1398_v30  ;;  %v1397_v25 = vadd.f32 %v2682_v21, %v1376_v41 }
 0x261   : > { %v1379_v60 = vmul.f32 %v2672_v62, %v1358_v56  ;;  %v1361_v2 = vmax.f32 %v1345_v13, 0.0  ;;  %v1343_v52 = vadd.f32 %v2664_v0, %v1290_v57  ;;  %v1311_v24 = vadd.f32 %v2070_v61, %v2038_v16 }
 0x262   : > { %1519 = vadd.xlane.f32.xlu0 %v1500_v34  ;;  %1925 = vst [vmem:[%s2709_s28 + $0x8] sm:$0xff] %v1886_v63   ;;  %v1302_v4 = vpop.f32.mrf.mxu1  ;;  %v1881_v5 = vpack.c.bf16 %v1397_v25, %v1396_v37  ;;  %v1402_v6 = vadd.f32 %v2682_v21, %v1381_v46  ;;  %v1498_v7 = vmul.f32 %v2689_v27, %v1397_v25 }
 0x263   : > { %v1382_v22 = vmul.f32 %v2672_v62, %v1361_v2  ;;  %v1359_v23 = vmax.f32 %v1343_v52, 0.0  ;;  %v1348_v17 = vadd.f32 %v2664_v0, %v1311_v24  ;;  %v1303_v59 = vadd.f32 %v1302_v4, %v2655_v53 }
 0x264   : > { %v2071_v36 = vpop.f32.mrf.mxu1  ;;  %1882 = vst [vmem:[%s2709_s28] sm:$0xff] %v1881_v5   ;;  %v1503_v30 = vmul.f32 %v2689_v27, %v1402_v6  ;;  %v1400_v16 = vadd.f32 %v2682_v21, %v1379_v60 }
 0x265   : > { %v1380_v26 = vmul.f32 %v2672_v62, %v1359_v23  ;;  %v1364_v31 = vmax.f32 %v1348_v17, 0.0  ;;  %v1346_v8 = vadd.f32 %v2664_v0, %v1303_v59  ;;  %v1314_v58 = vadd.f32 %v2071_v36, %v2657_v12 }
 0x266   : > { %1515 = vadd.xlane.f32.xlu0 %v1498_v7  ;;  %1525 = vadd.xlane.f32.xlu1 %v1503_v30  ;;  %v1305_v32 = vpop.f32.mrf.mxu1  ;;  %v1403_v53 = vadd.f32 %v2682_v21, %v1382_v22  ;;  %v1501_v15 = vmul.f32 %v2689_v27, %v1400_v16 }
 0x267   : > { %v1385_v33 = vmul.f32 %v2672_v62, %v1364_v31  ;;  %v1362_v37 = vmax.f32 %v1346_v8, 0.0  ;;  %v1349_v41 = vadd.f32 %v2664_v0, %v1314_v58  ;;  %v1306_v3 = vadd.f32 %v1305_v32, %v2659_v54 }
 0x268   : > { %v2074_v42 = vpop.f32.mrf.mxu1  ;;  %v1896_v48 = vpack.c.bf16 %v1403_v53, %v1402_v6  ;;  %v1504_v45 = vmul.f32 %v2689_v27, %v1403_v53  ;;  %v1401_v12 = vadd.f32 %v2682_v21, %v1380_v26 }
 0x269   : > { %v1383_v55 = vmul.f32 %v2672_v62, %v1362_v37  ;;  %v1365_v46 = vmax.f32 %v1349_v41, 0.0  ;;  %v1347_v56 = vadd.f32 %v2664_v0, %v1306_v3  ;;  %v1327_v13 = vadd.f32 %v2074_v42, %v2666_v47 }
 0x26a   : > { %1927 = vst [vmem:[%s2709_s28 + $0x18] sm:$0xff] %v1896_v48   ;;  %1527 = vadd.xlane.f32.xlu0 %v1504_v45  ;;  %1521 = vadd.xlane.f32.xlu1 %v1501_v15  ;;  %v1318_v54 = vpop.f32.mrf.mxu1  ;;  %v1891_v57 = vpack.c.bf16 %v1401_v12, %v1400_v16  ;;  %v1406_v61 = vadd.f32 %v2682_v21, %v1385_v33 }
 0x26b   : > { %v1386_v34 = vmul.f32 %v2672_v62, %v1365_v46  ;;  %v1363_v63 = vmax.f32 %v1347_v56, 0.0  ;;  %v1352_v25 = vadd.f32 %v2664_v0, %v1327_v13  ;;  %v1319_v60 = vadd.f32 %v1318_v54, %v2675_v1 }
 0x26c   : > { %v2075_v2 = vpop.f32.mrf.mxu1  ;;  %1926 = vst [vmem:[%s2709_s28 + $0x10] sm:$0xff] %v1891_v57   ;;  %v1502_v52 = vmul.f32 %v2689_v27, %v1401_v12  ;;  %v1507_v47 = vmul.f32 %v2689_v27, %v1406_v61  ;;  %v1404_v24 = vadd.f32 %v2682_v21, %v1383_v55 }
 0x26d   : > { %v1384_v4 = vmul.f32 %v2672_v62, %v1363_v63  ;;  %v1368_v5 = vmax.f32 %v1352_v25, 0.0  ;;  %v1350_v6 = vadd.f32 %v2664_v0, %v1319_v60  ;;  %v1330_v22 = vadd.f32 %v2075_v2, %v2691_v35 }
 0x26e   : > { %1523 = vadd.xlane.f32.xlu0 %v1502_v52  ;;  %1533 = vadd.xlane.f32.xlu1 %v1507_v47  ;;  %v1321_v23 = vpop.f32.mrf.mxu1  ;;  %v1407_v1 = vadd.f32 %v2682_v21, %v1386_v34  ;;  %v1505_v16 = vmul.f32 %v2689_v27, %v1404_v24 }
 0x26f   : > { %v1366_v17 = vmax.f32 %v1350_v6, 0.0  ;;  %v1353_v59 = vadd.f32 %v2664_v0, %v1330_v22  ;;  %v1322_v36 = vadd.f32 %v1321_v23, %v2700_v18  ;;  %v1405_v26 = vadd.f32 %v2682_v21, %v1384_v4 }
 0x270   : > { %v1906_v7 = vpack.c.bf16 %v1407_v1, %v1406_v61  ;;  %v1508_v30 = vmul.f32 %v2689_v27, %v1407_v1  ;;  %v1389_v35 = vmul.f32 %v2672_v62, %v1368_v5 }
 0x271   : > { %v1387_v31 = vmul.f32 %v2672_v62, %v1366_v17  ;;  %v1369_v8 = vmax.f32 %v1353_v59, 0.0  ;;  %v1351_v58 = vadd.f32 %v2664_v0, %v1322_v36  ;;  %v1901_v32 = vpack.c.bf16 %v1405_v26, %v1404_v24 }
 0x272   : > { %1929 = vst [vmem:[%s2709_s28 + $0x28] sm:$0xff] %v1906_v7   ;;  %1535 = vadd.xlane.f32.xlu0 %v1508_v30  ;;  %1529 = vadd.xlane.f32.xlu1 %v1505_v16  ;;  %v1506_v37 = vmul.f32 %v2689_v27, %v1405_v26  ;;  %v1410_v0 = vadd.f32 %v2682_v21, %v1389_v35 }
 0x273   : > { %v1390_v18 = vmul.f32 %v2672_v62, %v1369_v8  ;;  %v1367_v53 = vmax.f32 %v1351_v58, 0.0  ;;  %v1408_v33 = vadd.f32 %v2682_v21, %v1387_v31  ;;  %1928 = vst [vmem:[%s2709_s28 + $0x20] sm:$0xff] %v1901_v32  }
 0x274   : > { %v1511_v55 = vmul.f32 %v2689_v27, %v1410_v0 }
 0x275   : > { %v1388_v41 = vmul.f32 %v2672_v62, %v1367_v53  ;;  %v1509_v3 = vmul.f32 %v2689_v27, %v1408_v33  ;;  %v1411_v42 = vadd.f32 %v2682_v21, %v1390_v18 }
 0x276   : > { %1531 = vadd.xlane.f32.xlu0 %v1506_v37 }
 0x277   : > { %1537 = vadd.xlane.f32.xlu1 %v1509_v3  ;;  %v1409_v48 = vadd.f32 %v2682_v21, %v1388_v41  ;;  %v1916_v45 = vpack.c.bf16 %v1411_v42, %v1410_v0  ;;  %v1512_v62 = vmul.f32 %v2689_v27, %v1411_v42 }
 0x279   : > { %v1510_v15 = vmul.f32 %v2689_v27, %v1409_v48  ;;  %v1911_v12 = vpack.c.bf16 %v1409_v48, %v1408_v33  ;;  %1931 = vst [vmem:[%s2709_s28 + $0x38] sm:$0xff] %v1916_v45  }
 0x27b   : > { %1539 = vadd.xlane.f32.xlu0 %v1510_v15  ;;  %1930 = vst [vmem:[%s2709_s28 + $0x30] sm:$0xff] %v1911_v12   ;;  %1541 = vadd.xlane.f32.xlu1 %v1511_v55 }
 0x27f   : > { %1543 = vadd.xlane.f32.xlu0 %v1512_v62 }
 0x2e7   : > { %v1518_v46 = vpop.xlane.xlu0 %1517 }
 0x2e8   : > { %2135 = vtanh.f32 %v1518_v46 }
 0x2e9   : > { %v1514_v56 = vpop.xlane.xlu1 %1513 }
 0x2ea   : > { %2137 = vtanh.f32 %v1514_v56 }
 0x2eb   : > { %v1520_v13 = vpop.xlane.xlu0 %1519 }
 0x2ec   : > { %2139 = vtanh.f32 %v1520_v13 }
 0x2ef   : > { %v1516_v21 = vpop.xlane.xlu0 %1515  ;;  %v1526_v54 = vpop.xlane.xlu1 %1525 }
 0x2f0   : > { %2141 = vtanh.f32 %v1516_v21 }
 0x2f1   : > { %2143 = vtanh.f32 %v1526_v54 }
 0x2f3   : > { %v1528_v57 = vpop.xlane.xlu0 %1527  ;;  %v1522_v61 = vpop.xlane.xlu1 %1521 }
 0x2f4   : > { %2145 = vtanh.f32 %v1528_v57 }
 0x2f5   : > { %v2136_v27 = vpop.eup %2135  ;;  %2147 = vtanh.f32 %v1522_v61 }
 0x2f6   : > { %v1563_v34 = vsel %vm612_vm3, %v2136_v27, -2.0  ;;  %vm2867_vm3 = vcmp.gt.f32.partialorder %v2286_v10, 0.0 }
 0x2f7   : > { %v2138_v63 = vpop.eup %2137  ;;  %1579 = vst.msk [vmem:[%s2780_s30 + $0x10] sm:$0xff] %vm743_vm10, %v1563_v34  ;;  %v1524_v25 = vpop.xlane.xlu0 %1523 }
 0x2f8   : > { %v1534_v60 = vpop.xlane.xlu1 %1533  ;;  %v1561_v2 = vsel %vm610_vm1, %v2138_v63, -2.0  ;;  %2149 = vtanh.f32 %v1524_v25  ;;  %vm2865_vm1 = vcmp.gt.f32.partialorder %v2328_v29, 0.0 }
 0x2f9   : > { %v2140_v52 = vpop.eup %2139  ;;  %1577 = vst.msk [vmem:[%s2780_s30] sm:$0xff] %vm743_vm10, %v1561_v2  ;;  %2151 = vtanh.f32 %v1534_v60 }
 0x2fa   : > { %v1564_v47 = vsel %vm613_vm4, %v2140_v52, -2.0  ;;  %vm2868_vm4 = vcmp.gt.f32.partialorder %v2295_v14, 0.0 }
 0x2fb   : > { %1580 = vst.msk [vmem:[%s2780_s30 + $0x18] sm:$0xff] %vm743_vm10, %v1564_v47  ;;  %v1536_v43 = vpop.xlane.xlu0 %1535 }
 0x2fc   : > { %v1530_v24 = vpop.xlane.xlu1 %1529  ;;  %2153 = vtanh.f32 %v1536_v43 }
 0x2fd   : > { %v2142_v4 = vpop.eup %2141  ;;  %2155 = vtanh.f32 %v1530_v24 }
 0x2fe   : > { %v2144_v44 = vpop.eup %2143  ;;  %v1562_v5 = vsel %vm611_vm2, %v2142_v4, -2.0  ;;  %vm2866_vm2 = vcmp.gt.f32.partialorder %v2325_v28, 0.0 }
 0x2ff   : > { %1578 = vst.msk [vmem:[%s2780_s30 + $0x8] sm:$0xff] %vm743_vm10, %v1562_v5  ;;  %v1567_v6 = vsel %vm616_vm7, %v2144_v44, -2.0  ;;  %v1532_v51 = vpop.xlane.xlu0 %1531 }
 0x300   : > { %1583 = vst.msk [vmem:[%s2780_s30 + $0x30] sm:$0xff] %vm743_vm10, %v1567_v6  ;;  %2157 = vtanh.f32 %v1532_v51  ;;  %v1538_v22 = vpop.xlane.xlu1 %1537 }
 0x301   : > { %v2146_v23 = vpop.eup %2145  ;;  %2159 = vtanh.f32 %v1538_v22 }
 0x302   : > { %v2148_v1 = vpop.eup %2147  ;;  %v1568_v17 = vsel %vm617_vm8, %v2146_v23, -2.0 }
 0x303   : > { %1584 = vst.msk [vmem:[%s2780_s30 + $0x38] sm:$0xff] %vm743_vm10, %v1568_v17  ;;  %v1565_v40 = vsel %vm614_vm5, %v2148_v1, -2.0  ;;  %vm2869_vm5 = vcmp.gt.f32.partialorder %v2283_v9, 0.0 }
 0x304   : > { %1581 = vst.msk [vmem:[%s2780_s30 + $0x20] sm:$0xff] %vm743_vm10, %v1565_v40  ;;  %v1540_v39 = vpop.xlane.xlu0 %1539  ;;  %v1542_v59 = vpop.xlane.xlu1 %1541 }
 0x305   : > { %v2150_v36 = vpop.eup %2149  ;;  %2161 = vtanh.f32 %v1540_v39 }
 0x306   : > { %v2152_v7 = vpop.eup %2151  ;;  %v1566_v30 = vsel %vm615_vm6, %v2150_v36, -2.0  ;;  %2163 = vtanh.f32 %v1542_v59  ;;  %vm2870_vm6 = vcmp.gt.f32.partialorder %v2289_v11, 0.0 }
 0x307   : > { %1582 = vst.msk [vmem:[%s2780_s30 + $0x28] sm:$0xff] %vm743_vm10, %v1566_v30  ;;  %v1571_v38 = vsel %vm620_vm11, %v2152_v7, -2.0 }
 0x308   : > { %1587 = vst.msk [vmem:[%s2780_s30 + $0x50] sm:$0xff] %vm743_vm10, %v1571_v38  ;;  %v1544_v50 = vpop.xlane.xlu0 %1543 }
 0x309   : > { %v2154_v16 = vpop.eup %2153  ;;  %2165 = vtanh.f32 %v1544_v50 }
 0x30a   : > { %v2156_v26 = vpop.eup %2155  ;;  %v1572_v49 = vsel %vm621_vm12, %v2154_v16, -2.0 }
 0x30b   : > { %1588 = vst.msk [vmem:[%s2780_s30 + $0x58] sm:$0xff] %vm743_vm10, %v1572_v49  ;;  %v1569_v35 = vsel %vm2865_vm1, %v2156_v26, -2.0 }
 0x30c   : > { %1585 = vst.msk [vmem:[%s2780_s30 + $0x40] sm:$0xff] %vm743_vm10, %v1569_v35 }
 0x30d   : > { %v2158_v20 = vpop.eup %2157 }
 0x30e   : > { %v2160_v31 = vpop.eup %2159  ;;  %v1570_v8 = vsel %vm2866_vm2, %v2158_v20, -2.0 }
 0x30f   : > { %1586 = vst.msk [vmem:[%s2780_s30 + $0x48] sm:$0xff] %vm743_vm10, %v1570_v8  ;;  %v1573_v19 = vsel %vm2867_vm3, %v2160_v31, -2.0 }
 0x310   : > { %1589 = vst.msk [vmem:[%s2780_s30 + $0x60] sm:$0xff] %vm743_vm10, %v1573_v19 }
 0x312   : > { %v2162_v58 = vpop.eup %2161 }
 0x313   : > { %v2164_v32 = vpop.eup %2163  ;;  %v1574_v29 = vsel %vm2868_vm4, %v2162_v58, -2.0 }
 0x314   : > { %1590 = vst.msk [vmem:[%s2780_s30 + $0x68] sm:$0xff] %vm743_vm10, %v1574_v29  ;;  %v1575_v18 = vsel %vm2869_vm5, %v2164_v32, -2.0 }
 0x315   : > { %1591 = vst.msk [vmem:[%s2780_s30 + $0x70] sm:$0xff] %vm743_vm10, %v1575_v18 }
 0x316   : > { %v2166_v28 = vpop.eup %2165 }
 0x317   : > { %v1576_v53 = vsel %vm2870_vm6, %v2166_v28, -2.0 }
 0x318   : > { %1592 = vst.msk [vmem:[%s2780_s30 + $0x78] sm:$0xff] %vm743_vm10, %v1576_v53 }
 0x319 PF: > { %s26_s14 = sadd.s32 1, %s2187_s14  }
 0x31a   : > { %p23_p10 = scmp.ge.s32.totalorder %s26_s14, 4  }
 0x31c   :  { %25 = sbr.rel (!%p23_p10) target bundleno = 16 (0x10), region = 107 }

</bundles_post_ra>
